<compile_context>
chip_gen: v7x
topology: tpu7x:2x2x1
jax: 0.10.0
libtpu: 0.0.40
codegen_flags: <defaults>
</compile_context>

<pallas_src>
import functools

import jax
import jax.numpy as jnp
from jax.experimental import pallas as pl
from jax.experimental.pallas import tpu as pltpu

NUM_LAYERS = 5
HIDDEN = 50
OUTPUT = 2
INPUT = 1
OUT_PAD = 128                  # lane-dense output width; real outputs in cols [0, OUTPUT)
LN_EPS = 1e-5
N_HIDDEN = NUM_LAYERS - 1      # layers that have LayerNorm + relu**3


# ----------------------------------------------------------------------------- kernel
def mlp_kernel(x_ref, vec_ref, red_ref, whid_ref, wlast_ref, blast_ref, out_ref):
    f32 = jnp.float32
    vec = vec_ref[...]                       # (18, H) packed row-parameter slab
    red = red_ref[...]                       # (H, H) = ones * (1/H)  (scale pre-folded)

    x = x_ref[...].astype(f32)               # (bm, 1)

    # ---- layer 0: Linear(1 -> H) + LayerNorm + relu^3 -------------------------------
    # The pre-LN activation h0 = x*w0 + b0 is affine in the scalar x, so the row
    # statistics come from precomputed coefficients (no reduction matmuls at all).
    w0 = vec[0:1, :]                         # (1, H) first-layer weight (input_size == 1)
    b0 = vec[1:2, :]
    g0 = vec[2:3, :]
    be0 = vec[3:4, :]
    mw = vec[13:14, :]                       # mean(w0)        (broadcast across lanes)
    mb = vec[14:15, :]                       # mean(b0)
    c2 = vec[15:16, :]                       # mean(w0^2)
    c1 = vec[16:17, :]                       # 2*mean(w0*b0)
    c0 = vec[17:18, :]                       # mean(b0^2)

    h = x * w0 + b0                          # exact K=1 matmul as a broadcast multiply
    mean = x * mw + mb                       # (bm, H): every lane holds the row mean
    msq = (x * x) * c2 + x * c1 + c0         # E[h^2] per row
    var = jnp.maximum(msq - mean * mean, 0.0)
    h = (h - mean) * jax.lax.rsqrt(var + LN_EPS) * g0 + be0
    r = jnp.maximum(h, 0.0)
    h = r * r * r                            # relu**3 as two VALU multiplies (EUP free)

    # ---- layers 1..3: Linear(H -> H) + LayerNorm + relu^3 ---------------------------
    for li in range(1, N_HIDDEN):
        base = 1 + 3 * li
        b = vec[base + 0:base + 1, :]        # (1, H) bias
        g = vec[base + 1:base + 2, :]        # (1, H) LayerNorm gamma
        be = vec[base + 2:base + 3, :]       # (1, H) LayerNorm beta

        h = jnp.dot(h, whid_ref[li - 1], preferred_element_type=f32) + b
        # Two independent reduction matmuls (both depend only on h) keep the MXU fed
        # back-to-back; 1/H is folded into `red`, so results arrive as row means,
        # pre-broadcast across lanes (no XLU reduce / sublane broadcast needed).
        mean = jnp.dot(h, red, preferred_element_type=f32)
        msq = jnp.dot(h * h, red, preferred_element_type=f32)
        var = jnp.maximum(msq - mean * mean, 0.0)   # guard f32 cancellation before rsqrt
        h = (h - mean) * jax.lax.rsqrt(var + LN_EPS) * g + be
        r = jnp.maximum(h, 0.0)
        h = r * r * r

    # Final projection into a 128-lane padded slab (unmasked, lane-dense store).
    out = jnp.dot(h, wlast_ref[...], preferred_element_type=f32) + blast_ref[...]
    out_ref[...] = out.astype(out_ref.dtype)


# ----------------------------------------------------------------------------- wrapper
def _choose_bm(B, max_bm=256):
    """Single grid step for small batches (per-step overhead dominates on 1-TC
    v5e/v6e); 128-row tiles for large batches so the fully-unrolled body stays
    within the 64-vreg file and a multi-step 'parallel' grid feeds both v7x TCs."""
    b_pad = ((B + 7) // 8) * 8
    if b_pad <= max_bm:
        return b_pad
    return 128


@functools.partial(jax.jit, static_argnames=("bm",))
def mlp_forward(x, packed_params, bm=None):
    vec, red, w_hid, w_last, b_last = packed_params
    B = x.shape[0]
    if bm is None:
        bm = _choose_bm(B)
    grid_m = -(-B // bm)
    b_pad = grid_m * bm
    if b_pad != B:
        x = jnp.pad(x, ((0, b_pad - B), (0, 0)))

    out = pl.pallas_call(
        mlp_kernel,
        out_shape=jax.ShapeDtypeStruct((b_pad, OUT_PAD), jnp.float32),
        grid_spec=pltpu.PrefetchScalarGridSpec(
            num_scalar_prefetch=0,
            grid=(grid_m,),
            in_specs=[
                pl.BlockSpec((bm, INPUT), lambda i: (i, 0)),
                pl.BlockSpec(vec.shape, lambda i: (0, 0)),        # (18, H) row slab
                pl.BlockSpec(red.shape, lambda i: (0, 0)),        # (H, H) ones/H matrix
                pl.BlockSpec(w_hid.shape, lambda i: (0, 0, 0)),   # (3, H, H) weights
                pl.BlockSpec(w_last.shape, lambda i: (0, 0)),     # (H, 128) padded
                pl.BlockSpec(b_last.shape, lambda i: (0, 0)),     # (1, 128) padded
            ],
            out_specs=pl.BlockSpec((bm, OUT_PAD), lambda i: (i, 0)),
        ),
        compiler_params=pltpu.CompilerParams(
            dimension_semantics=("parallel",),
            vmem_limit_bytes=32 * 1024 * 1024,   # explicit budget (v7x-safe headroom)
        ),
    )(x, vec, red, w_hid, w_last, b_last)
    return out[:B, :OUTPUT]


# ----------------------------------------------------------------------------- params
def init_params(key):
    """Deterministic synthetic parameters matching the PyTorch module's shapes.
    Linear weights stored transposed as (in, out); biases / gamma / beta as (1, H)."""
    params = []
    dims = [INPUT] + [HIDDEN] * (NUM_LAYERS - 1) + [OUTPUT]
    keys = jax.random.split(key, 4 * NUM_LAYERS)
    ki = 0
    for li in range(NUM_LAYERS):
        fan_in, fan_out = dims[li], dims[li + 1]
        scale = 1.0 / jnp.sqrt(jnp.float32(fan_in))
        w = jax.random.uniform(keys[ki], (fan_in, fan_out), jnp.float32, -scale, scale); ki += 1
        b = jax.random.uniform(keys[ki], (1, fan_out), jnp.float32, -scale, scale); ki += 1
        params.extend([w, b])
        if li < NUM_LAYERS - 1:
            g = 1.0 + 0.1 * jax.random.normal(keys[ki], (1, fan_out), jnp.float32); ki += 1
            be = 0.1 * jax.random.normal(keys[ki], (1, fan_out), jnp.float32); ki += 1
            params.extend([g, be])
    return params


def pack_params(params):
    """Pack the 19 PyTorch-shaped arrays into 5 lane-friendly slabs for the kernel."""
    w0 = params[0].reshape(1, HIDDEN)
    b0 = params[1].reshape(1, HIDDEN)
    rows = [w0]                                                  # row 0: first-layer weight
    for li in range(N_HIDDEN):
        b, g, be = params[4 * li + 1], params[4 * li + 2], params[4 * li + 3]
        rows.extend([b.reshape(1, HIDDEN), g.reshape(1, HIDDEN), be.reshape(1, HIDDEN)])
    # Layer-0 closed-form LayerNorm coefficients (pre-LN activation is affine in x).
    rows.append(jnp.full((1, HIDDEN), jnp.mean(w0), jnp.float32))          # mean(w0)
    rows.append(jnp.full((1, HIDDEN), jnp.mean(b0), jnp.float32))          # mean(b0)
    rows.append(jnp.full((1, HIDDEN), jnp.mean(w0 * w0), jnp.float32))     # mean(w0^2)
    rows.append(jnp.full((1, HIDDEN), 2.0 * jnp.mean(w0 * b0), jnp.float32))  # 2*mean(w0*b0)
    rows.append(jnp.full((1, HIDDEN), jnp.mean(b0 * b0), jnp.float32))     # mean(b0^2)
    vec = jnp.concatenate(rows, axis=0)                          # (18, H)

    # Reduction matrix with 1/H pre-folded (hoisted out of the kernel body).
    red = jnp.full((HIDDEN, HIDDEN), 1.0 / HIDDEN, jnp.float32)

    w_hid = jnp.stack([params[4 * li] for li in range(1, N_HIDDEN)], axis=0)  # (3, H, H)
    w_last = params[4 * N_HIDDEN]                                # (H, OUTPUT)
    b_last = params[4 * N_HIDDEN + 1]                            # (1, OUTPUT)
    # Zero-padded columns -> matmul/add unaffected; padded lanes sliced off in wrapper.
    w_last_pad = jnp.zeros((HIDDEN, OUT_PAD), jnp.float32).at[:, :OUTPUT].set(w_last)
    b_last_pad = jnp.zeros((1, OUT_PAD), jnp.float32).at[:, :OUTPUT].set(b_last)
    return vec, red, w_hid, w_last_pad, b_last_pad


# ----------------------------------------------------------------------------- reference
def _layernorm_ref(h, gamma, beta):
    mean = jnp.mean(h, axis=-1, keepdims=True)
    var = jnp.mean((h - mean) ** 2, axis=-1, keepdims=True)
    return (h - mean) * jax.lax.rsqrt(var + LN_EPS) * gamma + beta


def mlp_reference(x, params):
    """Pure-JAX reference mirroring the PyTorch forward exactly."""
    h = x
    for li in range(N_HIDDEN):
        w, b, g, be = params[4 * li: 4 * li + 4]
        h = h @ w + b
        h = _layernorm_ref(h, g, be)
        h = jnp.maximum(h, 0.0) ** 3
    w, b = params[4 * N_HIDDEN: 4 * N_HIDDEN + 2]
    return h @ w + b


if __name__ == "__main__":
    key = jax.random.PRNGKey(0)
    k_x, k_p = jax.random.split(key)

    params = init_params(k_p)
    packed = pack_params(params)

    # Main check: B=256 -> bm=256, single grid step (best for 1-TC v5e/v6e).
    B = 256
    x = jax.random.normal(k_x, (B, INPUT), jnp.float32)
    out = mlp_forward(x, packed)
    jax.block_until_ready(out)
    ref = mlp_reference(x, params)
    assert out.shape == (B, OUTPUT)
    assert jnp.allclose(out, ref, atol=1e-3, rtol=1e-3), "mismatch vs reference (B=256)"

    # Ragged-batch check: B=10 exercises the batch-padding path (bm=16, grid=1).
    x2 = jax.random.normal(jax.random.PRNGKey(1), (10, INPUT), jnp.float32)
    out2 = mlp_forward(x2, packed)
    jax.block_until_ready(out2)
    ref2 = mlp_reference(x2, params)
    assert out2.shape == (10, OUTPUT)
    assert jnp.allclose(out2, ref2, atol=1e-3, rtol=1e-3), "mismatch vs reference (B=10)"

    # Large-batch / multi-step check: B=520 -> bm=128, 5-step parallel grid.
    x3 = jax.random.normal(jax.random.PRNGKey(2), (520, INPUT), jnp.float32)
    out3 = mlp_forward(x3, packed)
    jax.block_until_ready(out3)
    ref3 = mlp_reference(x3, params)
    assert out3.shape == (520, OUTPUT)
    assert jnp.allclose(out3, ref3, atol=1e-3, rtol=1e-3), "mismatch vs reference (B=520)"

    print("KERNEL_OK")
</pallas_src>

<mosaic_0001>
module attributes {stable_mosaic.version = 11 : i64} {
  func.func @mlp_kernel(%arg0: i32, %arg1: memref<256x1xf32, #tpu.memory_space<vmem>>, %arg2: memref<18x50xf32, #tpu.memory_space<vmem>>, %arg3: memref<50x50xf32, #tpu.memory_space<vmem>>, %arg4: memref<3x50x50xf32, #tpu.memory_space<vmem>>, %arg5: memref<50x128xf32, #tpu.memory_space<vmem>>, %arg6: memref<1x128xf32, #tpu.memory_space<vmem>>, %arg7: memref<256x128xf32, #tpu.memory_space<vmem>>) attributes {dimension_semantics = [#tpu.dimension_semantics<parallel>], iteration_bounds = array<i64: 1>, scalar_prefetch = 0 : i64, scratch_operands = 0 : i64, tpu.core_type = #tpu.core_type<tc>, window_params = [{transform_indices = @transform_0, window_bounds = array<i64: 256, 1>}, {pipeline_mode = #tpu.pipeline_mode<synchronous>, transform_indices = @transform_1, window_bounds = array<i64: 18, 50>}, {pipeline_mode = #tpu.pipeline_mode<synchronous>, transform_indices = @transform_2, window_bounds = array<i64: 50, 50>}, {pipeline_mode = #tpu.pipeline_mode<synchronous>, transform_indices = @transform_3, window_bounds = array<i64: 3, 50, 50>}, {pipeline_mode = #tpu.pipeline_mode<synchronous>, transform_indices = @transform_4, window_bounds = array<i64: 50, 128>}, {pipeline_mode = #tpu.pipeline_mode<synchronous>, transform_indices = @transform_5, window_bounds = array<i64: 1, 128>}, {transform_indices = @transform_6, window_bounds = array<i64: 256, 128>}]} {
    %c0 = arith.constant 0 : index
    %c0_0 = arith.constant 0 : index
    %0 = vector.load %arg2[%c0, %c0_0] : memref<18x50xf32, #tpu.memory_space<vmem>>, vector<18x50xf32>
    %c0_1 = arith.constant 0 : index
    %c0_2 = arith.constant 0 : index
    %1 = vector.load %arg3[%c0_1, %c0_2] : memref<50x50xf32, #tpu.memory_space<vmem>>, vector<50x50xf32>
    %c0_3 = arith.constant 0 : index
    %c0_4 = arith.constant 0 : index
    %2 = vector.load %arg1[%c0_3, %c0_4] : memref<256x1xf32, #tpu.memory_space<vmem>>, vector<256x1xf32>
    %3 = vector.extract_strided_slice %0 {offsets = [0, 0], sizes = [1, 50], strides = [1, 1]} : vector<18x50xf32> to vector<1x50xf32>
    %4 = vector.extract_strided_slice %0 {offsets = [1, 0], sizes = [1, 50], strides = [1, 1]} : vector<18x50xf32> to vector<1x50xf32>
    %5 = vector.extract_strided_slice %0 {offsets = [2, 0], sizes = [1, 50], strides = [1, 1]} : vector<18x50xf32> to vector<1x50xf32>
    %6 = vector.extract_strided_slice %0 {offsets = [3, 0], sizes = [1, 50], strides = [1, 1]} : vector<18x50xf32> to vector<1x50xf32>
    %7 = vector.extract_strided_slice %0 {offsets = [13, 0], sizes = [1, 50], strides = [1, 1]} : vector<18x50xf32> to vector<1x50xf32>
    %8 = vector.extract_strided_slice %0 {offsets = [14, 0], sizes = [1, 50], strides = [1, 1]} : vector<18x50xf32> to vector<1x50xf32>
    %9 = vector.extract_strided_slice %0 {offsets = [15, 0], sizes = [1, 50], strides = [1, 1]} : vector<18x50xf32> to vector<1x50xf32>
    %10 = vector.extract_strided_slice %0 {offsets = [16, 0], sizes = [1, 50], strides = [1, 1]} : vector<18x50xf32> to vector<1x50xf32>
    %11 = vector.extract_strided_slice %0 {offsets = [17, 0], sizes = [1, 50], strides = [1, 1]} : vector<18x50xf32> to vector<1x50xf32>
    %12 = vector.broadcast %2 : vector<256x1xf32> to vector<256x50xf32>
    %13 = vector.broadcast %3 : vector<1x50xf32> to vector<256x50xf32>
    %14 = arith.mulf %12, %13 : vector<256x50xf32>
    %15 = vector.broadcast %4 : vector<1x50xf32> to vector<256x50xf32>
    %16 = arith.addf %14, %15 : vector<256x50xf32>
    %17 = vector.broadcast %2 : vector<256x1xf32> to vector<256x50xf32>
    %18 = vector.broadcast %7 : vector<1x50xf32> to vector<256x50xf32>
    %19 = arith.mulf %17, %18 : vector<256x50xf32>
    %20 = vector.broadcast %8 : vector<1x50xf32> to vector<256x50xf32>
    %21 = arith.addf %19, %20 : vector<256x50xf32>
    %22 = arith.mulf %2, %2 : vector<256x1xf32>
    %23 = vector.broadcast %22 : vector<256x1xf32> to vector<256x50xf32>
    %24 = vector.broadcast %9 : vector<1x50xf32> to vector<256x50xf32>
    %25 = arith.mulf %23, %24 : vector<256x50xf32>
    %26 = vector.broadcast %2 : vector<256x1xf32> to vector<256x50xf32>
    %27 = vector.broadcast %10 : vector<1x50xf32> to vector<256x50xf32>
    %28 = arith.mulf %26, %27 : vector<256x50xf32>
    %29 = arith.addf %25, %28 : vector<256x50xf32>
    %30 = vector.broadcast %11 : vector<1x50xf32> to vector<256x50xf32>
    %31 = arith.addf %29, %30 : vector<256x50xf32>
    %32 = arith.mulf %21, %21 : vector<256x50xf32>
    %33 = arith.subf %31, %32 : vector<256x50xf32>
    %cst = arith.constant 0.000000e+00 : f32
    %34 = vector.broadcast %cst : f32 to vector<256x50xf32>
    %35 = arith.maximumf %33, %34 : vector<256x50xf32>
    %36 = arith.subf %16, %21 : vector<256x50xf32>
    %cst_5 = arith.constant 9.99999974E-6 : f32
    %37 = vector.broadcast %cst_5 : f32 to vector<256x50xf32>
    %38 = arith.addf %35, %37 : vector<256x50xf32>
    %39 = math.rsqrt %38 : vector<256x50xf32>
    %40 = arith.mulf %36, %39 : vector<256x50xf32>
    %41 = vector.broadcast %5 : vector<1x50xf32> to vector<256x50xf32>
    %42 = arith.mulf %40, %41 : vector<256x50xf32>
    %43 = vector.broadcast %6 : vector<1x50xf32> to vector<256x50xf32>
    %44 = arith.addf %42, %43 : vector<256x50xf32>
    %cst_6 = arith.constant 0.000000e+00 : f32
    %45 = vector.broadcast %cst_6 : f32 to vector<256x50xf32>
    %46 = arith.maximumf %44, %45 : vector<256x50xf32>
    %47 = arith.mulf %46, %46 : vector<256x50xf32>
    %48 = arith.mulf %47, %46 : vector<256x50xf32>
    %49 = vector.extract_strided_slice %0 {offsets = [4, 0], sizes = [1, 50], strides = [1, 1]} : vector<18x50xf32> to vector<1x50xf32>
    %50 = vector.extract_strided_slice %0 {offsets = [5, 0], sizes = [1, 50], strides = [1, 1]} : vector<18x50xf32> to vector<1x50xf32>
    %51 = vector.extract_strided_slice %0 {offsets = [6, 0], sizes = [1, 50], strides = [1, 1]} : vector<18x50xf32> to vector<1x50xf32>
    %c0_7 = arith.constant 0 : index
    %c0_8 = arith.constant 0 : index
    %c0_9 = arith.constant 0 : index
    %52 = vector.load %arg4[%c0_7, %c0_8, %c0_9] : memref<3x50x50xf32, #tpu.memory_space<vmem>>, vector<1x50x50xf32>
    %53 = vector.shape_cast %52 : vector<1x50x50xf32> to vector<50x50xf32>
    %cst_10 = arith.constant dense<0.000000e+00> : vector<256x50xf32>
    %54 = tpu.matmul %48, %53, %cst_10 {dimension_numbers = #tpu.dot_dimension_numbers<[1], [0], [0], [1], [0, 0, 1, 1], [], []>} : vector<256x50xf32>, vector<50x50xf32>, vector<256x50xf32> -> vector<256x50xf32>
    %55 = vector.broadcast %49 : vector<1x50xf32> to vector<256x50xf32>
    %56 = arith.addf %54, %55 : vector<256x50xf32>
    %cst_11 = arith.constant dense<0.000000e+00> : vector<256x50xf32>
    %57 = tpu.matmul %56, %1, %cst_11 {dimension_numbers = #tpu.dot_dimension_numbers<[1], [0], [0], [1], [0, 0, 1, 1], [], []>} : vector<256x50xf32>, vector<50x50xf32>, vector<256x50xf32> -> vector<256x50xf32>
    %58 = arith.mulf %56, %56 : vector<256x50xf32>
    %cst_12 = arith.constant dense<0.000000e+00> : vector<256x50xf32>
    %59 = tpu.matmul %58, %1, %cst_12 {dimension_numbers = #tpu.dot_dimension_numbers<[1], [0], [0], [1], [0, 0, 1, 1], [], []>} : vector<256x50xf32>, vector<50x50xf32>, vector<256x50xf32> -> vector<256x50xf32>
    %60 = arith.mulf %57, %57 : vector<256x50xf32>
    %61 = arith.subf %59, %60 : vector<256x50xf32>
    %cst_13 = arith.constant 0.000000e+00 : f32
    %62 = vector.broadcast %cst_13 : f32 to vector<256x50xf32>
    %63 = arith.maximumf %61, %62 : vector<256x50xf32>
    %64 = arith.subf %56, %57 : vector<256x50xf32>
    %cst_14 = arith.constant 9.99999974E-6 : f32
    %65 = vector.broadcast %cst_14 : f32 to vector<256x50xf32>
    %66 = arith.addf %63, %65 : vector<256x50xf32>
    %67 = math.rsqrt %66 : vector<256x50xf32>
    %68 = arith.mulf %64, %67 : vector<256x50xf32>
    %69 = vector.broadcast %50 : vector<1x50xf32> to vector<256x50xf32>
    %70 = arith.mulf %68, %69 : vector<256x50xf32>
    %71 = vector.broadcast %51 : vector<1x50xf32> to vector<256x50xf32>
    %72 = arith.addf %70, %71 : vector<256x50xf32>
    %cst_15 = arith.constant 0.000000e+00 : f32
    %73 = vector.broadcast %cst_15 : f32 to vector<256x50xf32>
    %74 = arith.maximumf %72, %73 : vector<256x50xf32>
    %75 = arith.mulf %74, %74 : vector<256x50xf32>
    %76 = arith.mulf %75, %74 : vector<256x50xf32>
    %77 = vector.extract_strided_slice %0 {offsets = [7, 0], sizes = [1, 50], strides = [1, 1]} : vector<18x50xf32> to vector<1x50xf32>
    %78 = vector.extract_strided_slice %0 {offsets = [8, 0], sizes = [1, 50], strides = [1, 1]} : vector<18x50xf32> to vector<1x50xf32>
    %79 = vector.extract_strided_slice %0 {offsets = [9, 0], sizes = [1, 50], strides = [1, 1]} : vector<18x50xf32> to vector<1x50xf32>
    %c1 = arith.constant 1 : index
    %c0_16 = arith.constant 0 : index
    %c0_17 = arith.constant 0 : index
    %80 = vector.load %arg4[%c1, %c0_16, %c0_17] : memref<3x50x50xf32, #tpu.memory_space<vmem>>, vector<1x50x50xf32>
    %81 = vector.shape_cast %80 : vector<1x50x50xf32> to vector<50x50xf32>
    %cst_18 = arith.constant dense<0.000000e+00> : vector<256x50xf32>
    %82 = tpu.matmul %76, %81, %cst_18 {dimension_numbers = #tpu.dot_dimension_numbers<[1], [0], [0], [1], [0, 0, 1, 1], [], []>} : vector<256x50xf32>, vector<50x50xf32>, vector<256x50xf32> -> vector<256x50xf32>
    %83 = vector.broadcast %77 : vector<1x50xf32> to vector<256x50xf32>
    %84 = arith.addf %82, %83 : vector<256x50xf32>
    %cst_19 = arith.constant dense<0.000000e+00> : vector<256x50xf32>
    %85 = tpu.matmul %84, %1, %cst_19 {dimension_numbers = #tpu.dot_dimension_numbers<[1], [0], [0], [1], [0, 0, 1, 1], [], []>} : vector<256x50xf32>, vector<50x50xf32>, vector<256x50xf32> -> vector<256x50xf32>
    %86 = arith.mulf %84, %84 : vector<256x50xf32>
    %cst_20 = arith.constant dense<0.000000e+00> : vector<256x50xf32>
    %87 = tpu.matmul %86, %1, %cst_20 {dimension_numbers = #tpu.dot_dimension_numbers<[1], [0], [0], [1], [0, 0, 1, 1], [], []>} : vector<256x50xf32>, vector<50x50xf32>, vector<256x50xf32> -> vector<256x50xf32>
    %88 = arith.mulf %85, %85 : vector<256x50xf32>
    %89 = arith.subf %87, %88 : vector<256x50xf32>
    %cst_21 = arith.constant 0.000000e+00 : f32
    %90 = vector.broadcast %cst_21 : f32 to vector<256x50xf32>
    %91 = arith.maximumf %89, %90 : vector<256x50xf32>
    %92 = arith.subf %84, %85 : vector<256x50xf32>
    %cst_22 = arith.constant 9.99999974E-6 : f32
    %93 = vector.broadcast %cst_22 : f32 to vector<256x50xf32>
    %94 = arith.addf %91, %93 : vector<256x50xf32>
    %95 = math.rsqrt %94 : vector<256x50xf32>
    %96 = arith.mulf %92, %95 : vector<256x50xf32>
    %97 = vector.broadcast %78 : vector<1x50xf32> to vector<256x50xf32>
    %98 = arith.mulf %96, %97 : vector<256x50xf32>
    %99 = vector.broadcast %79 : vector<1x50xf32> to vector<256x50xf32>
    %100 = arith.addf %98, %99 : vector<256x50xf32>
    %cst_23 = arith.constant 0.000000e+00 : f32
    %101 = vector.broadcast %cst_23 : f32 to vector<256x50xf32>
    %102 = arith.maximumf %100, %101 : vector<256x50xf32>
    %103 = arith.mulf %102, %102 : vector<256x50xf32>
    %104 = arith.mulf %103, %102 : vector<256x50xf32>
    %105 = vector.extract_strided_slice %0 {offsets = [10, 0], sizes = [1, 50], strides = [1, 1]} : vector<18x50xf32> to vector<1x50xf32>
    %106 = vector.extract_strided_slice %0 {offsets = [11, 0], sizes = [1, 50], strides = [1, 1]} : vector<18x50xf32> to vector<1x50xf32>
    %107 = vector.extract_strided_slice %0 {offsets = [12, 0], sizes = [1, 50], strides = [1, 1]} : vector<18x50xf32> to vector<1x50xf32>
    %c2 = arith.constant 2 : index
    %c0_24 = arith.constant 0 : index
    %c0_25 = arith.constant 0 : index
    %108 = vector.load %arg4[%c2, %c0_24, %c0_25] : memref<3x50x50xf32, #tpu.memory_space<vmem>>, vector<1x50x50xf32>
    %109 = vector.shape_cast %108 : vector<1x50x50xf32> to vector<50x50xf32>
    %cst_26 = arith.constant dense<0.000000e+00> : vector<256x50xf32>
    %110 = tpu.matmul %104, %109, %cst_26 {dimension_numbers = #tpu.dot_dimension_numbers<[1], [0], [0], [1], [0, 0, 1, 1], [], []>} : vector<256x50xf32>, vector<50x50xf32>, vector<256x50xf32> -> vector<256x50xf32>
    %111 = vector.broadcast %105 : vector<1x50xf32> to vector<256x50xf32>
    %112 = arith.addf %110, %111 : vector<256x50xf32>
    %cst_27 = arith.constant dense<0.000000e+00> : vector<256x50xf32>
    %113 = tpu.matmul %112, %1, %cst_27 {dimension_numbers = #tpu.dot_dimension_numbers<[1], [0], [0], [1], [0, 0, 1, 1], [], []>} : vector<256x50xf32>, vector<50x50xf32>, vector<256x50xf32> -> vector<256x50xf32>
    %114 = arith.mulf %112, %112 : vector<256x50xf32>
    %cst_28 = arith.constant dense<0.000000e+00> : vector<256x50xf32>
    %115 = tpu.matmul %114, %1, %cst_28 {dimension_numbers = #tpu.dot_dimension_numbers<[1], [0], [0], [1], [0, 0, 1, 1], [], []>} : vector<256x50xf32>, vector<50x50xf32>, vector<256x50xf32> -> vector<256x50xf32>
    %116 = arith.mulf %113, %113 : vector<256x50xf32>
    %117 = arith.subf %115, %116 : vector<256x50xf32>
    %cst_29 = arith.constant 0.000000e+00 : f32
    %118 = vector.broadcast %cst_29 : f32 to vector<256x50xf32>
    %119 = arith.maximumf %117, %118 : vector<256x50xf32>
    %120 = arith.subf %112, %113 : vector<256x50xf32>
    %cst_30 = arith.constant 9.99999974E-6 : f32
    %121 = vector.broadcast %cst_30 : f32 to vector<256x50xf32>
    %122 = arith.addf %119, %121 : vector<256x50xf32>
    %123 = math.rsqrt %122 : vector<256x50xf32>
    %124 = arith.mulf %120, %123 : vector<256x50xf32>
    %125 = vector.broadcast %106 : vector<1x50xf32> to vector<256x50xf32>
    %126 = arith.mulf %124, %125 : vector<256x50xf32>
    %127 = vector.broadcast %107 : vector<1x50xf32> to vector<256x50xf32>
    %128 = arith.addf %126, %127 : vector<256x50xf32>
    %cst_31 = arith.constant 0.000000e+00 : f32
    %129 = vector.broadcast %cst_31 : f32 to vector<256x50xf32>
    %130 = arith.maximumf %128, %129 : vector<256x50xf32>
    %131 = arith.mulf %130, %130 : vector<256x50xf32>
    %132 = arith.mulf %131, %130 : vector<256x50xf32>
    %c0_32 = arith.constant 0 : index
    %c0_33 = arith.constant 0 : index
    %133 = vector.load %arg5[%c0_32, %c0_33] : memref<50x128xf32, #tpu.memory_space<vmem>>, vector<50x128xf32>
    %cst_34 = arith.constant dense<0.000000e+00> : vector<256x128xf32>
    %134 = tpu.matmul %132, %133, %cst_34 {dimension_numbers = #tpu.dot_dimension_numbers<[1], [0], [0], [1], [0, 0, 1, 1], [], []>} : vector<256x50xf32>, vector<50x128xf32>, vector<256x128xf32> -> vector<256x128xf32>
    %c0_35 = arith.constant 0 : index
    %c0_36 = arith.constant 0 : index
    %135 = vector.load %arg6[%c0_35, %c0_36] : memref<1x128xf32, #tpu.memory_space<vmem>>, vector<1x128xf32>
    %136 = vector.broadcast %135 : vector<1x128xf32> to vector<256x128xf32>
    %137 = arith.addf %134, %136 : vector<256x128xf32>
    %c0_37 = arith.constant 0 : index
    %c0_38 = arith.constant 0 : index
    %138 = vector.load %arg7[%c0_37, %c0_38] : memref<256x128xf32, #tpu.memory_space<vmem>>, vector<256x128xf32>
    tpu.vector_store %arg7[%c0_37, %c0_38], %137 {strides = array<i32>} : memref<256x128xf32, #tpu.memory_space<vmem>>, vector<256x128xf32>,
    return
  }
  func.func @transform_0(%arg0: i32) -> (i32, i32) {
    %c0_i32 = arith.constant 0 : i32
    %c0_i32_0 = arith.constant 0 : i32
    return %arg0, %c0_i32 : i32, i32
  }
  func.func @transform_1(%arg0: i32) -> (i32, i32) {
    %c0_i32 = arith.constant 0 : i32
    %c0_i32_0 = arith.constant 0 : i32
    %c0_i32_1 = arith.constant 0 : i32
    return %c0_i32, %c0_i32_0 : i32, i32
  }
  func.func @transform_2(%arg0: i32) -> (i32, i32) {
    %c0_i32 = arith.constant 0 : i32
    %c0_i32_0 = arith.constant 0 : i32
    %c0_i32_1 = arith.constant 0 : i32
    return %c0_i32, %c0_i32_0 : i32, i32
  }
  func.func @transform_3(%arg0: i32) -> (i32, i32, i32) {
    %c0_i32 = arith.constant 0 : i32
    %c0_i32_0 = arith.constant 0 : i32
    %c0_i32_1 = arith.constant 0 : i32
    %c0_i32_2 = arith.constant 0 : i32
    return %c0_i32, %c0_i32_0, %c0_i32_1 : i32, i32, i32
  }
  func.func @transform_4(%arg0: i32) -> (i32, i32) {
    %c0_i32 = arith.constant 0 : i32
    %c0_i32_0 = arith.constant 0 : i32
    %c0_i32_1 = arith.constant 0 : i32
    return %c0_i32, %c0_i32_0 : i32, i32
  }
  func.func @transform_5(%arg0: i32) -> (i32, i32) {
    %c0_i32 = arith.constant 0 : i32
    %c0_i32_0 = arith.constant 0 : i32
    %c0_i32_1 = arith.constant 0 : i32
    return %c0_i32, %c0_i32_0 : i32, i32
  }
  func.func @transform_6(%arg0: i32) -> (i32, i32) {
    %c0_i32 = arith.constant 0 : i32
    %c0_i32_0 = arith.constant 0 : i32
    return %arg0, %c0_i32 : i32, i32
  }
}

</mosaic_0001>

<bundles_post_ra>
// kernel: mlp_forward.1
= control target key start
LH: loop header
LB: loop body
LE: loop exit
PB: predicated region body
PF: predicated region fallthrough
CT: control target
= control target key end

     0   :  { %11 = vsyncpa [#allocation3], 0  ;;  %s7458_s21 = smov [#allocation2]   ;;  %s10297_s0 = inlined_call_operand.vmem [shape: f32[256,1], index: 0, kind: input, shape index: {}]   ;;  %s10298_s1 = inlined_call_operand.vmem [shape: f32[18,50], index: 1, kind: input, shape index: {}]   ;;  %s10299_s2 = inlined_call_operand.vmem [shape: f32[50,50], index: 2, kind: input, shape index: {}]   ;;  %s10300_s3 = inlined_call_operand.vmem [shape: f32[3,50,50], index: 3, kind: input, shape index: {}]   ;;  %s10301_s4 = inlined_call_operand.hbm [shape: f32[50,128], index: 4, kind: input, shape index: {}]   ;;  %s10302_s5 = inlined_call_operand.vmem [shape: f32[1,128], index: 5, kind: input, shape index: {}]   ;;  %s10303_s6 = inlined_call_operand.vmem [shape: f32[256,128], index: 6, kind: output, shape index: {}]  }
   0x1   :  { %s25_s22 = sshll.u32 %s7458_s21, 4  ;;  %s7434_s25 = scalar_lea.hbm %s10301_s4, 896  ;;  %s26_s22 = int_to_ptr.vmem [resolvable:$true] %s25_s22 }
   0x2   :  { %p7435_p0 = scmp.ne.s32.totalorder %s10301_s4, %s7434_s25  ;;  %p7438_p1 = scmp.lt.u32.totalorder %s7434_s25, %s10301_s4 }
   0x4   :  { %p7440_p2 = pnand %p7438_p1, %p7435_p0 }
   0x6   :  { %7443 = shalt.err (!%p7440_p2)
}
   0x7   :  { %s7444_s30 = scalar_lea.vmem %s26_s22, 896  ;;  %p7449_p4 = scmp.lt.s32.totalorder %s26_s22, %s26_s22 }
   0x8   :  { %p7445_p3 = scmp.ne.s32.totalorder %s26_s22, %s7444_s30  ;;  %p7450_p5 = scmp.lt.s32.totalorder %s7444_s30, %s7444_s30 }
   0xa   :  { %p7451_p6 = por %p7450_p5, %p7449_p4 }
   0xc   :  { %p7452_p7 = pnand %p7451_p6, %p7445_p3 }
   0xe   :  { %7455 = shalt.err (!%p7452_p7)
}
   0xf   :  { %s7459_s7 = smov 128   ;;  %s7460_s8 = smov 8  }
  0x10   :  { %31 = dma.hbm_to_vmem [thread:$0]  %s10301_s4, 896, %s26_s22, [#allocation3], %s7459_s7, %s7459_s7, %s7460_s8  }
  0x11   :  { %7456 = dma.done.wait [#allocation3], 896  }
  0x12   :  { %7457 = vsyncadd [#allocation3], 4294966400  ;;  %v7461_v0 = vmov 0   ;;  %v48_v1 = vld [vmem:[%s10297_s0 + $0x8] sm:$0xff]  ;;  %v47_v2 = vld [vmem:[%s10297_s0] sm:$0xff]  ;;  %vm1215_vm0 = vcmask 1041408  }
  0x13   :  { %7172 = vset.pattern.permute.xlu1 %v7461_v0  ;;  %7171 = vset.pattern.permute.xlu0 %v7461_v0  ;;  %v384_v3 = vmul.f32 %v48_v1, %v48_v1  ;;  %v49_v4 = vld [vmem:[%s10297_s0 + $0x10] sm:$0xff]  ;;  %v383_v5 = vmul.f32 %v47_v2, %v47_v2  ;;  %v50_v7 = vld [vmem:[%s10297_s0 + $0x18] sm:$0xff]  ;;  %v51_v9 = vld [vmem:[%s10297_s0 + $0x20] sm:$0xff]  ;;  %vm1118_vm1 = vcmask 408576  }
  0x14   :  { %86 = vperm.xlu1 %7172, %v48_v1   ;;  %81 = vperm.xlu0 %7171, %v47_v2   ;;  %v385_v6 = vmul.f32 %v49_v4, %v49_v4  ;;  %v386_v8 = vmul.f32 %v50_v7, %v50_v7  ;;  %v387_v10 = vmul.f32 %v51_v9, %v51_v9  ;;  %v52_v11 = vld [vmem:[%s10297_s0 + $0x28] sm:$0xff]  ;;  %v53_v13 = vld [vmem:[%s10297_s0 + $0x30] sm:$0xff]  ;;  %v54_v15 = vld [vmem:[%s10297_s0 + $0x38] sm:$0xff] }
  0x15   :  { %v388_v12 = vmul.f32 %v52_v11, %v52_v11  ;;  %v389_v14 = vmul.f32 %v53_v13, %v53_v13  ;;  %v390_v16 = vmul.f32 %v54_v15, %v54_v15  ;;  %v55_v17 = vld [vmem:[%s10297_s0 + $0x40] sm:$0xff]  ;;  %v56_v19 = vld [vmem:[%s10297_s0 + $0x48] sm:$0xff]  ;;  %v57_v24 = vld [vmem:[%s10297_s0 + $0x50] sm:$0xff] }
  0x16   :  { %v391_v18 = vmul.f32 %v55_v17, %v55_v17  ;;  %v1107_v20 = vld [vmem:[%s10300_s3] sm:$0xff]  ;;  %v1108_v21 = vld [vmem:[%s10300_s3 + $0x8] sm:$0xff]  ;;  %v392_v23 = vmul.f32 %v56_v19, %v56_v19  ;;  %v1109_v25 = vld [vmem:[%s10300_s3 + $0x10] sm:$0xff]  ;;  %v393_v28 = vmul.f32 %v57_v24, %v57_v24 }
  0x17   :  { %v7047_v22 = vpack.c.bf16 %v1108_v21, %v1107_v20  ;;  %v1110_v26 = vld [vmem:[%s10300_s3 + $0x18] sm:$0xff]  ;;  %v1111_v30 = vld [vmem:[%s10300_s3 + $0x20] sm:$0xff]  ;;  %v1112_v31 = vld [vmem:[%s10300_s3 + $0x28] sm:$0xff] }
  0x18   :  { %422 = vperm.xlu1 %7172, %v384_v3   ;;  %91 = vperm.xlu0 %7171, %v49_v4   ;;  %v7051_v27 = vpack.c.bf16 %v1110_v26, %v1109_v25  ;;  %v58_v29 = vld [vmem:[%s10297_s0 + $0x58] sm:$0xff]  ;;  %v7055_v32 = vpack.c.bf16 %v1112_v31, %v1111_v30  ;;  %v59_v34 = vld [vmem:[%s10297_s0 + $0x60] sm:$0xff]  ;;  %v1113_v36 = vld [vmem:[%s10300_s3 + $0x30] sm:$0x3] }
  0x19   :  { %7048 = vmatprep.subr.bf16.mxu0 %v7047_v22  ;;  %v394_v33 = vmul.f32 %v58_v29, %v58_v29  ;;  %v395_v35 = vmul.f32 %v59_v34, %v59_v34  ;;  %v60_v37 = vld [vmem:[%s10297_s0 + $0x68] sm:$0xff]  ;;  %v61_v39 = vld [vmem:[%s10297_s0 + $0x70] sm:$0xff]  ;;  %v62_v41 = vld [vmem:[%s10297_s0 + $0x78] sm:$0xff] }
  0x1a   :  { %7050 = vmatpush3.bf16.msra.mxu0 %v7047_v22  ;;  %v396_v38 = vmul.f32 %v60_v37, %v60_v37  ;;  %v397_v40 = vmul.f32 %v61_v39, %v61_v39  ;;  %v398_v42 = vmul.f32 %v62_v41, %v62_v41  ;;  %v63_v43 = vld [vmem:[%s10297_s0 + $0x80] sm:$0xff]  ;;  %v64_v45 = vld [vmem:[%s10297_s0 + $0x88] sm:$0xff]  ;;  %v65_v47 = vld [vmem:[%s10297_s0 + $0x90] sm:$0xff] }
  0x1b   :  { %7052 = vmatprep.subr.bf16.mxu0 %v7051_v27  ;;  %v399_v44 = vmul.f32 %v63_v43, %v63_v43  ;;  %v400_v46 = vmul.f32 %v64_v45, %v64_v45  ;;  %v401_v48 = vmul.f32 %v65_v47, %v65_v47  ;;  %v66_v49 = vld [vmem:[%s10297_s0 + $0x98] sm:$0xff]  ;;  %v67_v51 = vld [vmem:[%s10297_s0 + $0xa0] sm:$0xff]  ;;  %v68_v53 = vld [vmem:[%s10297_s0 + $0xa8] sm:$0xff] }
  0x1c   :  { %427 = vperm.xlu1 %7172, %v385_v6   ;;  %417 = vperm.xlu0 %7171, %v383_v5   ;;  %v402_v50 = vmul.f32 %v66_v49, %v66_v49  ;;  %v403_v52 = vmul.f32 %v67_v51, %v67_v51  ;;  %v404_v54 = vmul.f32 %v68_v53, %v68_v53  ;;  %v69_v55 = vld [vmem:[%s10297_s0 + $0xb0] sm:$0xff]  ;;  %v70_v57 = vld [vmem:[%s10297_s0 + $0xb8] sm:$0xff]  ;;  %v71_v59 = vld [vmem:[%s10297_s0 + $0xc0] sm:$0xff] }
  0x1d   :  { %v405_v56 = vmul.f32 %v69_v55, %v69_v55  ;;  %v406_v58 = vmul.f32 %v70_v57, %v70_v57  ;;  %v407_v60 = vmul.f32 %v71_v59, %v71_v59  ;;  %v72_v61 = vld [vmem:[%s10297_s0 + $0xc8] sm:$0xff]  ;;  %v73_v63 = vld [vmem:[%s10297_s0 + $0xd0] sm:$0xff]  ;;  %v74_v1 = vld [vmem:[%s10297_s0 + $0xd8] sm:$0xff] }
  0x1e   :  { %7054 = vmatpush3.bf16.msra.mxu0 %v7051_v27  ;;  %v408_v62 = vmul.f32 %v72_v61, %v72_v61  ;;  %v409_v0 = vmul.f32 %v73_v63, %v73_v63  ;;  %v410_v2 = vmul.f32 %v74_v1, %v74_v1  ;;  %v75_v3 = vld [vmem:[%s10297_s0 + $0xe0] sm:$0xff]  ;;  %v76_v5 = vld [vmem:[%s10297_s0 + $0xe8] sm:$0xff] }
  0x1f   :  { %7056 = vmatprep.subr.bf16.mxu0 %v7055_v32  ;;  %v411_v4 = vmul.f32 %v75_v3, %v75_v3  ;;  %v412_v6 = vmul.f32 %v76_v5, %v76_v5  ;;  %v7664_v27 = vld [vmem:[%s10298_s1] sm:$0xff] }
  0x20   :  { %432 = vperm.xlu1 %7172, %v386_v8   ;;  %96 = vperm.xlu0 %7171, %v50_v7   ;;  %v239_v7 = vlaneseq  ;;  %v77_v8 = vld [vmem:[%s10297_s0 + $0xf0] sm:$0xff] }
  0x22   :  { %7058 = vmatpush3.bf16.msra.mxu0 %v7055_v32 }
  0x23   :  { %6439 = vmatprep.subr.msk.mxu0 %vm1215_vm0, %v1113_v36 }
  0x24   :  { %437 = vperm.xlu1 %7172, %v387_v10   ;;  %101 = vperm.xlu0 %7171, %v51_v9   ;;  %v413_v9 = vmul.f32 %v77_v8, %v77_v8  ;;  %v7625_v10 = vshrl.u32 %v239_v7, 7 }
  0x26   :  { %6440 = vmatpush3.msk.msra.mxu0 %vm1215_vm0, %v1113_v36  ;;  %v7659_v26 = vsub.s32 1, %v7625_v10 }
  0x28   :  { %442 = vperm.xlu1 %7172, %v388_v12   ;;  %106 = vperm.xlu0 %7171, %v52_v11   ;;  %v78_v11 = vld [vmem:[%s10297_s0 + $0xf8] sm:$0xff] }
  0x29   :  { %v414_v12 = vmul.f32 %v78_v11, %v78_v11 }
  0x2c   :  { %447 = vperm.xlu1 %7172, %v389_v14   ;;  %111 = vperm.xlu0 %7171, %v53_v13   ;;  %v313_v13 = vsub.s32 5, %v7625_v10  ;;  %v38_v14 = vld [vmem:[%s10298_s1 + $0x8] sm:$0xff] }
  0x30   :  { %452 = vperm.xlu1 %7172, %v390_v16   ;;  %116 = vperm.xlu0 %7171, %v54_v15   ;;  %v10308_v15 = vsub.s32 6, %v7625_v10  ;;  %v7636_v16 = vsub.s32 0, %v7625_v10 }
  0x32   :  { %v7648_v21 = vrot.slane %v38_v14, %v10308_v15  ;;  %v7678_v36 = vrot.slane %v7664_v27, %v7636_v16 }
  0x34   :  { %457 = vperm.xlu1 %7172, %v391_v18   ;;  %121 = vperm.xlu0 %7171, %v55_v17   ;;  %v7640_v17 = vrot.slane %v38_v14, %v313_v13  ;;  %v10307_v18 = vsub.s32 7, %v7625_v10 }
  0x36   :  { %v7656_v25 = vrot.slane %v38_v14, %v10307_v18 }
  0x38   :  { %462 = vperm.xlu1 %7172, %v392_v23   ;;  %126 = vperm.xlu0 %7171, %v56_v19   ;;  %v39_v19 = vld [vmem:[%s10298_s1 + $0x10] sm:$0x3] }
  0x3c   :  { %467 = vperm.xlu1 %7172, %v393_v28   ;;  %131 = vperm.xlu0 %7171, %v57_v24   ;;  %v7652_v24 = vrot.slane %v39_v19, %v7636_v16 }
  0x40   :  { %472 = vperm.xlu1 %7172, %v394_v33   ;;  %136 = vperm.xlu0 %7171, %v58_v29  }
  0x44   :  { %477 = vperm.xlu1 %7172, %v395_v35   ;;  %141 = vperm.xlu0 %7171, %v59_v34   ;;  %v7673_v34 = vrot.slane %v39_v19, %v7659_v26 }
  0x48   :  { %482 = vperm.xlu1 %7172, %v396_v38   ;;  %146 = vperm.xlu0 %7171, %v60_v37  }
  0x4c   :  { %487 = vperm.xlu1 %7172, %v397_v40   ;;  %151 = vperm.xlu0 %7171, %v61_v39  }
  0x50   :  { %492 = vperm.xlu1 %7172, %v398_v42   ;;  %156 = vperm.xlu0 %7171, %v62_v41  }
  0x54   :  { %497 = vperm.xlu1 %7172, %v399_v44   ;;  %161 = vperm.xlu0 %7171, %v63_v43  }
  0x58   :  { %502 = vperm.xlu1 %7172, %v400_v46   ;;  %166 = vperm.xlu0 %7171, %v64_v45  }
  0x5c   :  { %507 = vperm.xlu1 %7172, %v401_v48   ;;  %171 = vperm.xlu0 %7171, %v65_v47  }
  0x60   :  { %512 = vperm.xlu1 %7172, %v402_v50   ;;  %176 = vperm.xlu0 %7171, %v66_v49  }
  0x64   :  { %517 = vperm.xlu1 %7172, %v403_v52   ;;  %181 = vperm.xlu0 %7171, %v67_v51   ;;  %v7696_v52 = vrot.slane %v7664_v27, %v7659_v26 }
  0x68   :  { %522 = vperm.xlu1 %7172, %v404_v54   ;;  %186 = vperm.xlu0 %7171, %v68_v53  }
  0x6c   :  { %527 = vperm.xlu1 %7172, %v405_v56   ;;  %191 = vperm.xlu0 %7171, %v69_v55  }
  0x70   :  { %532 = vperm.xlu1 %7172, %v406_v58   ;;  %196 = vperm.xlu0 %7171, %v70_v57  }
  0x74   :  { %537 = vperm.xlu1 %7172, %v407_v60   ;;  %201 = vperm.xlu0 %7171, %v71_v59  }
  0x78   :  { %542 = vperm.xlu1 %7172, %v408_v62   ;;  %206 = vperm.xlu0 %7171, %v72_v61   ;;  %v10306_v61 = vsub.s32 2, %v7625_v10 }
  0x7c   :  { %547 = vperm.xlu1 %7172, %v409_v0   ;;  %211 = vperm.xlu0 %7171, %v73_v63  }
  0x80   :  { %552 = vperm.xlu1 %7172, %v410_v2   ;;  %216 = vperm.xlu0 %7171, %v74_v1  }
  0x84   :  { %557 = vperm.xlu1 %7172, %v411_v4   ;;  %221 = vperm.xlu0 %7171, %v75_v3   ;;  %v10305_v3 = vsub.s32 3, %v7625_v10 }
  0x88   :  { %562 = vperm.xlu1 %7172, %v412_v6   ;;  %226 = vperm.xlu0 %7171, %v76_v5  }
  0x8c   :  { %567 = vperm.xlu1 %7172, %v413_v9   ;;  %231 = vperm.xlu0 %7171, %v77_v8  }
  0x90   :  { %572 = vperm.xlu1 %7172, %v414_v12   ;;  %236 = vperm.xlu0 %7171, %v78_v11  }
  0x93   :  { %v87_v20 = vpop.permute.xlu1 %86  ;;  %v82_v22 = vpop.permute.xlu0 %81 }
  0x94   :  { %v316_v23 = vmul.f32 %v7640_v17, %v87_v20  ;;  %v315_v29 = vmul.f32 %v7640_v17, %v82_v22  ;;  %v616_v32 = vmul.f32 %v7652_v24, %v87_v20  ;;  %v615_v40 = vmul.f32 %v7652_v24, %v82_v22 }
  0x95   :  { %v244_v51 = vmul.f32 %v7678_v36, %v87_v20  ;;  %v243_v5 = vmul.f32 %v7678_v36, %v82_v22 }
  0x96   :  { %v7667_v28 = vadd.f32 %v7648_v21, %v316_v23  ;;  %v7683_v39 = vadd.f32 %v7648_v21, %v315_v29 }
  0x97   :  { %v423_v30 = vpop.permute.xlu1 %422  ;;  %v92_v31 = vpop.permute.xlu0 %91  ;;  %v7710_v4 = vadd.f32 %v7696_v52, %v244_v51 }
  0x98   :  { %v580_v33 = vmul.f32 %v7656_v25, %v423_v30  ;;  %v317_v35 = vmul.f32 %v7640_v17, %v92_v31  ;;  %v716_v38 = vmul.f32 %v7667_v28, %v7667_v28  ;;  %v617_v45 = vmul.f32 %v7652_v24, %v92_v31 }
  0x99   :  { %v715_v53 = vmul.f32 %v7683_v39, %v7683_v39  ;;  %v245_v11 = vmul.f32 %v7678_v36, %v92_v31  ;;  %v7725_v30 = vrot.slane %v7664_v27, %v10306_v61 }
  0x9a   :  { %v648_v37 = vadd.f32 %v616_v32, %v580_v33  ;;  %v7687_v41 = vadd.f32 %v7648_v21, %v317_v35  ;;  %v812_v33 = vsub.f32 %v7710_v4, %v7667_v28  ;;  %v7732_v35 = vadd.f32 %v7696_v52, %v243_v5 }
  0x9b   :  { %v428_v42 = vpop.permute.xlu1 %427  ;;  %v418_v43 = vpop.permute.xlu0 %417 }
  0x9c   :  { %v684_v44 = vadd.f32 %v7673_v34, %v648_v37  ;;  %v581_v46 = vmul.f32 %v7656_v25, %v428_v42  ;;  %v579_v47 = vmul.f32 %v7656_v25, %v418_v43  ;;  %v717_v54 = vmul.f32 %v7687_v41, %v7687_v41 }
  0x9d   :  { %v7737_v42 = vrot.slane %v7664_v27, %v10305_v3  ;;  %v7740_v43 = vadd.f32 %v7696_v52, %v245_v11 }
  0x9e   :  { %v748_v48 = vsub.f32 %v684_v44, %v716_v38  ;;  %v649_v49 = vadd.f32 %v617_v45, %v581_v46  ;;  %v647_v50 = vadd.f32 %v615_v40, %v579_v47 }
  0x9f   :  { %v433_v55 = vpop.permute.xlu1 %432  ;;  %v97_v56 = vpop.permute.xlu0 %96 }
  0xa0   :  { %v780_v57 = vmax.f32 %v748_v48, 0.0  ;;  %v685_v58 = vadd.f32 %v7673_v34, %v649_v49  ;;  %v683_v59 = vadd.f32 %v7673_v34, %v647_v50  ;;  %v582_v60 = vmul.f32 %v7656_v25, %v433_v55 }
  0xa1   :  { %v318_v62 = vmul.f32 %v7640_v17, %v97_v56  ;;  %v618_v63 = vmul.f32 %v7652_v24, %v97_v56  ;;  %v246_v20 = vmul.f32 %v7678_v36, %v97_v56 }
  0xa2   :  { %v844_v0 = vadd.f32 1e-05, %v780_v57  ;;  %v749_v1 = vsub.f32 %v685_v58, %v717_v54  ;;  %v747_v2 = vsub.f32 %v683_v59, %v715_v53  ;;  %v811_v53 = vsub.f32 %v7732_v35, %v7683_v39 }
  0xa3   :  { %v7714_v6 = vadd.f32 %v7648_v21, %v318_v62  ;;  %v650_v7 = vadd.f32 %v618_v63, %v582_v60  ;;  %v438_v8 = vpop.permute.xlu1 %437  ;;  %v102_v9 = vpop.permute.xlu0 %101  ;;  %v7747_v47 = vadd.f32 %v7696_v52, %v246_v20  ;;  %v813_v59 = vsub.f32 %v7740_v43, %v7687_v41 }
  0xa4   :  { %7173 = vrsqrt.f32 %v844_v0  ;;  %v781_v12 = vmax.f32 %v749_v1, 0.0  ;;  %v583_v14 = vmul.f32 %v7656_v25, %v438_v8  ;;  %v779_v19 = vmax.f32 %v747_v2, 0.0 }
  0xa5   :  { %v686_v23 = vadd.f32 %v7673_v34, %v650_v7  ;;  %v718_v22 = vmul.f32 %v7714_v6, %v7714_v6  ;;  %v319_v32 = vmul.f32 %v7640_v17, %v102_v9  ;;  %v619_v31 = vmul.f32 %v7652_v24, %v102_v9 }
  0xa6   :  { %v845_v29 = vadd.f32 1e-05, %v781_v12  ;;  %v843_v46 = vadd.f32 1e-05, %v779_v19  ;;  %v247_v55 = vmul.f32 %v7678_v36, %v102_v9  ;;  %v814_v0 = vsub.f32 %v7747_v47, %v7714_v6 }
  0xa7   :  { %v750_v37 = vsub.f32 %v686_v23, %v718_v22  ;;  %v443_v38 = vpop.permute.xlu1 %442  ;;  %v107_v40 = vpop.permute.xlu0 %106  ;;  %v7743_v44 = vadd.f32 %v7648_v21, %v319_v32  ;;  %v651_v45 = vadd.f32 %v619_v31, %v583_v14 }
  0xa8   :  { %v584_v28 = vmul.f32 %v7656_v25, %v443_v38  ;;  %v320_v49 = vmul.f32 %v7640_v17, %v107_v40  ;;  %7175 = vrsqrt.f32 %v845_v29  ;;  %v620_v51 = vmul.f32 %v7652_v24, %v107_v40 }
  0xa9   :  { %v782_v48 = vmax.f32 %v750_v37, 0.0  ;;  %v687_v27 = vadd.f32 %v7673_v34, %v651_v45  ;;  %v719_v50 = vmul.f32 %v7743_v44, %v7743_v44  ;;  %7177 = vrsqrt.f32 %v843_v46 }
  0xaa   :  { %v7758_v56 = vadd.f32 %v7648_v21, %v320_v49  ;;  %v652_v62 = vadd.f32 %v620_v51, %v584_v28  ;;  %v7771_v8 = vadd.f32 %v7696_v52, %v247_v55  ;;  %v248_v9 = vmul.f32 %v7678_v36, %v107_v40 }
  0xab   :  { %v846_v54 = vadd.f32 1e-05, %v782_v48  ;;  %v448_v57 = vpop.permute.xlu1 %447  ;;  %v112_v58 = vpop.permute.xlu0 %111  ;;  %v751_v60 = vsub.f32 %v687_v27, %v719_v50 }
  0xac   :  { %v585_v63 = vmul.f32 %v7656_v25, %v448_v57  ;;  %v720_v1 = vmul.f32 %v7758_v56, %v7758_v56  ;;  %v321_v2 = vmul.f32 %v7640_v17, %v112_v58  ;;  %v688_v7 = vadd.f32 %v7673_v34, %v652_v62 }
  0xad   :  { %7179 = vrsqrt.f32 %v846_v54  ;;  %v783_v5 = vmax.f32 %v751_v60, 0.0  ;;  %v621_v41 = vmul.f32 %v7652_v24, %v112_v58  ;;  %v249_v11 = vmul.f32 %v7678_v36, %v112_v58 }
  0xae   :  { %v7174_v4 = vpop.eup %7173  ;;  %v7776_v12 = vadd.f32 %v7648_v21, %v321_v2  ;;  %v752_v23 = vsub.f32 %v688_v7, %v720_v1  ;;  %v815_v28 = vsub.f32 %v7771_v8, %v7743_v44  ;;  %v7788_v46 = vadd.f32 %v7696_v52, %v248_v9 }
  0xaf   :  { %v453_v14 = vpop.permute.xlu1 %452  ;;  %v117_v19 = vpop.permute.xlu0 %116  ;;  %v847_v20 = vadd.f32 1e-05, %v783_v5  ;;  %v653_v22 = vadd.f32 %v621_v41, %v585_v63  ;;  %v908_v38 = vmul.f32 %v7174_v4, %v812_v33  ;;  %v7791_v48 = vadd.f32 %v7696_v52, %v249_v11 }
  0xb0   :  { %v586_v29 = vmul.f32 %v7656_v25, %v453_v14  ;;  %v721_v32 = vmul.f32 %v7776_v12, %v7776_v12  ;;  %v250_v31 = vmul.f32 %v7678_v36, %v117_v19  ;;  %v322_v37 = vmul.f32 %v7640_v17, %v117_v19 }
  0xb1   :  { %7181 = vrsqrt.f32 %v847_v20  ;;  %v784_v40 = vmax.f32 %v752_v23, 0.0  ;;  %v689_v43 = vadd.f32 %v7673_v34, %v653_v22  ;;  %v622_v45 = vmul.f32 %v7652_v24, %v117_v19 }
  0xb2   :  { %v7794_v49 = vadd.f32 %v7648_v21, %v322_v37  ;;  %v7176_v50 = vpop.eup %7175  ;;  %v7798_v58 = vadd.f32 %v7696_v52, %v250_v31  ;;  %v944_v4 = vmul.f32 %v7725_v30, %v908_v38  ;;  %v816_v7 = vsub.f32 %v7788_v46, %v7758_v56 }
  0xb3   :  { %v458_v27 = vpop.permute.xlu1 %457  ;;  %v122_v33 = vpop.permute.xlu0 %121  ;;  %v848_v51 = vadd.f32 1e-05, %v784_v40  ;;  %v753_v54 = vsub.f32 %v689_v43, %v721_v32  ;;  %v654_v55 = vadd.f32 %v622_v45, %v586_v29  ;;  %v817_v41 = vsub.f32 %v7791_v48, %v7776_v12 }
  0xb4   :  { %v587_v57 = vmul.f32 %v7656_v25, %v458_v27  ;;  %v722_v44 = vmul.f32 %v7794_v49, %v7794_v49  ;;  %v251_v60 = vmul.f32 %v7678_v36, %v122_v33  ;;  %v323_v62 = vmul.f32 %v7640_v17, %v122_v33  ;;  %v7178_v5 = vpop.eup %7177 }
  0xb5   :  { %v785_v63 = vmax.f32 %v753_v54, 0.0  ;;  %v690_v1 = vadd.f32 %v7673_v34, %v654_v55  ;;  %v623_v2 = vmul.f32 %v7652_v24, %v122_v33  ;;  %v7814_v14 = vmul.f32 %v7176_v50, %v813_v59 }
  0xb6   :  { %v7812_v8 = vadd.f32 %v7648_v21, %v323_v62  ;;  %7183 = vrsqrt.f32 %v848_v51  ;;  %v818_v29 = vsub.f32 %v7798_v58, %v7794_v49  ;;  %v7819_v32 = vadd.f32 %v7696_v52, %v251_v60 }
  0xb7   :  { %v463_v9 = vpop.permute.xlu1 %462  ;;  %v127_v11 = vpop.permute.xlu0 %126  ;;  %v849_v20 = vadd.f32 1e-05, %v785_v63  ;;  %v754_v23 = vsub.f32 %v690_v1, %v722_v44  ;;  %v655_v22 = vadd.f32 %v623_v2, %v587_v57  ;;  %v907_v40 = vmul.f32 %v7178_v5, %v811_v53 }
  0xb8   :  { %v7180_v19 = vpop.eup %7179  ;;  %v723_v31 = vmul.f32 %v7812_v8, %v7812_v8  ;;  %v588_v37 = vmul.f32 %v7656_v25, %v463_v9  ;;  %v980_v43 = vadd.f32 %v7737_v42, %v944_v4  ;;  %v252_v27 = vmul.f32 %v7678_v36, %v127_v11 }
  0xb9   :  { %v786_v38 = vmax.f32 %v754_v23, 0.0  ;;  %v691_v59 = vadd.f32 %v7673_v34, %v655_v22  ;;  %v910_v45 = vmul.f32 %v7180_v19, %v814_v0  ;;  %v324_v33 = vmul.f32 %v7640_v17, %v127_v11 }
  0xba   :  { %v624_v50 = vmul.f32 %v7652_v24, %v127_v11  ;;  %7185 = vrsqrt.f32 %v849_v20  ;;  %v819_v62 = vsub.f32 %v7819_v32, %v7812_v8  ;;  %v943_v11 = vmul.f32 %v7725_v30, %v907_v40 }
  0xbb   :  { %v468_v51 = vpop.permute.xlu1 %467  ;;  %v132_v54 = vpop.permute.xlu0 %131  ;;  %v850_v57 = vadd.f32 1e-05, %v786_v38  ;;  %v755_v44 = vsub.f32 %v691_v59, %v723_v31  ;;  %v7837_v35 = vadd.f32 %v7648_v21, %v324_v33  ;;  %v7845_v1 = vmul.f32 %v7725_v30, %v910_v45 }
  0xbc   :  { %v7182_v55 = vpop.eup %7181  ;;  %v589_v39 = vmul.f32 %v7656_v25, %v468_v51  ;;  %v656_v53 = vadd.f32 %v624_v50, %v588_v37  ;;  %v253_v6 = vmul.f32 %v7678_v36, %v132_v54  ;;  %v325_v47 = vmul.f32 %v7640_v17, %v132_v54 }
  0xbd   :  { %v911_v0 = vmul.f32 %v7182_v55, %v815_v28  ;;  %v787_v60 = vmax.f32 %v755_v44, 0.0  ;;  %v625_v63 = vmul.f32 %v7652_v24, %v132_v54  ;;  %v724_v4 = vmul.f32 %v7837_v35, %v7837_v35 }
  0xbe   :  { %v692_v2 = vadd.f32 %v7673_v34, %v656_v53  ;;  %7187 = vrsqrt.f32 %v850_v57  ;;  %v7852_v19 = vadd.f32 %v7648_v21, %v325_v47  ;;  %v7855_v23 = vadd.f32 %v7696_v52, %v252_v27 }
  0xbf   :  { %v473_v5 = vpop.permute.xlu1 %472  ;;  %v137_v9 = vpop.permute.xlu0 %136  ;;  %v851_v28 = vadd.f32 1e-05, %v787_v60  ;;  %v657_v20 = vadd.f32 %v625_v63, %v589_v39  ;;  %v7858_v31 = vadd.f32 %v7696_v52, %v253_v6  ;;  %v7862_v59 = vmul.f32 %v7725_v30, %v911_v0 }
  0xc0   :  { %v756_v22 = vsub.f32 %v692_v2, %v724_v4  ;;  %v326_v37 = vmul.f32 %v7640_v17, %v137_v9  ;;  %v7184_v38 = vpop.eup %7183  ;;  %v725_v45 = vmul.f32 %v7852_v19, %v7852_v19  ;;  %v590_v33 = vmul.f32 %v7656_v25, %v473_v5 }
  0xc1   :  { %v693_v40 = vadd.f32 %v7673_v34, %v657_v20  ;;  %7189 = vrsqrt.f32 %v851_v28  ;;  %v254_v50 = vmul.f32 %v7678_v36, %v137_v9  ;;  %v626_v44 = vmul.f32 %v7652_v24, %v137_v9 }
  0xc2   :  { %v788_v27 = vmax.f32 %v756_v22, 0.0  ;;  %v7870_v51 = vadd.f32 %v7648_v21, %v326_v37  ;;  %v979_v39 = vadd.f32 %v7737_v42, %v943_v11  ;;  %v1012_v53 = vmax.f32 %v980_v43, 0.0 }
  0xc3   :  { %v478_v54 = vpop.permute.xlu1 %477  ;;  %v142_v55 = vpop.permute.xlu0 %141  ;;  %v757_v57 = vsub.f32 %v693_v40, %v725_v45  ;;  %v912_v6 = vmul.f32 %v7184_v38, %v816_v7  ;;  %v820_v47 = vsub.f32 %v7855_v23, %v7837_v35  ;;  %v821_v60 = vsub.f32 %v7858_v31, %v7852_v19 }
  0xc4   :  { %v852_v0 = vadd.f32 1e-05, %v788_v27  ;;  %v7186_v63 = vpop.eup %7185  ;;  %v658_v4 = vadd.f32 %v626_v44, %v590_v33  ;;  %v726_v5 = vmul.f32 %v7870_v51, %v7870_v51  ;;  %v1011_v9 = vmax.f32 %v979_v39, 0.0 }
  0xc5   :  { %v789_v2 = vmax.f32 %v757_v57, 0.0  ;;  %v7884_v43 = vadd.f32 %v7696_v52, %v254_v50  ;;  %v1044_v56 = vmul.f32 %v1012_v53, %v1012_v53  ;;  %v945_v46 = vmul.f32 %v7725_v30, %v7814_v14 }
  0xc6   :  { %7191 = vrsqrt.f32 %v852_v0  ;;  %v694_v20 = vadd.f32 %v7673_v34, %v658_v4  ;;  %v1043_v22 = vmul.f32 %v1011_v9, %v1011_v9  ;;  %v591_v37 = vmul.f32 %v7656_v25, %v478_v54 }
  0xc7   :  { %v483_v7 = vpop.permute.xlu1 %482  ;;  %v147_v11 = vpop.permute.xlu0 %146  ;;  %v853_v28 = vadd.f32 1e-05, %v789_v2  ;;  %v7891_v38 = vmul.f32 %v7725_v30, %v912_v6  ;;  %v913_v40 = vmul.f32 %v7186_v63, %v817_v41  ;;  %v981_v45 = vadd.f32 %v7737_v42, %v945_v46 }
  0xc8   :  { %v327_v33 = vmul.f32 %v7640_v17, %v142_v55  ;;  %v7188_v14 = vpop.eup %7187  ;;  %v758_v27 = vsub.f32 %v694_v20, %v726_v5  ;;  %v1075_v50 = vmul.f32 %v1043_v22, %v1011_v9  ;;  %v627_v57 = vmul.f32 %v7652_v24, %v142_v55 }
  0xc9   :  { %7193 = vrsqrt.f32 %v853_v28  ;;  %v822_v54 = vsub.f32 %v7884_v43, %v7870_v51  ;;  %v1076_v44 = vmul.f32 %v1044_v56, %v1012_v53  ;;  %v1013_v39 = vmax.f32 %v981_v45, 0.0 }
  0xca   :  { %v7902_v6 = vadd.f32 %v7648_v21, %v327_v33  ;;  %v790_v41 = vmax.f32 %v758_v27, 0.0  ;;  %6441 = vmatprep.mubr.msk.f32.mxu0 %vm1118_vm1, %v1075_v50  ;;  %v255_v0 = vmul.f32 %v7678_v36, %v142_v55  ;;  %v659_v63 = vadd.f32 %v627_v57, %v591_v37 }
  0xcb   :  { %v488_v12 = vpop.permute.xlu1 %487  ;;  %v152_v48 = vpop.permute.xlu0 %151  ;;  %v982_v2 = vadd.f32 %v7737_v42, %v7845_v1  ;;  %v914_v53 = vmul.f32 %v7188_v14, %v818_v29  ;;  %6442 = vmatmul.mubr.msk.f32.vlgmr.msra.gmra.mrb[0].mxu0 %vm1118_vm1, %v1076_v44  ;;  %v1045_v5 = vmul.f32 %v1013_v39, %v1013_v39  ;;  %v592_v56 = vmul.f32 %v7656_v25, %v483_v7 }
  0xcc   :  { %v7190_v4 = vpop.eup %7189  ;;  %v727_v9 = vmul.f32 %v7902_v6, %v7902_v6  ;;  %v854_v46 = vadd.f32 1e-05, %v790_v41  ;;  %v695_v55 = vadd.f32 %v7673_v34, %v659_v63  ;;  %v256_v20 = vmul.f32 %v7678_v36, %v147_v11 }
  0xcd   :  { %v1014_v28 = vmax.f32 %v982_v2, 0.0  ;;  %v949_v1 = vmul.f32 %v7725_v30, %v913_v40  ;;  %v1077_v22 = vmul.f32 %v1045_v5, %v1013_v39  ;;  %v328_v49 = vmul.f32 %v7640_v17, %v147_v11 }
  0xce   :  { %v628_v58 = vmul.f32 %v7652_v24, %v147_v11  ;;  %v915_v45 = vmul.f32 %v7190_v4, %v819_v62  ;;  %v7924_v7 = vadd.f32 %v7696_v52, %v255_v0  ;;  %v759_v33 = vsub.f32 %v695_v55, %v727_v9 }
  0xcf   :  { %v493_v29 = vpop.permute.xlu1 %492  ;;  %v157_v37 = vpop.permute.xlu0 %156  ;;  %v1046_v14 = vmul.f32 %v1014_v28, %v1014_v28  ;;  %v7927_v50 = vmul.f32 %v7725_v30, %v914_v53  ;;  %6444 = vmatprep.mubr.msk.f32.mxu0 %vm1118_vm1, %v1077_v22  ;;  %v7931_v40 = vadd.f32 %v7648_v21, %v328_v49  ;;  %v983_v57 = vadd.f32 %v7737_v42, %v7862_v59 }
  0xd0   :  { %v7192_v27 = vpop.eup %7191  ;;  %v660_v11 = vadd.f32 %v628_v58, %v592_v56  ;;  %7195 = vrsqrt.f32 %v854_v46  ;;  %v791_v8 = vmax.f32 %v759_v33, 0.0  ;;  %v7936_v62 = vadd.f32 %v7696_v52, %v256_v20 }
  0xd1   :  { %v1078_v32 = vmul.f32 %v1046_v14, %v1014_v28  ;;  %v728_v39 = vmul.f32 %v7931_v40, %v7931_v40  ;;  %v1015_v41 = vmax.f32 %v983_v57, 0.0  ;;  %v593_v0 = vmul.f32 %v7656_v25, %v488_v12 }
  0xd2   :  { %v696_v44 = vadd.f32 %v7673_v34, %v660_v11  ;;  %v7943_v53 = vmul.f32 %v7725_v30, %v915_v45  ;;  %v823_v59 = vsub.f32 %v7924_v7, %v7902_v6  ;;  %v855_v5 = vadd.f32 1e-05, %v791_v8 }
  0xd3   :  { %v498_v63 = vpop.permute.xlu1 %497  ;;  %v162_v2 = vpop.permute.xlu0 %161  ;;  %6445 = vmatmul.mubr.msk.f32.gmra.mrb[2].mxu0 %vm1118_vm1, %v1078_v32  ;;  %v329_v9 = vmul.f32 %v7640_v17, %v152_v48  ;;  %v916_v56 = vmul.f32 %v7192_v27, %v820_v47  ;;  %v1047_v12 = vmul.f32 %v1015_v41, %v1015_v41  ;;  %v629_v55 = vmul.f32 %v7652_v24, %v152_v48 }
  0xd4   :  { %v7194_v4 = vpop.eup %7193  ;;  %v760_v46 = vsub.f32 %v696_v44, %v728_v39  ;;  %v824_v28 = vsub.f32 %v7936_v62, %v7931_v40  ;;  %v257_v20 = vmul.f32 %v7678_v36, %v152_v48  ;;  %v984_v49 = vadd.f32 %v7737_v42, %v7891_v38 }
  0xd5   :  { %v7957_v22 = vadd.f32 %v7648_v21, %v329_v9  ;;  %v917_v35 = vmul.f32 %v7194_v4, %v821_v60  ;;  %v1079_v47 = vmul.f32 %v1047_v12, %v1015_v41  ;;  %v661_v58 = vadd.f32 %v629_v55, %v593_v0 }
  0xd6   :  { %v792_v23 = vmax.f32 %v760_v46, 0.0  ;;  %7197 = vrsqrt.f32 %v855_v5  ;;  %v1016_v48 = vmax.f32 %v984_v49, 0.0  ;;  %v594_v27 = vmul.f32 %v7656_v25, %v493_v29 }
  0xd7   :  { %v503_v45 = vpop.permute.xlu1 %502  ;;  %v167_v33 = vpop.permute.xlu0 %166  ;;  %v729_v14 = vmul.f32 %v7957_v22, %v7957_v22  ;;  %6447 = vmatprep.mubr.msk.f32.mxu0 %vm1118_vm1, %v1079_v47  ;;  %v697_v38 = vadd.f32 %v7673_v34, %v661_v58  ;;  %v330_v19 = vmul.f32 %v7640_v17, %v157_v37  ;;  %v630_v31 = vmul.f32 %v7652_v24, %v157_v37 }
  0xd8   :  { %v856_v11 = vadd.f32 1e-05, %v792_v23  ;;  %v7972_v60 = vmul.f32 %v7725_v30, %v916_v56  ;;  %v7975_v57 = vadd.f32 %v7696_v52, %v257_v20  ;;  %v1048_v8 = vmul.f32 %v1016_v48, %v1016_v48 }
  0xd9   :  { %v985_v32 = vadd.f32 %v7737_v42, %v949_v1  ;;  %v7979_v29 = vmul.f32 %v7725_v30, %v917_v35  ;;  %v761_v44 = vsub.f32 %v697_v38, %v729_v14  ;;  %v258_v39 = vmul.f32 %v7678_v36, %v157_v37 }
  0xda   :  { %v7983_v41 = vadd.f32 %v7648_v21, %v330_v19  ;;  %v7196_v5 = vpop.eup %7195  ;;  %v1080_v9 = vmul.f32 %v1048_v8, %v1016_v48  ;;  %v662_v56 = vadd.f32 %v630_v31, %v594_v27  ;;  %v595_v12 = vmul.f32 %v7656_v25, %v498_v63 }
  0xdb   :  { %v508_v0 = vpop.permute.xlu1 %507  ;;  %v7985_v4 = vpop.permute.xlu0 %171  ;;  %v1017_v46 = vmax.f32 %v985_v32, 0.0  ;;  %7199 = vrsqrt.f32 %v856_v11  ;;  %v793_v1 = vmax.f32 %v761_v44, 0.0  ;;  %v259_v20 = vmul.f32 %v7678_v36, %v162_v2 }
  0xdc   :  { %v730_v55 = vmul.f32 %v7983_v41, %v7983_v41  ;;  %v825_v37 = vsub.f32 %v7975_v57, %v7957_v22  ;;  %6448 = vmatmul.mubr.msk.f32.gmra.mrb[4].mxu0 %vm1118_vm1, %v1080_v9  ;;  %v698_v49 = vadd.f32 %v7673_v34, %v662_v56  ;;  %v331_v23 = vmul.f32 %v7640_v17, %v162_v2 }
  0xdd   :  { %v1049_v35 = vmul.f32 %v1017_v46, %v1017_v46  ;;  %v918_v63 = vmul.f32 %v7196_v5, %v822_v54  ;;  %v857_v47 = vadd.f32 1e-05, %v793_v1  ;;  %v631_v58 = vmul.f32 %v7652_v24, %v162_v2 }
  0xde   :  { %v986_v14 = vadd.f32 %v7737_v42, %v7927_v50  ;;  %v8007_v11 = vadd.f32 %v7696_v52, %v258_v39  ;;  %v762_v38 = vsub.f32 %v698_v49, %v730_v55  ;;  %v8010_v31 = vadd.f32 %v7648_v21, %v331_v23 }
  0xdf   :  { %v8002_v48 = vpop.permute.xlu1 %512  ;;  %v8004_v27 = vpop.permute.xlu0 %176  ;;  %v1081_v19 = vmul.f32 %v1049_v35, %v1017_v46  ;;  %v8013_v51 = vadd.f32 %v7696_v52, %v259_v20  ;;  %v663_v43 = vadd.f32 %v631_v58, %v595_v12  ;;  %v596_v2 = vmul.f32 %v7656_v25, %v503_v45 }
  0xe0   :  { %v1018_v54 = vmax.f32 %v986_v14, 0.0  ;;  %v7198_v50 = vpop.eup %7197  ;;  %7201 = vrsqrt.f32 %v857_v47  ;;  %v794_v8 = vmax.f32 %v762_v38, 0.0  ;;  %v731_v32 = vmul.f32 %v8010_v31, %v8010_v31 }
  0xe1   :  { %6450 = vmatprep.mubr.msk.f32.mxu0 %vm1118_vm1, %v1081_v19  ;;  %v260_v44 = vmul.f32 %v7678_v36, %v167_v33  ;;  %v8021_v39 = vmul.f32 %v7725_v30, %v918_v63  ;;  %v699_v5 = vadd.f32 %v7673_v34, %v663_v43  ;;  %v332_v56 = vmul.f32 %v7640_v17, %v167_v33 }
  0xe2   :  { %v1050_v9 = vmul.f32 %v1018_v54, %v1018_v54  ;;  %v826_v12 = vsub.f32 %v8007_v11, %v7983_v41  ;;  %v858_v1 = vadd.f32 1e-05, %v794_v8  ;;  %v632_v55 = vmul.f32 %v7652_v24, %v167_v33 }
  0xe3   :  { %v518_v46 = vpop.permute.xlu1 %517  ;;  %v8025_v45 = vpop.permute.xlu0 %181  ;;  %v987_v20 = vadd.f32 %v7737_v42, %v7943_v53  ;;  %v919_v49 = vmul.f32 %v7198_v50, %v823_v59  ;;  %v763_v35 = vsub.f32 %v699_v5, %v731_v32  ;;  %v8036_v63 = vadd.f32 %v7648_v21, %v332_v56 }
  0xe4   :  { %v1082_v23 = vmul.f32 %v1050_v9, %v1018_v54  ;;  %v827_v47 = vsub.f32 %v8013_v51, %v8010_v31  ;;  %v8041_v58 = vadd.f32 %v7696_v52, %v260_v44  ;;  %v664_v14 = vadd.f32 %v632_v55, %v596_v2 }
  0xe5   :  { %v1019_v33 = vmax.f32 %v987_v20, 0.0  ;;  %v7200_v38 = vpop.eup %7199  ;;  %v795_v19 = vmax.f32 %v763_v35, 0.0  ;;  %v732_v6 = vmul.f32 %v8036_v63, %v8036_v63  ;;  %v597_v7 = vmul.f32 %v7656_v25, %v508_v0 }
  0xe6   :  { %6451 = vmatmul.mubr.msk.f32.gmra.mrb[6].mxu0 %vm1118_vm1, %v1082_v23  ;;  %v261_v53 = vmul.f32 %v7678_v36, %v7985_v4  ;;  %7203 = vrsqrt.f32 %v858_v1  ;;  %v700_v59 = vadd.f32 %v7673_v34, %v664_v14  ;;  %v333_v54 = vmul.f32 %v7640_v17, %v7985_v4 }
  0xe7   :  { %v1051_v43 = vmul.f32 %v1019_v33, %v1019_v33  ;;  %v8053_v2 = vmul.f32 %v7725_v30, %v919_v49  ;;  %v859_v50 = vadd.f32 1e-05, %v795_v19  ;;  %v633_v8 = vmul.f32 %v7652_v24, %v7985_v4  ;;  %v523_v32 = vpop.permute.xlu1 %522  ;;  %v8059_v44 = vpop.permute.xlu0 %186 }
  0xe8   :  { %v988_v0 = vadd.f32 %v7737_v42, %v7972_v60  ;;  %v920_v5 = vmul.f32 %v7200_v38, %v824_v28  ;;  %v764_v9 = vsub.f32 %v700_v59, %v732_v6  ;;  %v8065_v1 = vadd.f32 %v7648_v21, %v333_v54 }
  0xe9   :  { %v1083_v56 = vmul.f32 %v1051_v43, %v1019_v33  ;;  %v828_v55 = vsub.f32 %v8041_v58, %v8036_v63  ;;  %v665_v20 = vadd.f32 %v633_v8, %v597_v7  ;;  %v334_v60 = vmul.f32 %v7640_v17, %v8004_v27 }
  0xea   :  { %v1020_v4 = vmax.f32 %v988_v0, 0.0  ;;  %v7202_v49 = vpop.eup %7201  ;;  %v796_v35 = vmax.f32 %v764_v9, 0.0  ;;  %v8073_v40 = vadd.f32 %v7696_v52, %v261_v53  ;;  %v733_v62 = vmul.f32 %v8065_v1, %v8065_v1 }
  0xeb   :  { %6453 = vmatprep.mubr.msk.f32.mxu0 %vm1118_vm1, %v1083_v56  ;;  %v598_v28 = vmul.f32 %v7656_v25, %v8002_v48  ;;  %7205 = vrsqrt.f32 %v859_v50  ;;  %v701_v23 = vadd.f32 %v7673_v34, %v665_v20  ;;  %v8081_v33 = vadd.f32 %v7648_v21, %v334_v60  ;;  %v528_v54 = vpop.permute.xlu1 %527  ;;  %v8095_v50 = vpop.permute.xlu0 %191 }
  0xec   :  { %v1052_v14 = vmul.f32 %v1020_v4, %v1020_v4  ;;  %v8084_v38 = vmul.f32 %v7725_v30, %v920_v5  ;;  %v860_v19 = vadd.f32 1e-05, %v796_v35  ;;  %v634_v6 = vmul.f32 %v7652_v24, %v8004_v27 }
  0xed   :  { %v989_v7 = vadd.f32 %v7737_v42, %v7979_v29  ;;  %v921_v48 = vmul.f32 %v7202_v49, %v825_v37  ;;  %v765_v53 = vsub.f32 %v701_v23, %v733_v62  ;;  %v262_v43 = vmul.f32 %v7678_v36, %v8004_v27 }
  0xee   :  { %v1084_v59 = vmul.f32 %v1052_v14, %v1020_v4  ;;  %v666_v8 = vadd.f32 %v634_v6, %v598_v28  ;;  %v734_v0 = vmul.f32 %v8081_v33, %v8081_v33  ;;  %v599_v9 = vmul.f32 %v7656_v25, %v518_v46 }
  0xef   :  { %v1021_v5 = vmax.f32 %v989_v7, 0.0  ;;  %7207 = vrsqrt.f32 %v860_v19  ;;  %v797_v29 = vmax.f32 %v765_v53, 0.0  ;;  %v263_v22 = vmul.f32 %v7678_v36, %v8025_v45  ;;  %v533_v7 = vpop.permute.xlu1 %532  ;;  %v8127_v53 = vpop.permute.xlu0 %196 }
  0xf0   :  { %6454 = vmatmul.mubr.msk.f32.gmra.mrb[8].mxu0 %vm1118_vm1, %v1084_v59  ;;  %v335_v57 = vmul.f32 %v7640_v17, %v8025_v45  ;;  %v7204_v37 = vpop.eup %7203  ;;  %v702_v27 = vadd.f32 %v7673_v34, %v666_v8  ;;  %v635_v20 = vmul.f32 %v7652_v24, %v8025_v45  ;;  %v990_v46 = vadd.f32 %v7737_v42, %v8021_v39 }
  0xf1   :  { %v1053_v56 = vmul.f32 %v1021_v5, %v1021_v5  ;;  %v829_v4 = vsub.f32 %v8073_v40, %v8065_v1  ;;  %v861_v60 = vadd.f32 1e-05, %v797_v29  ;;  %v8113_v49 = vadd.f32 %v7696_v52, %v262_v43 }
  0xf2   :  { %v8116_v35 = vadd.f32 %v7648_v21, %v335_v57  ;;  %v766_v62 = vsub.f32 %v702_v27, %v734_v0  ;;  %v667_v23 = vadd.f32 %v635_v20, %v599_v9  ;;  %v1022_v14 = vmax.f32 %v990_v46, 0.0 }
  0xf3   :  { %v1085_v28 = vmul.f32 %v1053_v56, %v1021_v5  ;;  %v922_v45 = vmul.f32 %v7204_v37, %v826_v12  ;;  %v8122_v39 = vadd.f32 %v7696_v52, %v263_v22  ;;  %v600_v6 = vmul.f32 %v7656_v25, %v523_v32  ;;  %v202_v31 = vpop.permute.xlu0 %201 }
  0xf4   :  { %v735_v19 = vmul.f32 %v8116_v35, %v8116_v35  ;;  %7209 = vrsqrt.f32 %v861_v60  ;;  %v798_v59 = vmax.f32 %v766_v62, 0.0  ;;  %v703_v43 = vadd.f32 %v7673_v34, %v667_v23 }
  0xf5   :  { %6456 = vmatprep.mubr.msk.f32.mxu0 %vm1118_vm1, %v1085_v28  ;;  %v1054_v8 = vmul.f32 %v1022_v14, %v1022_v14  ;;  %v7206_v41 = vpop.eup %7205  ;;  %v264_v11 = vmul.f32 %v7678_v36, %v8059_v44  ;;  %v336_v12 = vmul.f32 %v7640_v17, %v8059_v44  ;;  %v636_v32 = vmul.f32 %v7652_v24, %v8059_v44 }
  0xf6   :  { %v991_v0 = vadd.f32 %v7737_v42, %v8053_v2  ;;  %v957_v5 = vmul.f32 %v7725_v30, %v921_v48  ;;  %v862_v9 = vadd.f32 1e-05, %v798_v59  ;;  %v767_v29 = vsub.f32 %v703_v43, %v735_v19 }
  0xf7   :  { %v1086_v22 = vmul.f32 %v1054_v8, %v1022_v14  ;;  %v830_v57 = vsub.f32 %v8113_v49, %v8081_v33  ;;  %v8143_v37 = vadd.f32 %v7648_v21, %v336_v12  ;;  %v668_v27 = vadd.f32 %v636_v32, %v600_v6  ;;  %v538_v14 = vpop.permute.xlu1 %537 }
  0xf8   :  { %v1023_v56 = vmax.f32 %v991_v0, 0.0  ;;  %v958_v20 = vmul.f32 %v7725_v30, %v922_v45  ;;  %v923_v44 = vmul.f32 %v7206_v41, %v827_v47  ;;  %v799_v2 = vmax.f32 %v767_v29, 0.0 }
  0xf9   :  { %v831_v48 = vsub.f32 %v8122_v39, %v8116_v35  ;;  %6457 = vmatmul.mubr.msk.f32.gmra.mrb[10].mxu0 %vm1118_vm1, %v1086_v22  ;;  %v7208_v46 = vpop.eup %7207  ;;  %v8153_v60 = vadd.f32 %v7696_v52, %v264_v11  ;;  %v704_v62 = vadd.f32 %v7673_v34, %v668_v27  ;;  %v736_v28 = vmul.f32 %v8143_v37, %v8143_v37 }
  0xfa   :  { %v601_v23 = vmul.f32 %v7656_v25, %v528_v54  ;;  %7211 = vrsqrt.f32 %v862_v9  ;;  %v1055_v51 = vmul.f32 %v1023_v56, %v1023_v56  ;;  %v265_v47 = vmul.f32 %v7678_v36, %v8095_v50 }
  0xfb   :  { %v337_v45 = vmul.f32 %v7640_v17, %v8095_v50  ;;  %v863_v19 = vadd.f32 1e-05, %v799_v2  ;;  %v768_v6 = vsub.f32 %v704_v62, %v736_v28  ;;  %v637_v59 = vmul.f32 %v7652_v24, %v8095_v50 }
  0xfc   :  { %v992_v43 = vadd.f32 %v7737_v42, %v8084_v38  ;;  %v8168_v54 = vmul.f32 %v7725_v30, %v923_v44  ;;  %v924_v8 = vmul.f32 %v7208_v46, %v828_v55  ;;  %v1087_v41 = vmul.f32 %v1055_v51, %v1023_v56  ;;  %v543_v56 = vpop.permute.xlu1 %542  ;;  %v207_v44 = vpop.permute.xlu0 %206 }
  0xfd   :  { %v8174_v11 = vadd.f32 %v7648_v21, %v337_v45  ;;  %v800_v12 = vmax.f32 %v768_v6, 0.0  ;;  %v832_v32 = vsub.f32 %v8153_v60, %v8143_v37  ;;  %v669_v0 = vadd.f32 %v637_v59, %v601_v23 }
  0xfe   :  { %v1024_v50 = vmax.f32 %v992_v43, 0.0  ;;  %v7210_v9 = vpop.eup %7209  ;;  %6459 = vmatprep.mubr.msk.f32.mxu0 %vm1118_vm1, %v1087_v41  ;;  %v8180_v38 = vadd.f32 %v7696_v52, %v265_v47  ;;  %v602_v58 = vmul.f32 %v7656_v25, %v533_v7  ;;  %v338_v55 = vmul.f32 %v7640_v17, %v8127_v53 }
  0xff   :  { %v737_v63 = vmul.f32 %v8174_v11, %v8174_v11  ;;  %7213 = vrsqrt.f32 %v863_v19  ;;  %v864_v29 = vadd.f32 1e-05, %v800_v12  ;;  %v705_v22 = vadd.f32 %v7673_v34, %v669_v0 }
 0x100   :  { %v1056_v27 = vmul.f32 %v1024_v50, %v1024_v50  ;;  %v8189_v2 = vmul.f32 %v7725_v30, %v924_v8  ;;  %v8192_v46 = vadd.f32 %v7648_v21, %v338_v55  ;;  %v638_v62 = vmul.f32 %v7652_v24, %v8127_v53 }
 0x101   :  { %v993_v7 = vadd.f32 %v7737_v42, %v957_v5  ;;  %v925_v28 = vmul.f32 %v7210_v9, %v829_v4  ;;  %v769_v23 = vsub.f32 %v705_v22, %v737_v63  ;;  %v266_v47 = vmul.f32 %v7678_v36, %v8127_v53  ;;  %v548_v9 = vpop.permute.xlu1 %547  ;;  %v212_v63 = vpop.permute.xlu0 %211 }
 0x102   :  { %v1088_v51 = vmul.f32 %v1056_v27, %v1024_v50  ;;  %v670_v45 = vadd.f32 %v638_v62, %v602_v58  ;;  %v738_v19 = vmul.f32 %v8192_v46, %v8192_v46  ;;  %v603_v59 = vmul.f32 %v7656_v25, %v538_v14 }
 0x103   :  { %v1025_v6 = vmax.f32 %v993_v7, 0.0  ;;  %7215 = vrsqrt.f32 %v864_v29  ;;  %v801_v43 = vmax.f32 %v769_v23, 0.0  ;;  %v267_v5 = vmul.f32 %v7678_v36, %v202_v31 }
 0x104   :  { %6460 = vmatmul.mubr.msk.f32.gmra.mrb[12].mxu0 %vm1118_vm1, %v1088_v51  ;;  %v339_v1 = vmul.f32 %v7640_v17, %v202_v31  ;;  %v7212_v40 = vpop.eup %7211  ;;  %v706_v4 = vadd.f32 %v7673_v34, %v670_v45  ;;  %v639_v53 = vmul.f32 %v7652_v24, %v202_v31  ;;  %v994_v41 = vadd.f32 %v7737_v42, %v958_v20 }
 0x105   :  { %v1057_v8 = vmul.f32 %v1025_v6, %v1025_v6  ;;  %v833_v12 = vsub.f32 %v8180_v38, %v8174_v11  ;;  %v865_v14 = vadd.f32 1e-05, %v801_v43  ;;  %v8214_v0 = vadd.f32 %v7696_v52, %v266_v47 }
 0x106   :  { %v8217_v50 = vadd.f32 %v7648_v21, %v339_v1  ;;  %v770_v58 = vsub.f32 %v706_v4, %v738_v19  ;;  %v671_v29 = vadd.f32 %v639_v53, %v603_v59  ;;  %v1026_v22 = vmax.f32 %v994_v41, 0.0  ;;  %v217_v4 = vpop.permute.xlu0 %216 }
 0x107   :  { %v1089_v55 = vmul.f32 %v1057_v8, %v1025_v6  ;;  %v8220_v31 = vmul.f32 %v7725_v30, %v925_v28  ;;  %v926_v20 = vmul.f32 %v7212_v40, %v830_v57  ;;  %v8226_v27 = vadd.f32 %v7696_v52, %v267_v5  ;;  %v553_v40 = vpop.permute.xlu1 %552 }
 0x108   :  { %v739_v62 = vmul.f32 %v8217_v50, %v8217_v50  ;;  %v802_v7 = vmax.f32 %v770_v58, 0.0  ;;  %v707_v23 = vadd.f32 %v7673_v34, %v671_v29  ;;  %v1058_v51 = vmul.f32 %v1026_v22, %v1026_v22 }
 0x109   :  { %6462 = vmatprep.mubr.msk.f32.mxu0 %vm1118_vm1, %v1089_v55  ;;  %v604_v47 = vmul.f32 %v7656_v25, %v543_v56  ;;  %v7214_v28 = vpop.eup %7213  ;;  %7217 = vrsqrt.f32 %v865_v14  ;;  %v268_v45 = vmul.f32 %v7678_v36, %v207_v44  ;;  %v340_v33 = vmul.f32 %v7640_v17, %v207_v44 }
 0x10a   :  { %v640_v49 = vmul.f32 %v7652_v24, %v207_v44  ;;  %v866_v57 = vadd.f32 1e-05, %v802_v7  ;;  %v771_v19 = vsub.f32 %v707_v23, %v739_v62  ;;  %v1090_v6 = vmul.f32 %v1058_v51, %v1026_v22 }
 0x10b   :  { %v995_v59 = vadd.f32 %v7737_v42, %v8168_v54  ;;  %v8239_v43 = vmul.f32 %v7725_v30, %v926_v20  ;;  %v834_v56 = vsub.f32 %v8214_v0, %v8192_v46  ;;  %v8244_v5 = vadd.f32 %v7648_v21, %v340_v33 }
 0x10c   :  { %v672_v1 = vadd.f32 %v640_v49, %v604_v47  ;;  %v927_v44 = vmul.f32 %v7214_v28, %v831_v48  ;;  %v803_v8 = vmax.f32 %v771_v19, 0.0  ;;  %v835_v54 = vsub.f32 %v8226_v27, %v8217_v50  ;;  %6463 = vmatmul.mubr.msk.f32.gmra.mrb[14].mxu0 %vm1118_vm1, %v1090_v6  ;;  %v558_v49 = vpop.permute.xlu1 %557 }
 0x10d   :  { %v1027_v53 = vmax.f32 %v995_v59, 0.0  ;;  %v7216_v41 = vpop.eup %7215  ;;  %v8253_v14 = vadd.f32 %v7696_v52, %v268_v45  ;;  %v740_v55 = vmul.f32 %v8244_v5, %v8244_v5  ;;  %v605_v29 = vmul.f32 %v7656_v25, %v548_v9 }
 0x10e   :  { %v708_v58 = vadd.f32 %v7673_v34, %v672_v1  ;;  %7219 = vrsqrt.f32 %v866_v57  ;;  %v269_v39 = vmul.f32 %v7678_v36, %v212_v63  ;;  %v341_v48 = vmul.f32 %v7640_v17, %v212_v63  ;;  %v222_v57 = vpop.permute.xlu0 %221 }
 0x10f   :  { %v1059_v35 = vmul.f32 %v1027_v53, %v1027_v53  ;;  %v867_v22 = vadd.f32 1e-05, %v803_v8  ;;  %v641_v62 = vmul.f32 %v7652_v24, %v212_v63  ;;  %v996_v7 = vadd.f32 %v7737_v42, %v8189_v2 }
 0x110   :  { %v772_v20 = vsub.f32 %v708_v58, %v740_v55  ;;  %v8265_v23 = vmul.f32 %v7725_v30, %v927_v44  ;;  %v928_v9 = vmul.f32 %v7216_v41, %v832_v32  ;;  %v8271_v47 = vadd.f32 %v7648_v21, %v341_v48 }
 0x111   :  { %v1091_v51 = vmul.f32 %v1059_v35, %v1027_v53  ;;  %v836_v45 = vsub.f32 %v8253_v14, %v8244_v5  ;;  %v673_v33 = vadd.f32 %v641_v62, %v605_v29  ;;  %v1028_v63 = vmax.f32 %v996_v7, 0.0 }
 0x112   :  { %v804_v28 = vmax.f32 %v772_v20, 0.0  ;;  %v8277_v2 = vadd.f32 %v7696_v52, %v269_v39  ;;  %v741_v37 = vmul.f32 %v8271_v47, %v8271_v47  ;;  %v606_v60 = vmul.f32 %v7656_v25, %v553_v40  ;;  %v227_v7 = vpop.permute.xlu0 %226 }
 0x113   :  { %6465 = vmatprep.mubr.msk.f32.mxu0 %vm1118_vm1, %v1091_v51  ;;  %v342_v32 = vmul.f32 %v7640_v17, %v217_v4  ;;  %v7218_v19 = vpop.eup %7217  ;;  %7221 = vrsqrt.f32 %v867_v22  ;;  %v709_v59 = vadd.f32 %v7673_v34, %v673_v33  ;;  %v1060_v1 = vmul.f32 %v1028_v63, %v1028_v63 }
 0x114   :  { %v868_v6 = vadd.f32 1e-05, %v804_v28  ;;  %v8285_v44 = vmul.f32 %v7725_v30, %v928_v9  ;;  %v642_v53 = vmul.f32 %v7652_v24, %v217_v4  ;;  %v997_v41 = vadd.f32 %v7737_v42, %v8220_v31 }
 0x115   :  { %v8288_v8 = vadd.f32 %v7648_v21, %v342_v32  ;;  %v773_v40 = vsub.f32 %v709_v59, %v741_v37  ;;  %v1092_v58 = vmul.f32 %v1060_v1, %v1028_v63  ;;  %v270_v55 = vmul.f32 %v7678_v36, %v217_v4  ;;  %v563_v4 = vpop.permute.xlu1 %562 }
 0x116   :  { %7223 = vrsqrt.f32 %v868_v6  ;;  %v674_v29 = vadd.f32 %v642_v53, %v606_v60  ;;  %v1029_v39 = vmax.f32 %v997_v41, 0.0  ;;  %v607_v48 = vmul.f32 %v7656_v25, %v558_v49 }
 0x117   :  { %v742_v35 = vmul.f32 %v8288_v8, %v8288_v8  ;;  %v929_v22 = vmul.f32 %v7218_v19, %v833_v12  ;;  %v805_v20 = vmax.f32 %v773_v40, 0.0  ;;  %v837_v31 = vsub.f32 %v8277_v2, %v8271_v47  ;;  %6466 = vmatmul.mubr.msk.f32.gmra.mrb[16].mxu0 %vm1118_vm1, %v1092_v58 }
 0x118   :  { %v343_v62 = vmul.f32 %v7640_v17, %v222_v57  ;;  %v7220_v9 = vpop.eup %7219  ;;  %v710_v51 = vadd.f32 %v7673_v34, %v674_v29  ;;  %v1061_v28 = vmul.f32 %v1029_v39, %v1029_v39  ;;  %v643_v33 = vmul.f32 %v7652_v24, %v222_v57  ;;  %v232_v29 = vpop.permute.xlu0 %231 }
 0x119   :  { %v998_v11 = vadd.f32 %v7737_v42, %v8239_v43  ;;  %v869_v38 = vadd.f32 1e-05, %v805_v20  ;;  %v8309_v12 = vadd.f32 %v7696_v52, %v270_v55  ;;  %v271_v63 = vmul.f32 %v7678_v36, %v222_v57 }
 0x11a   :  { %v8313_v49 = vadd.f32 %v7648_v21, %v343_v62  ;;  %v774_v37 = vsub.f32 %v710_v51, %v742_v35  ;;  %v1093_v60 = vmul.f32 %v1061_v28, %v1029_v39  ;;  %v675_v32 = vadd.f32 %v643_v33, %v607_v48 }
 0x11b   :  { %v1030_v19 = vmax.f32 %v998_v11, 0.0  ;;  %v8316_v6 = vmul.f32 %v7725_v30, %v929_v22  ;;  %v930_v43 = vmul.f32 %v7220_v9, %v834_v56  ;;  %7225 = vrsqrt.f32 %v869_v38  ;;  %v568_v56 = vpop.permute.xlu1 %567 }
 0x11c   :  { %v743_v59 = vmul.f32 %v8313_v49, %v8313_v49  ;;  %v806_v1 = vmax.f32 %v774_v37, 0.0  ;;  %6468 = vmatprep.mubr.msk.f32.mxu0 %vm1118_vm1, %v1093_v60  ;;  %v711_v57 = vadd.f32 %v7673_v34, %v675_v32  ;;  %v608_v41 = vmul.f32 %v7656_v25, %v563_v4 }
 0x11d   :  { %v1062_v53 = vmul.f32 %v1030_v19, %v1030_v19  ;;  %v7222_v40 = vpop.eup %7221  ;;  %v8327_v58 = vadd.f32 %v7696_v52, %v271_v63  ;;  %v272_v55 = vmul.f32 %v7678_v36, %v227_v7  ;;  %v344_v46 = vmul.f32 %v7640_v17, %v227_v7 }
 0x11e   :  { %v644_v0 = vmul.f32 %v7652_v24, %v227_v7  ;;  %v870_v35 = vadd.f32 1e-05, %v806_v1  ;;  %v775_v39 = vsub.f32 %v711_v57, %v743_v59  ;;  %v999_v22 = vadd.f32 %v7737_v42, %v8265_v23 }
 0x11f   :  { %v1094_v48 = vmul.f32 %v1062_v53, %v1030_v19  ;;  %v966_v62 = vmul.f32 %v7725_v30, %v930_v43  ;;  %v838_v4 = vsub.f32 %v8309_v12, %v8288_v8  ;;  %v8338_v9 = vadd.f32 %v7648_v21, %v344_v46  ;;  %v573_v19 = vpop.permute.xlu1 %572  ;;  %v8360_v43 = vpop.permute.xlu0 %236 }
 0x120   :  { %v7224_v20 = vpop.eup %7223  ;;  %v676_v51 = vadd.f32 %v644_v0, %v608_v41  ;;  %v931_v7 = vmul.f32 %v7222_v40, %v835_v54  ;;  %7227 = vrsqrt.f32 %v870_v35  ;;  %v807_v28 = vmax.f32 %v775_v39, 0.0 }
 0x121   :  { %6469 = vmatmul.mubr.msk.f32.gmra.mrb[18].mxu0 %vm1118_vm1, %v1094_v48  ;;  %v1031_v33 = vmax.f32 %v999_v22, 0.0  ;;  %v8345_v23 = vadd.f32 %v7696_v52, %v272_v55  ;;  %v744_v8 = vmul.f32 %v8338_v9, %v8338_v9  ;;  %v609_v38 = vmul.f32 %v7656_v25, %v568_v56 }
 0x122   :  { %v712_v11 = vadd.f32 %v7673_v34, %v676_v51  ;;  %v839_v12 = vsub.f32 %v8327_v58, %v8313_v49  ;;  %v871_v50 = vadd.f32 1e-05, %v807_v28  ;;  %v345_v54 = vmul.f32 %v7640_v17, %v232_v29 }
 0x123   :  { %v1063_v27 = vmul.f32 %v1031_v33, %v1031_v33  ;;  %v932_v63 = vmul.f32 %v7224_v20, %v836_v45  ;;  %v645_v60 = vmul.f32 %v7652_v24, %v232_v29  ;;  %v1000_v32 = vadd.f32 %v7737_v42, %v8285_v44 }
 0x124   :  { %v776_v37 = vsub.f32 %v712_v11, %v744_v8  ;;  %v967_v59 = vmul.f32 %v7725_v30, %v931_v7  ;;  %7229 = vrsqrt.f32 %v871_v50  ;;  %v8364_v57 = vadd.f32 %v7648_v21, %v345_v54 }
 0x125   :  { %v1095_v1 = vmul.f32 %v1063_v27, %v1031_v33  ;;  %v7226_v53 = vpop.eup %7225  ;;  %v840_v5 = vsub.f32 %v8345_v23, %v8338_v9  ;;  %v677_v14 = vadd.f32 %v645_v60, %v609_v38  ;;  %v1032_v45 = vmax.f32 %v1000_v32, 0.0 }
 0x126   :  { %v808_v41 = vmax.f32 %v776_v37, 0.0  ;;  %v933_v44 = vmul.f32 %v7226_v53, %v837_v31  ;;  %v745_v40 = vmul.f32 %v8364_v57, %v8364_v57  ;;  %v610_v55 = vmul.f32 %v7656_v25, %v573_v19  ;;  %v43_v53 = vld [vmem:[%s10299_s2 + $0x18] sm:$0xff] }
 0x127   :  { %6471 = vmatprep.mubr.msk.f32.mxu0 %vm1118_vm1, %v1095_v1  ;;  %v346_v46 = vmul.f32 %v7640_v17, %v8360_v43  ;;  %v968_v0 = vmul.f32 %v7725_v30, %v932_v63  ;;  %v713_v35 = vadd.f32 %v7673_v34, %v677_v14  ;;  %v1064_v39 = vmul.f32 %v1032_v45, %v1032_v45  ;;  %v42_v1 = vld [vmem:[%s10299_s2 + $0x10] sm:$0xff] }
 0x128   :  { %v872_v56 = vadd.f32 1e-05, %v808_v41  ;;  %v969_v48 = vmul.f32 %v7725_v30, %v933_v44  ;;  %v646_v2 = vmul.f32 %v7652_v24, %v8360_v43  ;;  %v1001_v25 = vadd.f32 %v7737_v42, %v8316_v6 }
 0x129   :  { %v8381_v47 = vadd.f32 %v7648_v21, %v346_v46  ;;  %v777_v31 = vsub.f32 %v713_v35, %v745_v40  ;;  %v1096_v17 = vmul.f32 %v1064_v39, %v1032_v45  ;;  %v1002_v22 = vadd.f32 %v7737_v42, %v966_v62 }
 0x12a   :  { %7231 = vrsqrt.f32 %v872_v56  ;;  %v7228_v20 = vpop.eup %7227  ;;  %v273_v51 = vmul.f32 %v7678_v36, %v232_v29  ;;  %v678_v7 = vadd.f32 %v646_v2, %v610_v55  ;;  %v1033_v21 = vmax.f32 %v1001_v25, 0.0  ;;  %v44_v2 = vld [vmem:[%s10299_s2 + $0x20] sm:$0xff]  ;;  %v45_v25 = vld [vmem:[%s10299_s2 + $0x28] sm:$0xff] }
 0x12b   :  { %v746_v28 = vmul.f32 %v8381_v47, %v8381_v47  ;;  %v934_v33 = vmul.f32 %v7228_v20, %v838_v4  ;;  %v809_v11 = vmax.f32 %v777_v31, 0.0  ;;  %6472 = vmatmul.mubr.msk.f32.gmra.mrb[20].mxu0 %vm1118_vm1, %v1096_v17  ;;  %v1034_v24 = vmax.f32 %v1002_v22, 0.0  ;;  %v40_v4 = vld [vmem:[%s10299_s2] sm:$0xff] }
 0x12c   :  { %v1003_v6 = vadd.f32 %v7737_v42, %v967_v59  ;;  %v714_v8 = vadd.f32 %v7673_v34, %v678_v7  ;;  %v1065_v38 = vmul.f32 %v1033_v21, %v1033_v21  ;;  %v1004_v62 = vadd.f32 %v7737_v42, %v968_v0  ;;  %v41_v34 = vld [vmem:[%s10299_s2 + $0x8] sm:$0xff] }
 0x12d   :  { %v1005_v50 = vadd.f32 %v7737_v42, %v969_v48  ;;  %v970_v29 = vmul.f32 %v7725_v30, %v934_v33  ;;  %v873_v27 = vadd.f32 1e-05, %v809_v11  ;;  %v1066_v54 = vmul.f32 %v1034_v24, %v1034_v24 }
 0x12e   :  { %v1035_v63 = vmax.f32 %v1003_v6, 0.0  ;;  %v7230_v37 = vpop.eup %7229  ;;  %v778_v60 = vsub.f32 %v714_v8, %v746_v28  ;;  %v1097_v32 = vmul.f32 %v1065_v38, %v1033_v21  ;;  %v1036_v19 = vmax.f32 %v1004_v62, 0.0 }
 0x12f   :  { %v1037_v59 = vmax.f32 %v1005_v50, 0.0  ;;  %v935_v41 = vmul.f32 %v7230_v37, %v839_v12  ;;  %7233 = vrsqrt.f32 %v873_v27  ;;  %v1098_v14 = vmul.f32 %v1066_v54, %v1034_v24 }
 0x130   :  { %v1067_v45 = vmul.f32 %v1035_v63, %v1035_v63  ;;  %v810_v44 = vmax.f32 %v778_v60, 0.0  ;;  %6474 = vmatprep.mubr.msk.f32.mxu0 %vm1118_vm1, %v1097_v32  ;;  %v1068_v40 = vmul.f32 %v1036_v19, %v1036_v19  ;;  %v1006_v46 = vadd.f32 %v7737_v42, %v970_v29 }
 0x131   :  { %v1069_v55 = vmul.f32 %v1037_v59, %v1037_v59  ;;  %v971_v0 = vmul.f32 %v7725_v30, %v935_v41  ;;  %6475 = vmatmul.mubr.msk.f32.gmra.mrb[22].mxu0 %vm1118_vm1, %v1098_v14  ;;  %v8416_v35 = vpack.c.bf16 %v41_v34, %v40_v4  ;;  %v8418_v39 = vpack.c.bf16 %v43_v53, %v42_v1 }
 0x132   :  { %v1099_v56 = vmul.f32 %v1067_v45, %v1035_v63  ;;  %v874_v49 = vadd.f32 1e-05, %v810_v44  ;;  %v1100_v58 = vmul.f32 %v1068_v40, %v1036_v19  ;;  %v1038_v48 = vmax.f32 %v1006_v46, 0.0 }
 0x133   :  { %v1101_v12 = vmul.f32 %v1069_v55, %v1037_v59  ;;  %v1007_v17 = vadd.f32 %v7737_v42, %v971_v0  ;;  %7060 = vmatprep.subr.bf16.mxu1 %v8416_v35  ;;  %v309_v20 = vadd.f32 %v7696_v52, %v273_v51  ;;  %7072 = vmatprep.subr.bf16.mxu0 %v8416_v35  ;;  %v10304_v34 = vsub.s32 4, %v7625_v10 }
 0x134   :  { %v7232_v31 = vpop.eup %7231  ;;  %6477 = vmatprep.mubr.msk.f32.mxu0 %vm1118_vm1, %v1099_v56  ;;  %7235 = vrsqrt.f32 %v874_v49  ;;  %v1070_v7 = vmul.f32 %v1038_v48, %v1038_v48  ;;  %7062 = vmatpush3.bf16.msra.mxu1 %v8416_v35  ;;  %v274_v28 = vmul.f32 %v7678_v36, %v8360_v43  ;;  %v8439_v33 = vpack.c.bf16 %v45_v25, %v44_v2 }
 0x135   :  { %v936_v22 = vmul.f32 %v7232_v31, %v840_v5  ;;  %6478 = vmatmul.mubr.msk.f32.gmra.mrb[24].mxu0 %vm1118_vm1, %v1100_v58  ;;  %v1039_v21 = vmax.f32 %v1007_v17, 0.0  ;;  %7064 = vmatprep.subr.bf16.mxu1 %v8418_v39  ;;  %v841_v51 = vsub.f32 %v309_v20, %v8364_v57  ;;  %v8455_v57 = vld [vmem:[%s10299_s2 + $0x30] sm:$0x3] }
 0x136   :  { %6480 = vmatprep.mubr.msk.f32.mxu0 %vm1118_vm1, %v1101_v12  ;;  %v1102_v23 = vmul.f32 %v1070_v7, %v1038_v48  ;;  %7074 = vmatpush3.bf16.msra.mxu0 %v8416_v35  ;;  %v310_v11 = vadd.f32 %v7696_v52, %v274_v28 }
 0x137   :  { %v972_v9 = vmul.f32 %v7725_v30, %v936_v22  ;;  %v1071_v5 = vmul.f32 %v1039_v21, %v1039_v21  ;;  %7076 = vmatprep.subr.bf16.mxu0 %v8418_v39 }
 0x138   :  { %7066 = vmatpush3.bf16.msra.mxu1 %v8418_v39  ;;  %v842_v62 = vsub.f32 %v310_v11, %v8381_v47 }
 0x139   :  { %v1008_v36 = vadd.f32 %v7737_v42, %v972_v9  ;;  %v7234_v43 = vpop.eup %7233  ;;  %6481 = vmatmul.mubr.msk.f32.gmra.mrb[26].mxu0 %vm1118_vm1, %v1102_v23  ;;  %v1103_v24 = vmul.f32 %v1071_v5, %v1039_v21  ;;  %7068 = vmatprep.subr.bf16.mxu1 %v8439_v33 }
 0x13a   :  { %v937_v6 = vmul.f32 %v7234_v43, %v841_v51  ;;  %7078 = vmatpush3.bf16.msra.mxu0 %v8418_v39 }
 0x13b   :  { %v1040_v8 = vmax.f32 %v1008_v36, 0.0  ;;  %6483 = vmatprep.mubr.msk.f32.mxu0 %vm1118_vm1, %v1103_v24  ;;  %7080 = vmatprep.subr.bf16.mxu0 %v8439_v33 }
 0x13c   :  { %v973_v52 = vmul.f32 %v7725_v30, %v937_v6  ;;  %7070 = vmatpush3.bf16.msra.mxu1 %v8439_v33 }
 0x13d   :  { %v1072_v38 = vmul.f32 %v1040_v8, %v1040_v8  ;;  %6501 = vmatprep.subr.msk.mxu1 %vm1215_vm0, %v8455_v57 }
 0x13e   :  { %v7236_v50 = vpop.eup %7235  ;;  %v1009_v27 = vadd.f32 %v7737_v42, %v973_v52  ;;  %7082 = vmatpush3.bf16.msra.mxu0 %v8439_v33 }
 0x13f   :  { %v1104_v29 = vmul.f32 %v1072_v38, %v1040_v8  ;;  %v938_v54 = vmul.f32 %v7236_v50, %v842_v62  ;;  %6563 = vmatprep.subr.msk.mxu0 %vm1215_vm0, %v8455_v57 }
 0x140   :  { %v1041_v63 = vmax.f32 %v1009_v27, 0.0  ;;  %6502 = vmatpush3.msk.msra.mxu1 %vm1215_vm0, %v8455_v57 }
 0x141   :  { %6484 = vmatmul.mubr.msk.f32.gmra.mrb[28].mxu0 %vm1118_vm1, %v1104_v29  ;;  %v974_v47 = vmul.f32 %v7725_v30, %v938_v54  ;;  %v8482_v30 = vld [vmem:[%s10298_s1] sm:$0xff] }
 0x142   :  { %v1073_v4 = vmul.f32 %v1041_v63, %v1041_v63  ;;  %6564 = vmatpush3.msk.msra.mxu0 %vm1215_vm0, %v8455_v57 }
 0x143   :  { %v1010_v37 = vadd.f32 %v7737_v42, %v974_v47  ;;  %7096 = vmatprep.subr.bf16.mxu0 %v8416_v35  ;;  %v8487_v42 = vrot.slane %v8482_v30, %v10304_v34 }
 0x144   :  { %v1105_v60 = vmul.f32 %v1073_v4, %v1041_v63 }
 0x145   :  { %v1042_v32 = vmax.f32 %v1010_v37, 0.0 }
 0x146   :  { %6486 = vmatprep.mubr.msk.f32.mxu0 %vm1118_vm1, %v1105_v60 }
 0x147   :  { %v1074_v19 = vmul.f32 %v1042_v32, %v1042_v32 }
 0x149   :  { %v1106_v59 = vmul.f32 %v1074_v19, %v1042_v32 }
 0x14b   :  { %6487 = vmatmul.mubr.msk.f32.gmra.mrb[30].mxu0 %vm1118_vm1, %v1106_v59 }
 0x19e   :  { %v6443_v1 = vpop.f32.mrb[0].mxu0 }
 0x19f   :  { %v8490_v53 = vadd.f32 %v6443_v1, %v8487_v42  ;;  %v1285_v41 = vpop.f32.mrb[1].mxu0 }
 0x1a0   :  { %v8493_v14 = vadd.f32 %v1285_v41, %v8487_v42 }
 0x1a1   :  { %v1769_v44 = vmul.f32 %v8490_v53, %v8490_v53 }
 0x1a2   :  { %v1768_v45 = vmul.f32 %v8493_v14, %v8493_v14  ;;  %6503 = vmatprep.mubr.msk.f32.mxu1 %vm1118_vm1, %v8493_v14 }
 0x1a3   :  { %6504 = vmatmul.mubr.msk.f32.vlgmr.msra.gmra.mrb[0].mxu1 %vm1118_vm1, %v8490_v53 }
 0x1a4   :  { %6565 = vmatprep.mubr.msk.f32.mxu0 %vm1118_vm1, %v1768_v45 }
 0x1a5   :  { %6566 = vmatmul.mubr.msk.f32.vlgmr.msra.gmra.mrb[32].mxu0 %vm1118_vm1, %v1769_v44 }
 0x1a6   :  { %v6446_v40 = vpop.f32.mrb[2].mxu0  ;;  %7098 = vmatpush3.bf16.msra.mxu0 %v8416_v35 }
 0x1a7   :  { %v8506_v55 = vadd.f32 %v6446_v40, %v8487_v42  ;;  %v1295_v46 = vpop.f32.mrb[3].mxu0  ;;  %7100 = vmatprep.subr.bf16.mxu0 %v8418_v39 }
 0x1a8   :  { %v8510_v0 = vadd.f32 %v1295_v46, %v8487_v42 }
 0x1a9   :  { %v1771_v49 = vmul.f32 %v8506_v55, %v8506_v55 }
 0x1aa   :  { %v1770_v56 = vmul.f32 %v8510_v0, %v8510_v0  ;;  %6506 = vmatprep.mubr.msk.f32.mxu1 %vm1118_vm1, %v8510_v0  ;;  %7102 = vmatpush3.bf16.msra.mxu0 %v8418_v39 }
 0x1ab   :  { %6507 = vmatmul.mubr.msk.f32.gmra.mrb[2].mxu1 %vm1118_vm1, %v8506_v55  ;;  %7104 = vmatprep.subr.bf16.mxu0 %v8439_v33 }
 0x1ac   :  { %6568 = vmatprep.mubr.msk.f32.mxu0 %vm1118_vm1, %v1770_v56 }
 0x1ad   :  { %6569 = vmatmul.mubr.msk.f32.gmra.mrb[34].mxu0 %vm1118_vm1, %v1771_v49 }
 0x1ae   :  { %7106 = vmatpush3.bf16.msra.mxu0 %v8439_v33 }
 0x1af   :  { %v6449_v58 = vpop.f32.mrb[4].mxu0  ;;  %6687 = vmatprep.subr.msk.mxu0 %vm1215_vm0, %v8455_v57 }
 0x1b0   :  { %v8529_v12 = vadd.f32 %v6449_v58, %v8487_v42  ;;  %v1305_v48 = vpop.f32.mrb[5].mxu0 }
 0x1b1   :  { %v8532_v2 = vadd.f32 %v1305_v48, %v8487_v42 }
 0x1b2   :  { %6688 = vmatpush3.msk.msra.mxu0 %vm1215_vm0, %v8455_v57  ;;  %v1773_v31 = vmul.f32 %v8529_v12, %v8529_v12 }
 0x1b3   :  { %v1772_v25 = vmul.f32 %v8532_v2, %v8532_v2  ;;  %6509 = vmatprep.mubr.msk.f32.mxu1 %vm1118_vm1, %v8532_v2 }
 0x1b4   :  { %6510 = vmatmul.mubr.msk.f32.gmra.mrb[4].mxu1 %vm1118_vm1, %v8529_v12 }
 0x1b5   :  { %6571 = vmatprep.mubr.msk.f32.mxu0 %vm1118_vm1, %v1772_v25 }
 0x1b6   :  { %6572 = vmatmul.mubr.msk.f32.gmra.mrb[36].mxu0 %vm1118_vm1, %v1773_v31 }
 0x1b9   :  { %v6452_v17 = vpop.f32.mrb[6].mxu0 }
 0x1ba   :  { %v8547_v22 = vadd.f32 %v6452_v17, %v8487_v42  ;;  %v1315_v20 = vpop.f32.mrb[7].mxu0 }
 0x1bb   :  { %v8550_v7 = vadd.f32 %v1315_v20, %v8487_v42 }
 0x1bc   :  { %v1775_v21 = vmul.f32 %v8547_v22, %v8547_v22 }
 0x1bd   :  { %v1774_v28 = vmul.f32 %v8550_v7, %v8550_v7  ;;  %6512 = vmatprep.mubr.msk.f32.mxu1 %vm1118_vm1, %v8550_v7 }
 0x1be   :  { %6513 = vmatmul.mubr.msk.f32.gmra.mrb[6].mxu1 %vm1118_vm1, %v8547_v22 }
 0x1bf   :  { %6574 = vmatprep.mubr.msk.f32.mxu0 %vm1118_vm1, %v1774_v28 }
 0x1c0   :  { %6575 = vmatmul.mubr.msk.f32.gmra.mrb[38].mxu0 %vm1118_vm1, %v1775_v21 }
 0x1c3   :  { %v6455_v9 = vpop.f32.mrb[8].mxu0 }
 0x1c4   :  { %v8563_v23 = vadd.f32 %v6455_v9, %v8487_v42  ;;  %v1325_v5 = vpop.f32.mrb[9].mxu0 }
 0x1c5   :  { %v8566_v51 = vadd.f32 %v1325_v5, %v8487_v42 }
 0x1c6   :  { %v1777_v43 = vmul.f32 %v8563_v23, %v8563_v23 }
 0x1c7   :  { %v1776_v36 = vmul.f32 %v8566_v51, %v8566_v51  ;;  %6515 = vmatprep.mubr.msk.f32.mxu1 %vm1118_vm1, %v8566_v51 }
 0x1c8   :  { %6516 = vmatmul.mubr.msk.f32.gmra.mrb[8].mxu1 %vm1118_vm1, %v8563_v23 }
 0x1c9   :  { %6577 = vmatprep.mubr.msk.f32.mxu0 %vm1118_vm1, %v1776_v36 }
 0x1ca   :  { %6578 = vmatmul.mubr.msk.f32.gmra.mrb[40].mxu0 %vm1118_vm1, %v1777_v43 }
 0x1cc   :  { %v6458_v11 = vpop.f32.mrb[10].mxu0 }
 0x1cd   :  { %v8579_v24 = vadd.f32 %v6458_v11, %v8487_v42  ;;  %v1335_v6 = vpop.f32.mrb[11].mxu0 }
 0x1ce   :  { %v8582_v8 = vadd.f32 %v1335_v6, %v8487_v42 }
 0x1cf   :  { %v1779_v38 = vmul.f32 %v8579_v24, %v8579_v24 }
 0x1d0   :  { %v1778_v52 = vmul.f32 %v8582_v8, %v8582_v8  ;;  %6518 = vmatprep.mubr.msk.f32.mxu1 %vm1118_vm1, %v8582_v8 }
 0x1d1   :  { %6519 = vmatmul.mubr.msk.f32.gmra.mrb[10].mxu1 %vm1118_vm1, %v8579_v24 }
 0x1d2   :  { %6580 = vmatprep.mubr.msk.f32.mxu0 %vm1118_vm1, %v1778_v52 }
 0x1d3   :  { %6581 = vmatmul.mubr.msk.f32.gmra.mrb[42].mxu0 %vm1118_vm1, %v1779_v38 }
 0x1d7   :  { %v6461_v62 = vpop.f32.mrb[12].mxu0 }
 0x1d8   :  { %v8595_v50 = vadd.f32 %v6461_v62, %v8487_v42  ;;  %v1345_v29 = vpop.f32.mrb[13].mxu0 }
 0x1d9   :  { %v8598_v27 = vadd.f32 %v1345_v29, %v8487_v42 }
 0x1da   :  { %v1781_v63 = vmul.f32 %v8595_v50, %v8595_v50 }
 0x1db   :  { %v1780_v54 = vmul.f32 %v8598_v27, %v8598_v27  ;;  %6521 = vmatprep.mubr.msk.f32.mxu1 %vm1118_vm1, %v8598_v27 }
 0x1dc   :  { %6522 = vmatmul.mubr.msk.f32.gmra.mrb[12].mxu1 %vm1118_vm1, %v8595_v50 }
 0x1dd   :  { %6583 = vmatprep.mubr.msk.f32.mxu0 %vm1118_vm1, %v1780_v54 }
 0x1de   :  { %6584 = vmatmul.mubr.msk.f32.gmra.mrb[44].mxu0 %vm1118_vm1, %v1781_v63 }
 0x1df   :  { %v6464_v47 = vpop.f32.mrb[14].mxu0 }
 0x1e0   :  { %v8611_v4 = vadd.f32 %v6464_v47, %v8487_v42  ;;  %v1355_v37 = vpop.f32.mrb[15].mxu0 }
 0x1e1   :  { %v8614_v60 = vadd.f32 %v1355_v37, %v8487_v42 }
 0x1e2   :  { %v1783_v19 = vmul.f32 %v8611_v4, %v8611_v4 }
 0x1e3   :  { %v1782_v32 = vmul.f32 %v8614_v60, %v8614_v60  ;;  %6524 = vmatprep.mubr.msk.f32.mxu1 %vm1118_vm1, %v8614_v60 }
 0x1e4   :  { %6525 = vmatmul.mubr.msk.f32.gmra.mrb[14].mxu1 %vm1118_vm1, %v8611_v4 }
 0x1e5   :  { %6586 = vmatprep.mubr.msk.f32.mxu0 %vm1118_vm1, %v1782_v32 }
 0x1e6   :  { %6587 = vmatmul.mubr.msk.f32.gmra.mrb[46].mxu0 %vm1118_vm1, %v1783_v19 }
 0x1ea   :  { %v6467_v59 = vpop.f32.mrb[16].mxu0 }
 0x1eb   :  { %v8627_v1 = vadd.f32 %v6467_v59, %v8487_v42  ;;  %v1365_v41 = vpop.f32.mrb[17].mxu0 }
 0x1ec   :  { %v8630_v45 = vadd.f32 %v1365_v41, %v8487_v42 }
 0x1ed   :  { %v1785_v40 = vmul.f32 %v8627_v1, %v8627_v1 }
 0x1ee   :  { %v1784_v44 = vmul.f32 %v8630_v45, %v8630_v45  ;;  %6527 = vmatprep.mubr.msk.f32.mxu1 %vm1118_vm1, %v8630_v45 }
 0x1ef   :  { %6528 = vmatmul.mubr.msk.f32.gmra.mrb[16].mxu1 %vm1118_vm1, %v8627_v1 }
 0x1f0   :  { %6589 = vmatprep.mubr.msk.f32.mxu0 %vm1118_vm1, %v1784_v44 }
 0x1f1   :  { %6590 = vmatmul.mubr.msk.f32.gmra.mrb[48].mxu0 %vm1118_vm1, %v1785_v40 }
 0x1f4   :  { %v6470_v46 = vpop.f32.mrb[18].mxu0 }
 0x1f5   :  { %v8643_v56 = vadd.f32 %v6470_v46, %v8487_v42  ;;  %v1375_v49 = vpop.f32.mrb[19].mxu0 }
 0x1f6   :  { %v8646_v58 = vadd.f32 %v1375_v49, %v8487_v42 }
 0x1f7   :  { %v1787_v25 = vmul.f32 %v8643_v56, %v8643_v56 }
 0x1f8   :  { %v1786_v48 = vmul.f32 %v8646_v58, %v8646_v58  ;;  %6530 = vmatprep.mubr.msk.f32.mxu1 %vm1118_vm1, %v8646_v58 }
 0x1f9   :  { %6531 = vmatmul.mubr.msk.f32.gmra.mrb[18].mxu1 %vm1118_vm1, %v8643_v56 }
 0x1fa   :  { %6592 = vmatprep.mubr.msk.f32.mxu0 %vm1118_vm1, %v1786_v48 }
 0x1fb   :  { %6593 = vmatmul.mubr.msk.f32.gmra.mrb[50].mxu0 %vm1118_vm1, %v1787_v25 }
 0x1fe   :  { %v6473_v31 = vpop.f32.mrb[20].mxu0 }
 0x1ff   :  { %v8659_v17 = vadd.f32 %v6473_v31, %v8487_v42  ;;  %v1385_v20 = vpop.f32.mrb[21].mxu0 }
 0x200   :  { %v8662_v28 = vadd.f32 %v1385_v20, %v8487_v42  ;;  %v5791_v20 = vld [vmem:[%s10300_s3 + $0x38] sm:$0xff] }
 0x201   :  { %v1789_v9 = vmul.f32 %v8659_v17, %v8659_v17 }
 0x202   :  { %v1788_v21 = vmul.f32 %v8662_v28, %v8662_v28  ;;  %6533 = vmatprep.mubr.msk.f32.mxu1 %vm1118_vm1, %v8662_v28 }
 0x203   :  { %6534 = vmatmul.mubr.msk.f32.gmra.mrb[20].mxu1 %vm1118_vm1, %v8659_v17 }
 0x204   :  { %6595 = vmatprep.mubr.msk.f32.mxu0 %vm1118_vm1, %v1788_v21  ;;  %v6476_v5 = vpop.f32.mrb[22].mxu0  ;;  %v5792_v21 = vld [vmem:[%s10300_s3 + $0x40] sm:$0xff] }
 0x205   :  { %6596 = vmatmul.mubr.msk.f32.gmra.mrb[52].mxu0 %vm1118_vm1, %v1789_v9  ;;  %v8675_v36 = vadd.f32 %v6476_v5, %v8487_v42  ;;  %v1395_v43 = vpop.f32.mrb[23].mxu0  ;;  %v7083_v9 = vpack.c.bf16 %v5792_v21, %v5791_v20 }
 0x206   :  { %v8678_v11 = vadd.f32 %v1395_v43, %v8487_v42 }
 0x207   :  { %v1791_v38 = vmul.f32 %v8675_v36, %v8675_v36  ;;  %7084 = vmatprep.subr.bf16.mxu1 %v7083_v9 }
 0x208   :  { %v1790_v6 = vmul.f32 %v8678_v11, %v8678_v11  ;;  %6536 = vmatprep.mubr.msk.f32.mxu1 %vm1118_vm1, %v8678_v11  ;;  %v6479_v52 = vpop.f32.mrb[24].mxu0  ;;  %7086 = vmatpush3.bf16.msra.mxu1 %v7083_v9 }
 0x209   :  { %6537 = vmatmul.mubr.msk.f32.gmra.mrb[22].mxu1 %vm1118_vm1, %v8675_v36  ;;  %v8689_v62 = vadd.f32 %v6479_v52, %v8487_v42  ;;  %v1405_v29 = vpop.f32.mrb[25].mxu0 }
 0x20a   :  { %6598 = vmatprep.mubr.msk.f32.mxu0 %vm1118_vm1, %v1790_v6  ;;  %v8693_v54 = vadd.f32 %v1405_v29, %v8487_v42  ;;  %v5794_v29 = vld [vmem:[%s10300_s3 + $0x50] sm:$0xff] }
 0x20b   :  { %6599 = vmatmul.mubr.msk.f32.gmra.mrb[54].mxu0 %vm1118_vm1, %v1791_v38  ;;  %v1793_v37 = vmul.f32 %v8689_v62, %v8689_v62  ;;  %v5793_v38 = vld [vmem:[%s10300_s3 + $0x48] sm:$0xff] }
 0x20c   :  { %v1792_v63 = vmul.f32 %v8693_v54, %v8693_v54  ;;  %6539 = vmatprep.mubr.msk.f32.mxu1 %vm1118_vm1, %v8693_v54  ;;  %v6482_v47 = vpop.f32.mrb[26].mxu0 }
 0x20d   :  { %6540 = vmatmul.mubr.msk.f32.gmra.mrb[24].mxu1 %vm1118_vm1, %v8689_v62  ;;  %v8705_v32 = vadd.f32 %v6482_v47, %v8487_v42  ;;  %v1415_v19 = vpop.f32.mrb[27].mxu0  ;;  %v7087_v47 = vpack.c.bf16 %v5794_v29, %v5793_v38 }
 0x20e   :  { %6601 = vmatprep.mubr.msk.f32.mxu0 %vm1118_vm1, %v1792_v63  ;;  %v8709_v59 = vadd.f32 %v1415_v19, %v8487_v42  ;;  %v5796_v19 = vld [vmem:[%s10300_s3 + $0x60] sm:$0xff] }
 0x20f   :  { %6602 = vmatmul.mubr.msk.f32.gmra.mrb[56].mxu0 %vm1118_vm1, %v1793_v37  ;;  %v1795_v44 = vmul.f32 %v8705_v32, %v8705_v32  ;;  %7088 = vmatprep.subr.bf16.mxu1 %v7087_v47  ;;  %v5795_v37 = vld [vmem:[%s10300_s3 + $0x58] sm:$0xff] }
 0x210   :  { %v1794_v41 = vmul.f32 %v8709_v59, %v8709_v59  ;;  %6542 = vmatprep.mubr.msk.f32.mxu1 %vm1118_vm1, %v8709_v59  ;;  %7090 = vmatpush3.bf16.msra.mxu1 %v7087_v47 }
 0x211   :  { %6543 = vmatmul.mubr.msk.f32.gmra.mrb[26].mxu1 %vm1118_vm1, %v8705_v32 }
 0x212   :  { %6604 = vmatprep.mubr.msk.f32.mxu0 %vm1118_vm1, %v1794_v41  ;;  %v7091_v41 = vpack.c.bf16 %v5796_v19, %v5795_v37 }
 0x213   :  { %6605 = vmatmul.mubr.msk.f32.gmra.mrb[58].mxu0 %vm1118_vm1, %v1795_v44  ;;  %v5797_v44 = vld [vmem:[%s10300_s3 + $0x68] sm:$0x3] }
 0x214   :  { %v6485_v40 = vpop.f32.mrb[28].mxu0  ;;  %7092 = vmatprep.subr.bf16.mxu1 %v7091_v41 }
 0x215   :  { %v8723_v46 = vadd.f32 %v6485_v40, %v8487_v42  ;;  %v1425_v49 = vpop.f32.mrb[29].mxu0  ;;  %7094 = vmatpush3.bf16.msra.mxu1 %v7091_v41 }
 0x216   :  { %v8726_v48 = vadd.f32 %v1425_v49, %v8487_v42  ;;  %6625 = vmatprep.subr.msk.mxu1 %vm1215_vm0, %v5797_v44 }
 0x217   :  { %v1797_v31 = vmul.f32 %v8723_v46, %v8723_v46 }
 0x218   :  { %v1796_v25 = vmul.f32 %v8726_v48, %v8726_v48  ;;  %6545 = vmatprep.mubr.msk.f32.mxu1 %vm1118_vm1, %v8726_v48 }
 0x219   :  { %6546 = vmatmul.mubr.msk.f32.gmra.mrb[28].mxu1 %vm1118_vm1, %v8723_v46 }
 0x21a   :  { %6607 = vmatprep.mubr.msk.f32.mxu0 %vm1118_vm1, %v1796_v25  ;;  %6626 = vmatpush3.msk.msra.mxu1 %vm1215_vm0, %v5797_v44 }
 0x21b   :  { %6608 = vmatmul.mubr.msk.f32.gmra.mrb[60].mxu0 %vm1118_vm1, %v1797_v31  ;;  %7108 = vmatprep.subr.bf16.mxu1 %v8416_v35 }
 0x21e   :  { %v6488_v5 = vpop.f32.mrb[30].mxu0 }
 0x21f   :  { %v8745_v43 = vadd.f32 %v6488_v5, %v8487_v42  ;;  %v1435_v6 = vpop.f32.mrb[31].mxu0 }
 0x220   :  { %v8748_v52 = vadd.f32 %v1435_v6, %v8487_v42 }
 0x221   :  { %v1799_v42 = vmul.f32 %v8745_v43, %v8745_v43 }
 0x222   :  { %v1798_v63 = vmul.f32 %v8748_v52, %v8748_v52  ;;  %6548 = vmatprep.mubr.msk.f32.mxu1 %vm1118_vm1, %v8748_v52 }
 0x223   :  { %6549 = vmatmul.mubr.msk.f32.gmra.mrb[30].mxu1 %vm1118_vm1, %v8745_v43 }
 0x224   :  { %6610 = vmatprep.mubr.msk.f32.mxu0 %vm1118_vm1, %v1798_v63 }
 0x225   :  { %6611 = vmatmul.mubr.msk.f32.gmra.mrb[62].mxu0 %vm1118_vm1, %v1799_v42 }
 0x276   :  { %v6505_v40 = vpop.f32.mrb[0].mxu1 }
 0x277   :  { %v2122_v49 = vmul.f32 %v6505_v40, %v6505_v40  ;;  %v1609_v25 = vpop.f32.mrb[1].mxu1 }
 0x278   :  { %v2121_v31 = vmul.f32 %v1609_v25, %v1609_v25  ;;  %v6567_v20 = vpop.f32.mrb[32].mxu0 }
 0x279   :  { %v2154_v21 = vsub.f32 %v6567_v20, %v2122_v49  ;;  %v1962_v9 = vpop.f32.mrb[33].mxu0  ;;  %v2218_v20 = vsub.f32 %v8490_v53, %v6505_v40  ;;  %v10309_v53 = vsub.s32 6, %v7625_v10 }
 0x27a   :  { %v2153_v5 = vsub.f32 %v1962_v9, %v2121_v31 }
 0x27b   :  { %v2186_v6 = vmax.f32 %v2154_v21, 0.0  ;;  %v8784_v21 = vrot.slane %v8482_v30, %v313_v13  ;;  %v8796_v40 = vrot.slane %v8482_v30, %v10309_v53 }
 0x27c   :  { %v2185_v38 = vmax.f32 %v2153_v5, 0.0 }
 0x27d   :  { %v2250_v29 = vadd.f32 1e-05, %v2186_v6 }
 0x27e   :  { %v6508_v63 = vpop.f32.mrb[2].mxu1  ;;  %v2249_v47 = vadd.f32 1e-05, %v2185_v38 }
 0x27f   :  { %v2124_v42 = vmul.f32 %v6508_v63, %v6508_v63  ;;  %v1619_v37 = vpop.f32.mrb[3].mxu1  ;;  %7237 = vrsqrt.f32 %v2250_v29 }
 0x280   :  { %v2123_v19 = vmul.f32 %v1619_v37, %v1619_v37  ;;  %v6570_v41 = vpop.f32.mrb[34].mxu0  ;;  %7239 = vrsqrt.f32 %v2249_v47 }
 0x281   :  { %v2156_v44 = vsub.f32 %v6570_v41, %v2124_v42  ;;  %v1972_v34 = vpop.f32.mrb[35].mxu0 }
 0x282   :  { %v2155_v3 = vsub.f32 %v1972_v34, %v2123_v19 }
 0x283   :  { %v2188_v61 = vmax.f32 %v2156_v44, 0.0 }
 0x284   :  { %v2187_v18 = vmax.f32 %v2155_v3, 0.0 }
 0x285   :  { %v2252_v15 = vadd.f32 1e-05, %v2188_v61  ;;  %v2217_v61 = vsub.f32 %v8493_v14, %v1609_v25 }
 0x286   :  { %v2251_v49 = vadd.f32 1e-05, %v2187_v18 }
 0x287   :  { %7241 = vrsqrt.f32 %v2252_v15  ;;  %v8778_v31 = vpop.f32.mrb[4].mxu1 }
 0x288   :  { %7243 = vrsqrt.f32 %v2251_v49  ;;  %v2126_v9 = vmul.f32 %v8778_v31, %v8778_v31  ;;  %v8788_v5 = vpop.f32.mrb[5].mxu1  ;;  %v2220_v49 = vsub.f32 %v8506_v55, %v6508_v63 }
 0x289   :  { %v7238_v34 = vpop.eup %7237  ;;  %v2125_v15 = vmul.f32 %v8788_v5, %v8788_v5  ;;  %v6573_v18 = vpop.f32.mrb[36].mxu0 }
 0x28a   :  { %v7240_v3 = vpop.eup %7239  ;;  %v2314_v6 = vmul.f32 %v7238_v34, %v2218_v20  ;;  %v2158_v13 = vsub.f32 %v6573_v18, %v2126_v9  ;;  %v1982_v38 = vpop.f32.mrb[37].mxu0  ;;  %v2219_v9 = vsub.f32 %v8510_v0, %v1619_v37 }
 0x28b   :  { %v2313_v29 = vmul.f32 %v7240_v3, %v2217_v61  ;;  %v2157_v47 = vsub.f32 %v1982_v38, %v2125_v15 }
 0x28c   :  { %v2350_v42 = vmul.f32 %v8784_v21, %v2314_v6  ;;  %v2190_v19 = vmax.f32 %v2158_v13, 0.0 }
 0x28d   :  { %v2189_v41 = vmax.f32 %v2157_v47, 0.0  ;;  %v2349_v14 = vmul.f32 %v8784_v21, %v2313_v29 }
 0x28e   :  { %v2386_v25 = vadd.f32 %v8796_v40, %v2350_v42  ;;  %v2254_v44 = vadd.f32 1e-05, %v2190_v19 }
 0x28f   :  { %v2253_v20 = vadd.f32 1e-05, %v2189_v41  ;;  %v2385_v34 = vadd.f32 %v8796_v40, %v2349_v14 }
 0x290   :  { %v2418_v53 = vmax.f32 %v2386_v25, 0.0  ;;  %7245 = vrsqrt.f32 %v2254_v44 }
 0x291   :  { %v7242_v30 = vpop.eup %7241  ;;  %v8804_v61 = vpop.f32.mrb[6].mxu1  ;;  %7247 = vrsqrt.f32 %v2253_v20  ;;  %v2417_v38 = vmax.f32 %v2385_v34, 0.0 }
 0x292   :  { %v7244_v15 = vpop.eup %7243  ;;  %v2316_v18 = vmul.f32 %v7242_v30, %v2220_v49  ;;  %v2128_v3 = vmul.f32 %v8804_v61, %v8804_v61  ;;  %v8808_v6 = vpop.f32.mrb[7].mxu1  ;;  %v2450_v0 = vmul.f32 %v2418_v53, %v2418_v53 }
 0x293   :  { %v2315_v13 = vmul.f32 %v7244_v15, %v2219_v9  ;;  %v2127_v55 = vmul.f32 %v8808_v6, %v8808_v6  ;;  %v6576_v63 = vpop.f32.mrb[38].mxu0  ;;  %v2449_v19 = vmul.f32 %v2417_v38, %v2417_v38 }
 0x294   :  { %v2160_v29 = vsub.f32 %v6576_v63, %v2128_v3  ;;  %v1992_v47 = vpop.f32.mrb[39].mxu0  ;;  %v2352_v37 = vmul.f32 %v8784_v21, %v2316_v18  ;;  %v2482_v9 = vmul.f32 %v2450_v0, %v2418_v53  ;;  %v2222_v18 = vsub.f32 %v8529_v12, %v8778_v31 }
 0x295   :  { %v2159_v42 = vsub.f32 %v1992_v47, %v2127_v55  ;;  %v2351_v41 = vmul.f32 %v8784_v21, %v2315_v13  ;;  %v2481_v49 = vmul.f32 %v2449_v19, %v2417_v38  ;;  %v2221_v63 = vsub.f32 %v8532_v2, %v8788_v5 }
 0x296   :  { %v2192_v14 = vmax.f32 %v2160_v29, 0.0  ;;  %v2388_v25 = vadd.f32 %v8796_v40, %v2352_v37 }
 0x297   :  { %v2191_v44 = vmax.f32 %v2159_v42, 0.0  ;;  %v2387_v20 = vadd.f32 %v8796_v40, %v2351_v41  ;;  %6627 = vmatprep.mubr.msk.f32.mxu1 %vm1118_vm1, %v2481_v49 }
 0x298   :  { %v2256_v30 = vadd.f32 1e-05, %v2192_v14  ;;  %v2420_v15 = vmax.f32 %v2388_v25, 0.0  ;;  %6628 = vmatmul.mubr.msk.f32.vlgmr.msra.gmra.mrb[32].mxu1 %vm1118_vm1, %v2482_v9 }
 0x299   :  { %v2255_v34 = vadd.f32 1e-05, %v2191_v44  ;;  %v2419_v3 = vmax.f32 %v2387_v20, 0.0  ;;  %7110 = vmatpush3.bf16.msra.mxu1 %v8416_v35 }
 0x29a   :  { %7249 = vrsqrt.f32 %v2256_v30  ;;  %v2452_v13 = vmul.f32 %v2420_v15, %v2420_v15  ;;  %v7246_v55 = vpop.eup %7245  ;;  %7112 = vmatprep.subr.bf16.mxu1 %v8418_v39 }
 0x29b   :  { %7251 = vrsqrt.f32 %v2255_v34  ;;  %v8822_v38 = vpop.f32.mrb[8].mxu1  ;;  %v2451_v53 = vmul.f32 %v2419_v3, %v2419_v3  ;;  %v7248_v29 = vpop.eup %7247  ;;  %v2318_v47 = vmul.f32 %v7246_v55, %v2222_v18 }
 0x29c   :  { %v2130_v0 = vmul.f32 %v8822_v38, %v8822_v38  ;;  %v8827_v12 = vpop.f32.mrb[9].mxu1  ;;  %v2317_v31 = vmul.f32 %v7248_v29, %v2221_v63  ;;  %v2484_v41 = vmul.f32 %v2452_v13, %v2420_v15  ;;  %v2223_v63 = vsub.f32 %v8550_v7, %v8808_v6 }
 0x29d   :  { %v2129_v37 = vmul.f32 %v8827_v12, %v8827_v12  ;;  %v6579_v2 = vpop.f32.mrb[40].mxu0  ;;  %v2483_v5 = vmul.f32 %v2451_v53, %v2419_v3  ;;  %v2354_v14 = vmul.f32 %v8784_v21, %v2318_v47  ;;  %7114 = vmatpush3.bf16.msra.mxu1 %v8418_v39  ;;  %v2224_v3 = vsub.f32 %v8547_v22, %v8804_v61 }
 0x29e   :  { %v2162_v42 = vsub.f32 %v6579_v2, %v2130_v0  ;;  %v2002_v19 = vpop.f32.mrb[41].mxu0  ;;  %v2353_v44 = vmul.f32 %v8784_v21, %v2317_v31  ;;  %7116 = vmatprep.subr.bf16.mxu1 %v8439_v33 }
 0x29f   :  { %v2161_v25 = vsub.f32 %v2002_v19, %v2129_v37  ;;  %6630 = vmatprep.mubr.msk.f32.mxu1 %vm1118_vm1, %v2483_v5  ;;  %v2390_v20 = vadd.f32 %v8796_v40, %v2354_v14 }
 0x2a0   :  { %v2194_v49 = vmax.f32 %v2162_v42, 0.0  ;;  %6631 = vmatmul.mubr.msk.f32.gmra.mrb[34].mxu1 %vm1118_vm1, %v2484_v41  ;;  %v2389_v9 = vadd.f32 %v8796_v40, %v2353_v44 }
 0x2a1   :  { %v2193_v30 = vmax.f32 %v2161_v25, 0.0  ;;  %v2422_v34 = vmax.f32 %v2390_v20, 0.0  ;;  %7118 = vmatpush3.bf16.msra.mxu1 %v8439_v33 }
 0x2a2   :  { %v2258_v15 = vadd.f32 1e-05, %v2194_v49  ;;  %v2421_v13 = vmax.f32 %v2389_v9, 0.0  ;;  %6749 = vmatprep.subr.msk.mxu1 %vm1215_vm0, %v8455_v57 }
 0x2a3   :  { %v2257_v18 = vadd.f32 1e-05, %v2193_v30  ;;  %v2454_v0 = vmul.f32 %v2422_v34, %v2422_v34 }
 0x2a4   :  { %v7250_v55 = vpop.eup %7249  ;;  %7253 = vrsqrt.f32 %v2258_v15  ;;  %v8845_v53 = vpop.f32.mrb[10].mxu1  ;;  %v2453_v6 = vmul.f32 %v2421_v13, %v2421_v13 }
 0x2a5   :  { %v7252_v29 = vpop.eup %7251  ;;  %v2320_v47 = vmul.f32 %v7250_v55, %v2224_v3  ;;  %7255 = vrsqrt.f32 %v2257_v18  ;;  %v2132_v22 = vmul.f32 %v8845_v53, %v8845_v53  ;;  %v8851_v61 = vpop.f32.mrb[11].mxu1  ;;  %6750 = vmatpush3.msk.msra.mxu1 %vm1215_vm0, %v8455_v57  ;;  %v2486_v44 = vmul.f32 %v2454_v0, %v2422_v34 }
 0x2a6   :  { %v2319_v31 = vmul.f32 %v7252_v29, %v2223_v63  ;;  %v2131_v37 = vmul.f32 %v8851_v61, %v8851_v61  ;;  %v6582_v7 = vpop.f32.mrb[42].mxu0  ;;  %v2485_v41 = vmul.f32 %v2453_v6, %v2421_v13  ;;  %7132 = vmatprep.subr.bf16.mxu1 %v8416_v35  ;;  %v2226_v18 = vsub.f32 %v8563_v23, %v8822_v38 }
 0x2a7   :  { %v2164_v2 = vsub.f32 %v6582_v7, %v2132_v22  ;;  %v2012_v5 = vpop.f32.mrb[43].mxu0  ;;  %v2356_v42 = vmul.f32 %v8784_v21, %v2320_v47  ;;  %v2225_v34 = vsub.f32 %v8566_v51, %v8827_v12 }
 0x2a8   :  { %v2163_v19 = vsub.f32 %v2012_v5, %v2131_v37  ;;  %v2355_v14 = vmul.f32 %v8784_v21, %v2319_v31  ;;  %6633 = vmatprep.mubr.msk.f32.mxu1 %vm1118_vm1, %v2485_v41 }
 0x2a9   :  { %v2196_v25 = vmax.f32 %v2164_v2, 0.0  ;;  %v2392_v49 = vadd.f32 %v8796_v40, %v2356_v42  ;;  %6634 = vmatmul.mubr.msk.f32.gmra.mrb[36].mxu1 %vm1118_vm1, %v2486_v44 }
 0x2aa   :  { %v2195_v20 = vmax.f32 %v2163_v19, 0.0  ;;  %v2391_v30 = vadd.f32 %v8796_v40, %v2355_v14 }
 0x2ab   :  { %v2260_v9 = vadd.f32 1e-05, %v2196_v25  ;;  %v2424_v15 = vmax.f32 %v2392_v49, 0.0  ;;  %v2228_v49 = vsub.f32 %v8579_v24, %v8845_v53 }
 0x2ac   :  { %v2259_v57 = vadd.f32 1e-05, %v2195_v20  ;;  %v2423_v3 = vmax.f32 %v2391_v30, 0.0 }
 0x2ad   :  { %7257 = vrsqrt.f32 %v2260_v9  ;;  %v2456_v13 = vmul.f32 %v2424_v15, %v2424_v15 }
 0x2ae   :  { %v7254_v55 = vpop.eup %7253  ;;  %7259 = vrsqrt.f32 %v2259_v57  ;;  %v2455_v63 = vmul.f32 %v2423_v3, %v2423_v3 }
 0x2af   :  { %v7256_v29 = vpop.eup %7255  ;;  %v2322_v47 = vmul.f32 %v7254_v55, %v2226_v18  ;;  %v8868_v22 = vpop.f32.mrb[12].mxu1  ;;  %v2488_v6 = vmul.f32 %v2456_v13, %v2424_v15  ;;  %v2227_v15 = vsub.f32 %v8582_v8, %v8851_v61 }
 0x2b0   :  { %v2321_v0 = vmul.f32 %v7256_v29, %v2225_v34  ;;  %v2134_v31 = vmul.f32 %v8868_v22, %v8868_v22  ;;  %v8872_v37 = vpop.f32.mrb[13].mxu1  ;;  %v2487_v7 = vmul.f32 %v2455_v63, %v2423_v3 }
 0x2b1   :  { %v2133_v23 = vmul.f32 %v8872_v37, %v8872_v37  ;;  %v6585_v38 = vpop.f32.mrb[44].mxu0  ;;  %v2358_v51 = vmul.f32 %v8784_v21, %v2322_v47 }
 0x2b2   :  { %v2166_v12 = vsub.f32 %v6585_v38, %v2134_v31  ;;  %v2022_v2 = vpop.f32.mrb[45].mxu0  ;;  %6636 = vmatprep.mubr.msk.f32.mxu1 %vm1118_vm1, %v2487_v7  ;;  %v2357_v5 = vmul.f32 %v8784_v21, %v2321_v0 }
 0x2b3   :  { %v2165_v42 = vsub.f32 %v2022_v2, %v2133_v23  ;;  %6637 = vmatmul.mubr.msk.f32.gmra.mrb[38].mxu1 %vm1118_vm1, %v2488_v6  ;;  %v2394_v19 = vadd.f32 %v8796_v40, %v2358_v51 }
 0x2b4   :  { %v2198_v41 = vmax.f32 %v2166_v12, 0.0  ;;  %v2393_v14 = vadd.f32 %v8796_v40, %v2357_v5 }
 0x2b5   :  { %v2197_v25 = vmax.f32 %v2165_v42, 0.0  ;;  %v2426_v44 = vmax.f32 %v2394_v19, 0.0 }
 0x2b6   :  { %v2262_v20 = vadd.f32 1e-05, %v2198_v41  ;;  %v2425_v30 = vmax.f32 %v2393_v14, 0.0  ;;  %v2230_v14 = vsub.f32 %v8595_v50, %v8868_v22 }
 0x2b7   :  { %v7258_v9 = vpop.eup %7257  ;;  %v2261_v57 = vadd.f32 1e-05, %v2197_v25  ;;  %v2458_v3 = vmul.f32 %v2426_v44, %v2426_v44  ;;  %v8886_v55 = vpop.f32.mrb[14].mxu1 }
 0x2b8   :  { %v7260_v18 = vpop.eup %7259  ;;  %v2324_v13 = vmul.f32 %v7258_v9, %v2228_v49  ;;  %7261 = vrsqrt.f32 %v2262_v20  ;;  %v2457_v34 = vmul.f32 %v2425_v30, %v2425_v30  ;;  %v2136_v29 = vmul.f32 %v8886_v55, %v8886_v55  ;;  %v1679_v24 = vpop.f32.mrb[15].mxu1 }
 0x2b9   :  { %v2323_v63 = vmul.f32 %v7260_v18, %v2227_v15  ;;  %7263 = vrsqrt.f32 %v2261_v57  ;;  %v2135_v53 = vmul.f32 %v1679_v24, %v1679_v24  ;;  %v6588_v47 = vpop.f32.mrb[46].mxu0  ;;  %v2490_v8 = vmul.f32 %v2458_v3, %v2426_v44 }
 0x2ba   :  { %v2489_v0 = vmul.f32 %v2457_v34, %v2425_v30  ;;  %v2168_v31 = vsub.f32 %v6588_v47, %v2136_v29  ;;  %v2032_v7 = vpop.f32.mrb[47].mxu0  ;;  %v2360_v23 = vmul.f32 %v8784_v21, %v2324_v13  ;;  %v2229_v20 = vsub.f32 %v8598_v27, %v8872_v37 }
 0x2bb   :  { %v2359_v61 = vmul.f32 %v8784_v21, %v2323_v63  ;;  %v2167_v38 = vsub.f32 %v2032_v7, %v2135_v53 }
 0x2bc   :  { %6639 = vmatprep.mubr.msk.f32.mxu1 %vm1118_vm1, %v2489_v0  ;;  %v2200_v6 = vmax.f32 %v2168_v31, 0.0  ;;  %v2396_v12 = vadd.f32 %v8796_v40, %v2360_v23 }
 0x2bd   :  { %6640 = vmatmul.mubr.msk.f32.gmra.mrb[40].mxu1 %vm1118_vm1, %v2490_v8  ;;  %v2395_v51 = vadd.f32 %v8796_v40, %v2359_v61  ;;  %v2199_v2 = vmax.f32 %v2167_v38, 0.0  ;;  %v2232_v61 = vsub.f32 %v8611_v4, %v8886_v55 }
 0x2be   :  { %v2264_v5 = vadd.f32 1e-05, %v2200_v6  ;;  %v2428_v19 = vmax.f32 %v2396_v12, 0.0 }
 0x2bf   :  { %v2427_v42 = vmax.f32 %v2395_v51, 0.0  ;;  %v2263_v41 = vadd.f32 1e-05, %v2199_v2  ;;  %v2231_v51 = vsub.f32 %v8614_v60, %v1679_v24 }
 0x2c0   :  { %7265 = vrsqrt.f32 %v2264_v5  ;;  %v2460_v44 = vmul.f32 %v2428_v19, %v2428_v19 }
 0x2c1   :  { %v2459_v25 = vmul.f32 %v2427_v42, %v2427_v42  ;;  %7267 = vrsqrt.f32 %v2263_v41 }
 0x2c2   :  { %v7262_v49 = vpop.eup %7261  ;;  %v8900_v15 = vpop.f32.mrb[16].mxu1  ;;  %v2492_v50 = vmul.f32 %v2460_v44, %v2428_v19 }
 0x2c3   :  { %v7264_v30 = vpop.eup %7263  ;;  %v2326_v9 = vmul.f32 %v7262_v49, %v2230_v14  ;;  %v2491_v57 = vmul.f32 %v2459_v25, %v2427_v42  ;;  %v2138_v18 = vmul.f32 %v8900_v15, %v8900_v15  ;;  %v8904_v13 = vpop.f32.mrb[17].mxu1 }
 0x2c4   :  { %v2325_v3 = vmul.f32 %v7264_v30, %v2229_v20  ;;  %v2137_v22 = vmul.f32 %v8904_v13, %v8904_v13  ;;  %v6591_v34 = vpop.f32.mrb[48].mxu0 }
 0x2c5   :  { %6642 = vmatprep.mubr.msk.f32.mxu1 %vm1118_vm1, %v2491_v57  ;;  %v2362_v27 = vmul.f32 %v8784_v21, %v2326_v9  ;;  %v2170_v37 = vsub.f32 %v6591_v34, %v2138_v18  ;;  %v2042_v63 = vpop.f32.mrb[49].mxu0 }
 0x2c6   :  { %6643 = vmatmul.mubr.msk.f32.gmra.mrb[42].mxu1 %vm1118_vm1, %v2492_v50  ;;  %v2361_v29 = vmul.f32 %v8784_v21, %v2325_v3  ;;  %v2169_v53 = vsub.f32 %v2042_v63, %v2137_v22 }
 0x2c7   :  { %v2398_v47 = vadd.f32 %v8796_v40, %v2362_v27  ;;  %v2202_v0 = vmax.f32 %v2170_v37, 0.0 }
 0x2c8   :  { %v2397_v31 = vadd.f32 %v8796_v40, %v2361_v29  ;;  %v2201_v7 = vmax.f32 %v2169_v53, 0.0  ;;  %v2234_v29 = vsub.f32 %v8627_v1, %v8900_v15 }
 0x2c9   :  { %v2430_v8 = vmax.f32 %v2398_v47, 0.0  ;;  %v2266_v23 = vadd.f32 1e-05, %v2202_v0 }
 0x2ca   :  { %v2429_v38 = vmax.f32 %v2397_v31, 0.0  ;;  %v7266_v6 = vpop.eup %7265  ;;  %v2265_v12 = vadd.f32 1e-05, %v2201_v7  ;;  %v2233_v31 = vsub.f32 %v8630_v45, %v8904_v13 }
 0x2cb   :  { %v2462_v2 = vmul.f32 %v2430_v8, %v2430_v8  ;;  %v7268_v5 = vpop.eup %7267  ;;  %v2328_v42 = vmul.f32 %v7266_v6, %v2232_v61  ;;  %7269 = vrsqrt.f32 %v2266_v23 }
 0x2cc   :  { %v8917_v19 = vpop.f32.mrb[18].mxu1  ;;  %v2461_v41 = vmul.f32 %v2429_v38, %v2429_v38  ;;  %v2327_v14 = vmul.f32 %v7268_v5, %v2231_v51  ;;  %7271 = vrsqrt.f32 %v2265_v12 }
 0x2cd   :  { %v2140_v25 = vmul.f32 %v8917_v19, %v8917_v19  ;;  %v8921_v44 = vpop.f32.mrb[19].mxu1  ;;  %v2494_v20 = vmul.f32 %v2462_v2, %v2430_v8  ;;  %v2364_v9 = vmul.f32 %v8784_v21, %v2328_v42 }
 0x2ce   :  { %v2139_v4 = vmul.f32 %v8921_v44, %v8921_v44  ;;  %v6594_v55 = vpop.f32.mrb[50].mxu0  ;;  %v2493_v60 = vmul.f32 %v2461_v41, %v2429_v38  ;;  %v2363_v30 = vmul.f32 %v8784_v21, %v2327_v14 }
 0x2cf   :  { %v2172_v24 = vsub.f32 %v6594_v55, %v2140_v25  ;;  %v2052_v49 = vpop.f32.mrb[51].mxu0  ;;  %v2400_v50 = vadd.f32 %v8796_v40, %v2364_v9 }
 0x2d0   :  { %v2171_v57 = vsub.f32 %v2052_v49, %v2139_v4  ;;  %6645 = vmatprep.mubr.msk.f32.mxu1 %vm1118_vm1, %v2493_v60  ;;  %v2399_v18 = vadd.f32 %v8796_v40, %v2363_v30 }
 0x2d1   :  { %v2204_v3 = vmax.f32 %v2172_v24, 0.0  ;;  %6646 = vmatmul.mubr.msk.f32.gmra.mrb[44].mxu1 %vm1118_vm1, %v2494_v20  ;;  %v2432_v37 = vmax.f32 %v2400_v50, 0.0  ;;  %v2236_v24 = vsub.f32 %v8643_v56, %v8917_v19 }
 0x2d2   :  { %v2203_v22 = vmax.f32 %v2171_v57, 0.0  ;;  %v2431_v27 = vmax.f32 %v2399_v18, 0.0 }
 0x2d3   :  { %v2268_v34 = vadd.f32 1e-05, %v2204_v3  ;;  %v2464_v47 = vmul.f32 %v2432_v37, %v2432_v37  ;;  %v2235_v3 = vsub.f32 %v8646_v58, %v8921_v44 }
 0x2d4   :  { %v2267_v63 = vadd.f32 1e-05, %v2203_v22  ;;  %v2463_v53 = vmul.f32 %v2431_v27, %v2431_v27 }
 0x2d5   :  { %7273 = vrsqrt.f32 %v2268_v34  ;;  %v7270_v0 = vpop.eup %7269  ;;  %v2496_v1 = vmul.f32 %v2464_v47, %v2432_v37 }
 0x2d6   :  { %7275 = vrsqrt.f32 %v2267_v63  ;;  %v7272_v7 = vpop.eup %7271  ;;  %v2330_v8 = vmul.f32 %v7270_v0, %v2234_v29  ;;  %v8935_v61 = vpop.f32.mrb[20].mxu1  ;;  %v2495_v23 = vmul.f32 %v2463_v53, %v2431_v27 }
 0x2d7   :  { %v2329_v38 = vmul.f32 %v7272_v7, %v2233_v31  ;;  %v2142_v6 = vmul.f32 %v8935_v61, %v8935_v61  ;;  %v8939_v51 = vpop.f32.mrb[21].mxu1 }
 0x2d8   :  { %v2141_v15 = vmul.f32 %v8939_v51, %v8939_v51  ;;  %v6597_v12 = vpop.f32.mrb[52].mxu0  ;;  %6648 = vmatprep.mubr.msk.f32.mxu1 %vm1118_vm1, %v2495_v23  ;;  %v2366_v45 = vmul.f32 %v8784_v21, %v2330_v8 }
 0x2d9   :  { %v2174_v13 = vsub.f32 %v6597_v12, %v2142_v6  ;;  %v2062_v2 = vpop.f32.mrb[53].mxu0  ;;  %6649 = vmatmul.mubr.msk.f32.gmra.mrb[46].mxu1 %vm1118_vm1, %v2496_v1  ;;  %v2365_v5 = vmul.f32 %v8784_v21, %v2329_v38 }
 0x2da   :  { %v2173_v42 = vsub.f32 %v2062_v2, %v2141_v15  ;;  %v2402_v41 = vadd.f32 %v8796_v40, %v2366_v45 }
 0x2db   :  { %v2206_v14 = vmax.f32 %v2174_v13, 0.0  ;;  %v2401_v25 = vadd.f32 %v8796_v40, %v2365_v5 }
 0x2dc   :  { %v2205_v4 = vmax.f32 %v2173_v42, 0.0  ;;  %v8949_v55 = vpop.f32.mrb[22].mxu1  ;;  %v2434_v60 = vmax.f32 %v2402_v41, 0.0 }
 0x2dd   :  { %v2270_v49 = vadd.f32 1e-05, %v2206_v14  ;;  %v2144_v20 = vmul.f32 %v8949_v55, %v8949_v55  ;;  %v8955_v30 = vpop.f32.mrb[23].mxu1  ;;  %v2433_v9 = vmax.f32 %v2401_v25, 0.0 }
 0x2de   :  { %v2269_v18 = vadd.f32 1e-05, %v2205_v4  ;;  %v2143_v50 = vmul.f32 %v8955_v30, %v8955_v30  ;;  %v6600_v22 = vpop.f32.mrb[54].mxu0  ;;  %v2466_v34 = vmul.f32 %v2434_v60, %v2434_v60 }
 0x2df   :  { %v7274_v57 = vpop.eup %7273  ;;  %7277 = vrsqrt.f32 %v2270_v49  ;;  %v2176_v56 = vsub.f32 %v6600_v22, %v2144_v20  ;;  %v2072_v19 = vpop.f32.mrb[55].mxu0  ;;  %v2465_v63 = vmul.f32 %v2433_v9, %v2433_v9 }
 0x2e0   :  { %v7276_v27 = vpop.eup %7275  ;;  %v2332_v37 = vmul.f32 %v7274_v57, %v2236_v24  ;;  %7279 = vrsqrt.f32 %v2269_v18  ;;  %v2175_v53 = vsub.f32 %v2072_v19, %v2143_v50  ;;  %v8961_v47 = vpop.f32.mrb[24].mxu1  ;;  %v2498_v38 = vmul.f32 %v2466_v34, %v2434_v60 }
 0x2e1   :  { %v2331_v29 = vmul.f32 %v7276_v27, %v2235_v3  ;;  %v2208_v0 = vmax.f32 %v2176_v56, 0.0  ;;  %v2146_v58 = vmul.f32 %v8961_v47, %v8961_v47  ;;  %v8965_v44 = vpop.f32.mrb[25].mxu1  ;;  %v2497_v31 = vmul.f32 %v2465_v63, %v2433_v9 }
 0x2e2   :  { %v2207_v7 = vmax.f32 %v2175_v53, 0.0  ;;  %v2145_v8 = vmul.f32 %v8965_v44, %v8965_v44  ;;  %v6603_v23 = vpop.f32.mrb[56].mxu0  ;;  %v2368_v45 = vmul.f32 %v8784_v21, %v2332_v37  ;;  %v2238_v18 = vsub.f32 %v8659_v17, %v8935_v61 }
 0x2e3   :  { %v2367_v6 = vmul.f32 %v8784_v21, %v2331_v29  ;;  %v2272_v1 = vadd.f32 1e-05, %v2208_v0  ;;  %6651 = vmatprep.mubr.msk.f32.mxu1 %vm1118_vm1, %v2497_v31  ;;  %v2178_v15 = vsub.f32 %v6603_v23, %v2146_v58  ;;  %v2082_v12 = vpop.f32.mrb[57].mxu0  ;;  %v2237_v50 = vsub.f32 %v8662_v28, %v8939_v51 }
 0x2e4   :  { %v2271_v13 = vadd.f32 1e-05, %v2207_v7  ;;  %6652 = vmatmul.mubr.msk.f32.gmra.mrb[48].mxu1 %vm1118_vm1, %v2498_v38  ;;  %v2177_v2 = vsub.f32 %v2082_v12, %v2145_v8  ;;  %v8973_v5 = vpop.f32.mrb[26].mxu1  ;;  %v2404_v57 = vadd.f32 %v8796_v40, %v2368_v45  ;;  %v2240_v23 = vsub.f32 %v8675_v36, %v8949_v55 }
 0x2e5   :  { %v2403_v42 = vadd.f32 %v8796_v40, %v2367_v6  ;;  %7281 = vrsqrt.f32 %v2272_v1  ;;  %v2210_v41 = vmax.f32 %v2178_v15, 0.0  ;;  %v2148_v14 = vmul.f32 %v8973_v5, %v8973_v5  ;;  %v8978_v25 = vpop.f32.mrb[27].mxu1 }
 0x2e6   :  { %7283 = vrsqrt.f32 %v2271_v13  ;;  %v2209_v4 = vmax.f32 %v2177_v2, 0.0  ;;  %v2147_v60 = vmul.f32 %v8978_v25, %v8978_v25  ;;  %v6606_v24 = vpop.f32.mrb[58].mxu0  ;;  %v2436_v19 = vmax.f32 %v2404_v57, 0.0 }
 0x2e7   :  { %v2274_v49 = vadd.f32 1e-05, %v2210_v41  ;;  %v2435_v20 = vmax.f32 %v2403_v42, 0.0  ;;  %v2180_v9 = vsub.f32 %v6606_v24, %v2148_v14  ;;  %v2092_v3 = vpop.f32.mrb[59].mxu0  ;;  %v2239_v42 = vsub.f32 %v8678_v11, %v8955_v30 }
 0x2e8   :  { %v2273_v22 = vadd.f32 1e-05, %v2209_v4  ;;  %v2179_v34 = vsub.f32 %v2092_v3, %v2147_v60  ;;  %v2468_v7 = vmul.f32 %v2436_v19, %v2436_v19  ;;  %v2241_v11 = vsub.f32 %v8693_v54, %v8965_v44 }
 0x2e9   :  { %v7278_v27 = vpop.eup %7277  ;;  %7285 = vrsqrt.f32 %v2274_v49  ;;  %v2467_v37 = vmul.f32 %v2435_v20, %v2435_v20  ;;  %v2212_v56 = vmax.f32 %v2180_v9, 0.0  ;;  %v2243_v54 = vsub.f32 %v8709_v59, %v8978_v25 }
 0x2ea   :  { %v7280_v63 = vpop.eup %7279  ;;  %v2334_v29 = vmul.f32 %v7278_v27, %v2238_v18  ;;  %7287 = vrsqrt.f32 %v2273_v22  ;;  %v2211_v53 = vmax.f32 %v2179_v34, 0.0  ;;  %v2500_v38 = vmul.f32 %v2468_v7, %v2436_v19 }
 0x2eb   :  { %v2333_v0 = vmul.f32 %v7280_v63, %v2237_v50  ;;  %v2499_v58 = vmul.f32 %v2467_v37, %v2435_v20  ;;  %v2276_v31 = vadd.f32 1e-05, %v2212_v56  ;;  %v2242_v20 = vsub.f32 %v8689_v62, %v8961_v47 }
 0x2ec   :  { %v8987_v8 = vpop.f32.mrb[28].mxu1  ;;  %v2275_v17 = vadd.f32 1e-05, %v2211_v53  ;;  %v2370_v51 = vmul.f32 %v8784_v21, %v2334_v29  ;;  %v2244_v19 = vsub.f32 %v8705_v32, %v8973_v5 }
 0x2ed   :  { %v2150_v28 = vmul.f32 %v8987_v8, %v8987_v8  ;;  %v8991_v61 = vpop.f32.mrb[29].mxu1  ;;  %6654 = vmatprep.mubr.msk.f32.mxu1 %vm1118_vm1, %v2499_v58  ;;  %7289 = vrsqrt.f32 %v2276_v31  ;;  %v2369_v15 = vmul.f32 %v8784_v21, %v2333_v0 }
 0x2ee   :  { %v2149_v6 = vmul.f32 %v8991_v61, %v8991_v61  ;;  %v6609_v1 = vpop.f32.mrb[60].mxu0  ;;  %7291 = vrsqrt.f32 %v2275_v17  ;;  %v2406_v45 = vadd.f32 %v8796_v40, %v2370_v51  ;;  %6655 = vmatmul.mubr.msk.f32.gmra.mrb[50].mxu1 %vm1118_vm1, %v2500_v38 }
 0x2ef   :  { %v2182_v12 = vsub.f32 %v6609_v1, %v2150_v28  ;;  %v2102_v13 = vpop.f32.mrb[61].mxu0  ;;  %v7282_v2 = vpop.eup %7281  ;;  %v2405_v14 = vadd.f32 %v8796_v40, %v2369_v15 }
 0x2f0   :  { %v2181_v36 = vsub.f32 %v2102_v13, %v2149_v6  ;;  %v7284_v55 = vpop.eup %7283  ;;  %v2336_v41 = vmul.f32 %v7282_v2, %v2240_v23  ;;  %v2438_v60 = vmax.f32 %v2406_v45, 0.0 }
 0x2f1   :  { %v2214_v4 = vmax.f32 %v2182_v12, 0.0  ;;  %v2335_v24 = vmul.f32 %v7284_v55, %v2239_v42  ;;  %v2437_v9 = vmax.f32 %v2405_v14, 0.0 }
 0x2f2   :  { %v2213_v49 = vmax.f32 %v2181_v36, 0.0  ;;  %v2372_v3 = vmul.f32 %v8784_v21, %v2336_v41  ;;  %v2470_v30 = vmul.f32 %v2438_v60, %v2438_v60 }
 0x2f3   :  { %v2278_v57 = vadd.f32 1e-05, %v2214_v4  ;;  %v7286_v18 = vpop.eup %7285  ;;  %v2371_v22 = vmul.f32 %v8784_v21, %v2335_v24  ;;  %v2469_v37 = vmul.f32 %v2437_v9, %v2437_v9  ;;  %v2246_v24 = vsub.f32 %v8723_v46, %v8987_v8 }
 0x2f4   :  { %v2277_v50 = vadd.f32 1e-05, %v2213_v49  ;;  %v7288_v34 = vpop.eup %7287  ;;  %v2338_v27 = vmul.f32 %v7286_v18, %v2242_v20  ;;  %v2408_v47 = vadd.f32 %v8796_v40, %v2372_v3  ;;  %v2502_v0 = vmul.f32 %v2470_v30, %v2438_v60 }
 0x2f5   :  { %7293 = vrsqrt.f32 %v2278_v57  ;;  %v2337_v56 = vmul.f32 %v7288_v34, %v2241_v11  ;;  %v2407_v62 = vadd.f32 %v8796_v40, %v2371_v22  ;;  %v2501_v44 = vmul.f32 %v2469_v37, %v2437_v9 }
 0x2f6   :  { %7295 = vrsqrt.f32 %v2277_v50  ;;  %v9017_v63 = vpop.f32.mrb[30].mxu1  ;;  %v2374_v29 = vmul.f32 %v8784_v21, %v2338_v27  ;;  %v2440_v17 = vmax.f32 %v2408_v47, 0.0  ;;  %v2245_v49 = vsub.f32 %v8726_v48, %v8991_v61 }
 0x2f7   :  { %v7290_v53 = vpop.eup %7289  ;;  %v2152_v58 = vmul.f32 %v9017_v63, %v9017_v63  ;;  %v9022_v31 = vpop.f32.mrb[31].mxu1  ;;  %v2439_v7 = vmax.f32 %v2407_v62, 0.0  ;;  %6657 = vmatprep.mubr.msk.f32.mxu1 %vm1118_vm1, %v2501_v44  ;;  %v2373_v5 = vmul.f32 %v8784_v21, %v2337_v56 }
 0x2f8   :  { %v7292_v28 = vpop.eup %7291  ;;  %v2340_v51 = vmul.f32 %v7290_v53, %v2244_v19  ;;  %v2151_v32 = vmul.f32 %v9022_v31, %v9022_v31  ;;  %v6612_v59 = vpop.f32.mrb[62].mxu0  ;;  %6658 = vmatmul.mubr.msk.f32.gmra.mrb[52].mxu1 %vm1118_vm1, %v2502_v0  ;;  %v2472_v6 = vmul.f32 %v2440_v17, %v2440_v17  ;;  %v2410_v45 = vadd.f32 %v8796_v40, %v2374_v29 }
 0x2f9   :  { %v2339_v25 = vmul.f32 %v7292_v28, %v2243_v54  ;;  %v2471_v23 = vmul.f32 %v2439_v7, %v2439_v7  ;;  %v2184_v38 = vsub.f32 %v6612_v59, %v2152_v58  ;;  %v2112_v1 = vpop.f32.mrb[63].mxu0  ;;  %v2409_v12 = vadd.f32 %v8796_v40, %v2373_v5 }
 0x2fa   :  { %v2183_v15 = vsub.f32 %v2112_v1, %v2151_v32  ;;  %v2376_v13 = vmul.f32 %v8784_v21, %v2340_v51  ;;  %v2504_v36 = vmul.f32 %v2472_v6, %v2440_v17  ;;  %v2442_v4 = vmax.f32 %v2410_v45, 0.0 }
 0x2fb   :  { %v2503_v2 = vmul.f32 %v2471_v23, %v2439_v7  ;;  %v2216_v42 = vmax.f32 %v2184_v38, 0.0  ;;  %v2375_v55 = vmul.f32 %v8784_v21, %v2339_v25  ;;  %v2441_v14 = vmax.f32 %v2409_v12, 0.0  ;;  %v7430_v12 = vld [vmem:[%s10298_s1] sm:$0xff] }
 0x2fc   :  { %v2215_v41 = vmax.f32 %v2183_v15, 0.0  ;;  %v2412_v60 = vadd.f32 %v8796_v40, %v2376_v13  ;;  %v2474_v11 = vmul.f32 %v2442_v4, %v2442_v4  ;;  %v2248_v0 = vsub.f32 %v8745_v43, %v9017_v63 }
 0x2fd   :  { %6660 = vmatprep.mubr.msk.f32.mxu1 %vm1118_vm1, %v2503_v2  ;;  %v2280_v20 = vadd.f32 1e-05, %v2216_v42  ;;  %v2411_v9 = vadd.f32 %v8796_v40, %v2375_v55  ;;  %v2473_v18 = vmul.f32 %v2441_v14, %v2441_v14  ;;  %v2247_v17 = vsub.f32 %v8748_v52, %v9022_v31 }
 0x2fe   :  { %6661 = vmatmul.mubr.msk.f32.gmra.mrb[54].mxu1 %vm1118_vm1, %v2504_v36  ;;  %v2279_v3 = vadd.f32 1e-05, %v2215_v41  ;;  %v2444_v30 = vmax.f32 %v2412_v60, 0.0  ;;  %v2506_v48 = vmul.f32 %v2474_v11, %v2442_v4 }
 0x2ff   :  { %v7294_v57 = vpop.eup %7293  ;;  %7297 = vrsqrt.f32 %v2280_v20  ;;  %v2443_v34 = vmax.f32 %v2411_v9, 0.0  ;;  %v2505_v8 = vmul.f32 %v2473_v18, %v2441_v14  ;;  %v9108_v9 = vld [vmem:[%s10299_s2 + $0x30] sm:$0x3] }
 0x300   :  { %v7296_v50 = vpop.eup %7295  ;;  %v2342_v22 = vmul.f32 %v7294_v57, %v2246_v24  ;;  %7299 = vrsqrt.f32 %v2279_v3  ;;  %v2476_v27 = vmul.f32 %v2444_v30, %v2444_v30 }
 0x301   :  { %v2341_v46 = vmul.f32 %v7296_v50, %v2245_v49  ;;  %v2475_v61 = vmul.f32 %v2443_v34, %v2443_v34  ;;  %6663 = vmatprep.mubr.msk.f32.mxu1 %vm1118_vm1, %v2505_v8 }
 0x302   :  { %v2378_v37 = vmul.f32 %v8784_v21, %v2342_v22  ;;  %6664 = vmatmul.mubr.msk.f32.gmra.mrb[56].mxu1 %vm1118_vm1, %v2506_v48  ;;  %v2508_v54 = vmul.f32 %v2476_v27, %v2444_v30 }
 0x303   :  { %v2377_v56 = vmul.f32 %v8784_v21, %v2341_v46  ;;  %v2507_v62 = vmul.f32 %v2475_v61, %v2443_v34 }
 0x304   :  { %v2414_v47 = vadd.f32 %v8796_v40, %v2378_v37 }
 0x305   :  { %v2413_v19 = vadd.f32 %v8796_v40, %v2377_v56  ;;  %6666 = vmatprep.mubr.msk.f32.mxu1 %vm1118_vm1, %v2507_v62 }
 0x306   :  { %v2446_v44 = vmax.f32 %v2414_v47, 0.0  ;;  %6667 = vmatmul.mubr.msk.f32.gmra.mrb[58].mxu1 %vm1118_vm1, %v2508_v54 }
 0x307   :  { %v2445_v29 = vmax.f32 %v2413_v19, 0.0 }
 0x308   :  { %v2478_v53 = vmul.f32 %v2446_v44, %v2446_v44 }
 0x309   :  { %v2477_v58 = vmul.f32 %v2445_v29, %v2445_v29  ;;  %v7298_v7 = vpop.eup %7297 }
 0x30a   :  { %v7300_v28 = vpop.eup %7299  ;;  %v2344_v51 = vmul.f32 %v7298_v7, %v2248_v0  ;;  %v2510_v5 = vmul.f32 %v2478_v53, %v2446_v44 }
 0x30b   :  { %v2509_v32 = vmul.f32 %v2477_v58, %v2445_v29  ;;  %v2343_v59 = vmul.f32 %v7300_v28, %v2247_v17 }
 0x30c   :  { %v2380_v25 = vmul.f32 %v8784_v21, %v2344_v51 }
 0x30d   :  { %6669 = vmatprep.mubr.msk.f32.mxu1 %vm1118_vm1, %v2509_v32  ;;  %v2379_v23 = vmul.f32 %v8784_v21, %v2343_v59  ;;  %v10310_v21 = vsub.s32 7, %v7625_v10 }
 0x30e   :  { %6670 = vmatmul.mubr.msk.f32.gmra.mrb[60].mxu1 %vm1118_vm1, %v2510_v5  ;;  %v2416_v43 = vadd.f32 %v8796_v40, %v2380_v25 }
 0x30f   :  { %v2415_v63 = vadd.f32 %v8796_v40, %v2379_v23  ;;  %v9066_v45 = vrot.slane %v7430_v12, %v10310_v21 }
 0x310   :  { %v2448_v38 = vmax.f32 %v2416_v43, 0.0 }
 0x311   :  { %v2447_v6 = vmax.f32 %v2415_v63, 0.0 }
 0x312   :  { %v2480_v52 = vmul.f32 %v2448_v38, %v2448_v38 }
 0x313   :  { %v2479_v31 = vmul.f32 %v2447_v6, %v2447_v6 }
 0x314   :  { %v2512_v15 = vmul.f32 %v2480_v52, %v2448_v38 }
 0x315   :  { %v2511_v1 = vmul.f32 %v2479_v31, %v2447_v6 }
 0x317   :  { %6672 = vmatprep.mubr.msk.f32.mxu1 %vm1118_vm1, %v2511_v1 }
 0x318   :  { %6673 = vmatmul.mubr.msk.f32.gmra.mrb[62].mxu1 %vm1118_vm1, %v2512_v15 }
 0x36b   :  { %v6629_v13 = vpop.f32.mrb[32].mxu1 }
 0x36c   :  { %v9069_v40 = vadd.f32 %v6629_v13, %v9066_v45  ;;  %v2690_v2 = vpop.f32.mrb[33].mxu1 }
 0x36d   :  { %v9072_v42 = vadd.f32 %v2690_v2, %v9066_v45 }
 0x36e   :  { %v3171_v55 = vmul.f32 %v9069_v40, %v9069_v40 }
 0x36f   :  { %v3170_v36 = vmul.f32 %v9072_v42, %v9072_v42  ;;  %6689 = vmatprep.mubr.msk.f32.mxu0 %vm1118_vm1, %v9072_v42 }
 0x370   :  { %6690 = vmatmul.mubr.msk.f32.vlgmr.msra.gmra.mrb[64].mxu0 %vm1118_vm1, %v9069_v40 }
 0x371   :  { %6751 = vmatprep.mubr.msk.f32.mxu1 %vm1118_vm1, %v3170_v36 }
 0x372   :  { %6752 = vmatmul.mubr.msk.f32.vlgmr.msra.gmra.mrb[64].mxu1 %vm1118_vm1, %v3171_v55 }
 0x373   :  { %v6632_v41 = vpop.f32.mrb[34].mxu1  ;;  %7134 = vmatpush3.bf16.msra.mxu1 %v8416_v35 }
 0x374   :  { %v9084_v14 = vadd.f32 %v6632_v41, %v9066_v45  ;;  %v2700_v4 = vpop.f32.mrb[35].mxu1  ;;  %7136 = vmatprep.subr.bf16.mxu1 %v8418_v39 }
 0x375   :  { %v9088_v60 = vadd.f32 %v2700_v4, %v9066_v45 }
 0x376   :  { %v3173_v49 = vmul.f32 %v9084_v14, %v9084_v14 }
 0x377   :  { %v3172_v24 = vmul.f32 %v9088_v60, %v9088_v60  ;;  %6692 = vmatprep.mubr.msk.f32.mxu0 %vm1118_vm1, %v9088_v60  ;;  %7138 = vmatpush3.bf16.msra.mxu1 %v8418_v39 }
 0x378   :  { %6693 = vmatmul.mubr.msk.f32.gmra.mrb[66].mxu0 %vm1118_vm1, %v9084_v14  ;;  %7140 = vmatprep.subr.bf16.mxu1 %v8439_v33 }
 0x379   :  { %6754 = vmatprep.mubr.msk.f32.mxu1 %vm1118_vm1, %v3172_v24 }
 0x37a   :  { %6755 = vmatmul.mubr.msk.f32.gmra.mrb[66].mxu1 %vm1118_vm1, %v3173_v49 }
 0x37b   :  { %7142 = vmatpush3.bf16.msra.mxu1 %v8439_v33 }
 0x37c   :  { %v6635_v20 = vpop.f32.mrb[36].mxu1  ;;  %6873 = vmatprep.subr.msk.mxu1 %vm1215_vm0, %v9108_v9 }
 0x37d   :  { %v9113_v57 = vadd.f32 %v6635_v20, %v9066_v45  ;;  %v2710_v3 = vpop.f32.mrb[37].mxu1 }
 0x37e   :  { %v9116_v18 = vadd.f32 %v2710_v3, %v9066_v45 }
 0x37f   :  { %6874 = vmatpush3.msk.msra.mxu1 %vm1215_vm0, %v9108_v9  ;;  %v3175_v30 = vmul.f32 %v9113_v57, %v9113_v57 }
 0x380   :  { %v3174_v11 = vmul.f32 %v9116_v18, %v9116_v18  ;;  %6695 = vmatprep.mubr.msk.f32.mxu0 %vm1118_vm1, %v9116_v18 }
 0x381   :  { %6696 = vmatmul.mubr.msk.f32.gmra.mrb[68].mxu0 %vm1118_vm1, %v9113_v57 }
 0x382   :  { %6757 = vmatprep.mubr.msk.f32.mxu1 %vm1118_vm1, %v3174_v11 }
 0x383   :  { %6758 = vmatmul.mubr.msk.f32.gmra.mrb[68].mxu1 %vm1118_vm1, %v3175_v30 }
 0x386   :  { %v6638_v50 = vpop.f32.mrb[38].mxu1 }
 0x387   :  { %v9131_v22 = vadd.f32 %v6638_v50, %v9066_v45  ;;  %v2720_v34 = vpop.f32.mrb[39].mxu1 }
 0x388   :  { %v9134_v46 = vadd.f32 %v2720_v34, %v9066_v45 }
 0x389   :  { %v3177_v48 = vmul.f32 %v9131_v22, %v9131_v22 }
 0x38a   :  { %v3176_v8 = vmul.f32 %v9134_v46, %v9134_v46  ;;  %6698 = vmatprep.mubr.msk.f32.mxu0 %vm1118_vm1, %v9134_v46 }
 0x38b   :  { %6699 = vmatmul.mubr.msk.f32.gmra.mrb[70].mxu0 %vm1118_vm1, %v9131_v22 }
 0x38c   :  { %6760 = vmatprep.mubr.msk.f32.mxu1 %vm1118_vm1, %v3176_v8 }
 0x38d   :  { %6761 = vmatmul.mubr.msk.f32.gmra.mrb[70].mxu1 %vm1118_vm1, %v3177_v48 }
 0x390   :  { %v6641_v61 = vpop.f32.mrb[40].mxu1 }
 0x391   :  { %v9147_v27 = vadd.f32 %v6641_v61, %v9066_v45  ;;  %v2730_v37 = vpop.f32.mrb[41].mxu1 }
 0x392   :  { %v9150_v56 = vadd.f32 %v2730_v37, %v9066_v45 }
 0x393   :  { %v3179_v47 = vmul.f32 %v9147_v27, %v9147_v27 }
 0x394   :  { %v3178_v62 = vmul.f32 %v9150_v56, %v9150_v56  ;;  %6701 = vmatprep.mubr.msk.f32.mxu0 %vm1118_vm1, %v9150_v56 }
 0x395   :  { %6702 = vmatmul.mubr.msk.f32.gmra.mrb[72].mxu0 %vm1118_vm1, %v9147_v27 }
 0x396   :  { %6763 = vmatprep.mubr.msk.f32.mxu1 %vm1118_vm1, %v3178_v62 }
 0x397   :  { %6764 = vmatmul.mubr.msk.f32.gmra.mrb[72].mxu1 %vm1118_vm1, %v3179_v47 }
 0x399   :  { %v6644_v19 = vpop.f32.mrb[42].mxu1 }
 0x39a   :  { %v9163_v54 = vadd.f32 %v6644_v19, %v9066_v45  ;;  %v2740_v44 = vpop.f32.mrb[43].mxu1 }
 0x39b   :  { %v9166_v29 = vadd.f32 %v2740_v44, %v9066_v45 }
 0x39c   :  { %v3181_v0 = vmul.f32 %v9163_v54, %v9163_v54 }
 0x39d   :  { %v3180_v53 = vmul.f32 %v9166_v29, %v9166_v29  ;;  %6704 = vmatprep.mubr.msk.f32.mxu0 %vm1118_vm1, %v9166_v29 }
 0x39e   :  { %6705 = vmatmul.mubr.msk.f32.gmra.mrb[74].mxu0 %vm1118_vm1, %v9163_v54 }
 0x39f   :  { %6766 = vmatprep.mubr.msk.f32.mxu1 %vm1118_vm1, %v3180_v53 }
 0x3a0   :  { %6767 = vmatmul.mubr.msk.f32.gmra.mrb[74].mxu1 %vm1118_vm1, %v3181_v0 }
 0x3a4   :  { %v6647_v58 = vpop.f32.mrb[44].mxu1 }
 0x3a5   :  { %v9179_v7 = vadd.f32 %v6647_v58, %v9066_v45  ;;  %v2750_v17 = vpop.f32.mrb[45].mxu1 }
 0x3a6   :  { %v9182_v28 = vadd.f32 %v2750_v17, %v9066_v45 }
 0x3a7   :  { %v3183_v32 = vmul.f32 %v9179_v7, %v9179_v7 }
 0x3a8   :  { %v3182_v51 = vmul.f32 %v9182_v28, %v9182_v28  ;;  %6707 = vmatprep.mubr.msk.f32.mxu0 %vm1118_vm1, %v9182_v28 }
 0x3a9   :  { %6708 = vmatmul.mubr.msk.f32.gmra.mrb[76].mxu0 %vm1118_vm1, %v9179_v7 }
 0x3aa   :  { %6769 = vmatprep.mubr.msk.f32.mxu1 %vm1118_vm1, %v3182_v51 }
 0x3ab   :  { %6770 = vmatmul.mubr.msk.f32.gmra.mrb[76].mxu1 %vm1118_vm1, %v3183_v32 }
 0x3ac   :  { %v6650_v59 = vpop.f32.mrb[46].mxu1 }
 0x3ad   :  { %v9195_v5 = vadd.f32 %v6650_v59, %v9066_v45  ;;  %v2760_v25 = vpop.f32.mrb[47].mxu1 }
 0x3ae   :  { %v9198_v23 = vadd.f32 %v2760_v25, %v9066_v45 }
 0x3af   :  { %v3185_v63 = vmul.f32 %v9195_v5, %v9195_v5 }
 0x3b0   :  { %v3184_v43 = vmul.f32 %v9198_v23, %v9198_v23  ;;  %6710 = vmatprep.mubr.msk.f32.mxu0 %vm1118_vm1, %v9198_v23 }
 0x3b1   :  { %6711 = vmatmul.mubr.msk.f32.gmra.mrb[78].mxu0 %vm1118_vm1, %v9195_v5 }
 0x3b2   :  { %6772 = vmatprep.mubr.msk.f32.mxu1 %vm1118_vm1, %v3184_v43 }
 0x3b3   :  { %6773 = vmatmul.mubr.msk.f32.gmra.mrb[78].mxu1 %vm1118_vm1, %v3185_v63 }
 0x3b7   :  { %v6653_v38 = vpop.f32.mrb[48].mxu1 }
 0x3b8   :  { %v9211_v6 = vadd.f32 %v6653_v38, %v9066_v45  ;;  %v2770_v52 = vpop.f32.mrb[49].mxu1 }
 0x3b9   :  { %v9214_v31 = vadd.f32 %v2770_v52, %v9066_v45 }
 0x3ba   :  { %v3187_v15 = vmul.f32 %v9211_v6, %v9211_v6 }
 0x3bb   :  { %v3186_v1 = vmul.f32 %v9214_v31, %v9214_v31  ;;  %6713 = vmatprep.mubr.msk.f32.mxu0 %vm1118_vm1, %v9214_v31 }
 0x3bc   :  { %6714 = vmatmul.mubr.msk.f32.gmra.mrb[80].mxu0 %vm1118_vm1, %v9211_v6 }
 0x3bd   :  { %6775 = vmatprep.mubr.msk.f32.mxu1 %vm1118_vm1, %v3186_v1  ;;  %v5897_v1 = vld [vmem:[%s10300_s3 + $0x70] sm:$0xff] }
 0x3be   :  { %6776 = vmatmul.mubr.msk.f32.gmra.mrb[80].mxu1 %vm1118_vm1, %v3187_v15  ;;  %v5898_v15 = vld [vmem:[%s10300_s3 + $0x78] sm:$0xff] }
 0x3c1   :  { %v6656_v12 = vpop.f32.mrb[50].mxu1 }
 0x3c2   :  { %v9227_v21 = vadd.f32 %v6656_v12, %v9066_v45  ;;  %v2780_v13 = vpop.f32.mrb[51].mxu1 }
 0x3c3   :  { %v9230_v2 = vadd.f32 %v2780_v13, %v9066_v45  ;;  %v7119_v13 = vpack.c.bf16 %v5898_v15, %v5897_v1 }
 0x3c4   :  { %v3189_v55 = vmul.f32 %v9227_v21, %v9227_v21 }
 0x3c5   :  { %v3188_v36 = vmul.f32 %v9230_v2, %v9230_v2  ;;  %6716 = vmatprep.mubr.msk.f32.mxu0 %vm1118_vm1, %v9230_v2  ;;  %7120 = vmatprep.subr.bf16.mxu0 %v7119_v13 }
 0x3c6   :  { %6717 = vmatmul.mubr.msk.f32.gmra.mrb[82].mxu0 %vm1118_vm1, %v9227_v21 }
 0x3c7   :  { %6778 = vmatprep.mubr.msk.f32.mxu1 %vm1118_vm1, %v3188_v36  ;;  %7122 = vmatpush3.bf16.msra.mxu0 %v7119_v13 }
 0x3c8   :  { %6779 = vmatmul.mubr.msk.f32.gmra.mrb[82].mxu1 %vm1118_vm1, %v3189_v55 }
 0x3cb   :  { %v6659_v41 = vpop.f32.mrb[52].mxu1 }
 0x3cc   :  { %v9243_v4 = vadd.f32 %v6659_v41, %v9066_v45  ;;  %v2790_v24 = vpop.f32.mrb[53].mxu1 }
 0x3cd   :  { %v9246_v49 = vadd.f32 %v2790_v24, %v9066_v45  ;;  %v5899_v24 = vld [vmem:[%s10300_s3 + $0x80] sm:$0xff] }
 0x3ce   :  { %v3191_v3 = vmul.f32 %v9243_v4, %v9243_v4 }
 0x3cf   :  { %v3190_v20 = vmul.f32 %v9246_v49, %v9246_v49  ;;  %6719 = vmatprep.mubr.msk.f32.mxu0 %vm1118_vm1, %v9246_v49 }
 0x3d0   :  { %6720 = vmatmul.mubr.msk.f32.gmra.mrb[84].mxu0 %vm1118_vm1, %v9243_v4 }
 0x3d1   :  { %v6662_v11 = vpop.f32.mrb[54].mxu1  ;;  %6781 = vmatprep.mubr.msk.f32.mxu1 %vm1118_vm1, %v3190_v20  ;;  %v5900_v20 = vld [vmem:[%s10300_s3 + $0x88] sm:$0xff] }
 0x3d2   :  { %v9258_v30 = vadd.f32 %v6662_v11, %v9066_v45  ;;  %v2800_v50 = vpop.f32.mrb[55].mxu1  ;;  %6782 = vmatmul.mubr.msk.f32.gmra.mrb[84].mxu1 %vm1118_vm1, %v3191_v3  ;;  %v7123_v11 = vpack.c.bf16 %v5900_v20, %v5899_v24 }
 0x3d3   :  { %v9262_v34 = vadd.f32 %v2800_v50, %v9066_v45  ;;  %v5901_v50 = vld [vmem:[%s10300_s3 + $0x90] sm:$0xff] }
 0x3d4   :  { %v3193_v48 = vmul.f32 %v9258_v30, %v9258_v30  ;;  %7124 = vmatprep.subr.bf16.mxu0 %v7123_v11 }
 0x3d5   :  { %v3192_v8 = vmul.f32 %v9262_v34, %v9262_v34  ;;  %6722 = vmatprep.mubr.msk.f32.mxu0 %vm1118_vm1, %v9262_v34  ;;  %v6665_v61 = vpop.f32.mrb[56].mxu1  ;;  %7126 = vmatpush3.bf16.msra.mxu0 %v7123_v11 }
 0x3d6   :  { %6723 = vmatmul.mubr.msk.f32.gmra.mrb[86].mxu0 %vm1118_vm1, %v9258_v30  ;;  %v9274_v37 = vadd.f32 %v6665_v61, %v9066_v45  ;;  %v2810_v62 = vpop.f32.mrb[57].mxu1  ;;  %v5903_v61 = vld [vmem:[%s10300_s3 + $0xa0] sm:$0x3] }
 0x3d7   :  { %6784 = vmatprep.mubr.msk.f32.mxu1 %vm1118_vm1, %v3192_v8  ;;  %v9278_v47 = vadd.f32 %v2810_v62, %v9066_v45  ;;  %v5902_v8 = vld [vmem:[%s10300_s3 + $0x98] sm:$0xff] }
 0x3d8   :  { %6785 = vmatmul.mubr.msk.f32.gmra.mrb[86].mxu1 %vm1118_vm1, %v3193_v48  ;;  %v3195_v53 = vmul.f32 %v9274_v37, %v9274_v37  ;;  %v7127_v48 = vpack.c.bf16 %v5902_v8, %v5901_v50 }
 0x3d9   :  { %v3194_v19 = vmul.f32 %v9278_v47, %v9278_v47  ;;  %6725 = vmatprep.mubr.msk.f32.mxu0 %vm1118_vm1, %v9278_v47  ;;  %v6668_v44 = vpop.f32.mrb[58].mxu1 }
 0x3da   :  { %6726 = vmatmul.mubr.msk.f32.gmra.mrb[88].mxu0 %vm1118_vm1, %v9274_v37  ;;  %v9289_v0 = vadd.f32 %v6668_v44, %v9066_v45  ;;  %v2820_v58 = vpop.f32.mrb[59].mxu1  ;;  %7128 = vmatprep.subr.bf16.mxu0 %v7127_v48 }
 0x3db   :  { %6787 = vmatprep.mubr.msk.f32.mxu1 %vm1118_vm1, %v3194_v19  ;;  %v9293_v17 = vadd.f32 %v2820_v58, %v9066_v45  ;;  %7130 = vmatpush3.bf16.msra.mxu0 %v7127_v48 }
 0x3dc   :  { %6788 = vmatmul.mubr.msk.f32.gmra.mrb[88].mxu1 %vm1118_vm1, %v3195_v53  ;;  %v3197_v32 = vmul.f32 %v9289_v0, %v9289_v0  ;;  %6811 = vmatprep.subr.msk.mxu0 %vm1215_vm0, %v5903_v61 }
 0x3dd   :  { %v3196_v51 = vmul.f32 %v9293_v17, %v9293_v17  ;;  %6728 = vmatprep.mubr.msk.f32.mxu0 %vm1118_vm1, %v9293_v17 }
 0x3de   :  { %6729 = vmatmul.mubr.msk.f32.gmra.mrb[90].mxu0 %vm1118_vm1, %v9289_v0 }
 0x3df   :  { %6790 = vmatprep.mubr.msk.f32.mxu1 %vm1118_vm1, %v3196_v51  ;;  %6812 = vmatpush3.msk.msra.mxu0 %vm1215_vm0, %v5903_v61 }
 0x3e0   :  { %6791 = vmatmul.mubr.msk.f32.gmra.mrb[90].mxu1 %vm1118_vm1, %v3197_v32  ;;  %7144 = vmatprep.subr.bf16.mxu0 %v8416_v35 }
 0x3e1   :  { %v6671_v59 = vpop.f32.mrb[60].mxu1 }
 0x3e2   :  { %v9307_v25 = vadd.f32 %v6671_v59, %v9066_v45  ;;  %v2830_v43 = vpop.f32.mrb[61].mxu1 }
 0x3e3   :  { %v9310_v63 = vadd.f32 %v2830_v43, %v9066_v45 }
 0x3e4   :  { %v3199_v52 = vmul.f32 %v9307_v25, %v9307_v25 }
 0x3e5   :  { %v3198_v38 = vmul.f32 %v9310_v63, %v9310_v63  ;;  %6731 = vmatprep.mubr.msk.f32.mxu0 %vm1118_vm1, %v9310_v63 }
 0x3e6   :  { %6732 = vmatmul.mubr.msk.f32.gmra.mrb[92].mxu0 %vm1118_vm1, %v9307_v25 }
 0x3e7   :  { %6793 = vmatprep.mubr.msk.f32.mxu1 %vm1118_vm1, %v3198_v38 }
 0x3e8   :  { %6794 = vmatmul.mubr.msk.f32.gmra.mrb[92].mxu1 %vm1118_vm1, %v3199_v52 }
 0x3eb   :  { %v6674_v12 = vpop.f32.mrb[62].mxu1 }
 0x3ec   :  { %v9329_v36 = vadd.f32 %v6674_v12, %v9066_v45  ;;  %v2840_v55 = vpop.f32.mrb[63].mxu1 }
 0x3ed   :  { %v9332_v41 = vadd.f32 %v2840_v55, %v9066_v45 }
 0x3ee   :  { %v3201_v45 = vmul.f32 %v9329_v36, %v9329_v36 }
 0x3ef   :  { %v3200_v3 = vmul.f32 %v9332_v41, %v9332_v41  ;;  %6734 = vmatprep.mubr.msk.f32.mxu0 %vm1118_vm1, %v9332_v41 }
 0x3f0   :  { %6735 = vmatmul.mubr.msk.f32.gmra.mrb[94].mxu0 %vm1118_vm1, %v9329_v36 }
 0x3f1   :  { %6796 = vmatprep.mubr.msk.f32.mxu1 %vm1118_vm1, %v3200_v3 }
 0x3f2   :  { %6797 = vmatmul.mubr.msk.f32.gmra.mrb[94].mxu1 %vm1118_vm1, %v3201_v45 }
 0x443   :  { %v6691_v62 = vpop.f32.mrb[64].mxu0 }
 0x444   :  { %v3524_v19 = vmul.f32 %v6691_v62, %v6691_v62  ;;  %v3011_v44 = vpop.f32.mrb[65].mxu0 }
 0x445   :  { %v3523_v53 = vmul.f32 %v3011_v44, %v3011_v44  ;;  %v6753_v58 = vpop.f32.mrb[64].mxu1 }
 0x446   :  { %v3556_v51 = vsub.f32 %v6753_v58, %v3524_v19  ;;  %v3364_v32 = vpop.f32.mrb[65].mxu1  ;;  %v3620_v19 = vsub.f32 %v9069_v40, %v6691_v62 }
 0x447   :  { %v3555_v59 = vsub.f32 %v3364_v32, %v3523_v53  ;;  %v9368_v53 = vld [vmem:[%s10298_s1 + $0x8] sm:$0xff] }
 0x448   :  { %v3588_v43 = vmax.f32 %v3556_v51, 0.0  ;;  %v9372_v58 = vrot.slane %v9368_v53, %v7636_v16 }
 0x449   :  { %v3587_v38 = vmax.f32 %v3555_v59, 0.0 }
 0x44a   :  { %v3652_v1 = vadd.f32 1e-05, %v3588_v43  ;;  %v3619_v43 = vsub.f32 %v9072_v42, %v3011_v44 }
 0x44b   :  { %v6694_v52 = vpop.f32.mrb[66].mxu0  ;;  %v3651_v13 = vadd.f32 1e-05, %v3587_v38 }
 0x44c   :  { %v3526_v15 = vmul.f32 %v6694_v52, %v6694_v52  ;;  %v3021_v12 = vpop.f32.mrb[67].mxu0  ;;  %7301 = vrsqrt.f32 %v3652_v1 }
 0x44d   :  { %v3525_v55 = vmul.f32 %v3021_v12, %v3021_v12  ;;  %v6756_v24 = vpop.f32.mrb[66].mxu1  ;;  %7303 = vrsqrt.f32 %v3651_v13 }
 0x44e   :  { %v3558_v20 = vsub.f32 %v6756_v24, %v3526_v15  ;;  %v3374_v3 = vpop.f32.mrb[67].mxu1  ;;  %v9383_v15 = vrot.slane %v9368_v53, %v7659_v26 }
 0x44f   :  { %v3557_v11 = vsub.f32 %v3374_v3, %v3525_v55 }
 0x450   :  { %v3590_v45 = vmax.f32 %v3558_v20, 0.0 }
 0x451   :  { %v3589_v50 = vmax.f32 %v3557_v11, 0.0 }
 0x452   :  { %v3654_v8 = vadd.f32 1e-05, %v3590_v45  ;;  %v3622_v45 = vsub.f32 %v9084_v14, %v6694_v52 }
 0x453   :  { %v3653_v48 = vadd.f32 1e-05, %v3589_v50 }
 0x454   :  { %7305 = vrsqrt.f32 %v3654_v8  ;;  %v9362_v61 = vpop.f32.mrb[68].mxu0 }
 0x455   :  { %7307 = vrsqrt.f32 %v3653_v48  ;;  %v3528_v51 = vmul.f32 %v9362_v61, %v9362_v61  ;;  %v9376_v32 = vpop.f32.mrb[69].mxu0  ;;  %v3621_v48 = vsub.f32 %v9088_v60, %v3021_v12 }
 0x456   :  { %v7302_v59 = vpop.eup %7301  ;;  %v3527_v40 = vmul.f32 %v9376_v32, %v9376_v32  ;;  %v6759_v62 = vpop.f32.mrb[68].mxu1 }
 0x457   :  { %v7304_v38 = vpop.eup %7303  ;;  %v3716_v1 = vmul.f32 %v7302_v59, %v3620_v19  ;;  %v3560_v16 = vsub.f32 %v6759_v62, %v3528_v51  ;;  %v3384_v13 = vpop.f32.mrb[69].mxu1 }
 0x458   :  { %v3715_v55 = vmul.f32 %v7304_v38, %v3619_v43  ;;  %v3559_v24 = vsub.f32 %v3384_v13, %v3527_v40 }
 0x459   :  { %v3752_v20 = vmul.f32 %v9372_v58, %v3716_v1  ;;  %v3592_v3 = vmax.f32 %v3560_v16, 0.0 }
 0x45a   :  { %v3591_v11 = vmax.f32 %v3559_v24, 0.0  ;;  %v3751_v42 = vmul.f32 %v9372_v58, %v3715_v55 }
 0x45b   :  { %v3788_v44 = vadd.f32 %v9383_v15, %v3752_v20  ;;  %v3656_v50 = vadd.f32 1e-05, %v3592_v3 }
 0x45c   :  { %v3655_v26 = vadd.f32 1e-05, %v3591_v11  ;;  %v3787_v51 = vadd.f32 %v9383_v15, %v3751_v42 }
 0x45d   :  { %v3820_v43 = vmax.f32 %v3788_v44, 0.0  ;;  %7309 = vrsqrt.f32 %v3656_v50 }
 0x45e   :  { %v7306_v8 = vpop.eup %7305  ;;  %v9390_v19 = vpop.f32.mrb[70].mxu0  ;;  %7311 = vrsqrt.f32 %v3655_v26  ;;  %v3819_v16 = vmax.f32 %v3787_v51, 0.0  ;;  %v3624_v51 = vsub.f32 %v9113_v57, %v9362_v61 }
 0x45f   :  { %v7308_v59 = vpop.eup %7307  ;;  %v3718_v40 = vmul.f32 %v7306_v8, %v3622_v45  ;;  %v3530_v62 = vmul.f32 %v9390_v19, %v9390_v19  ;;  %v9395_v38 = vpop.f32.mrb[71].mxu0  ;;  %v3852_v55 = vmul.f32 %v3820_v43, %v3820_v43 }
 0x460   :  { %v3717_v1 = vmul.f32 %v7308_v59, %v3621_v48  ;;  %v3529_v14 = vmul.f32 %v9395_v38, %v9395_v38  ;;  %v6762_v60 = vpop.f32.mrb[70].mxu1  ;;  %v3851_v11 = vmul.f32 %v3819_v16, %v3819_v16 }
 0x461   :  { %v3562_v52 = vsub.f32 %v6762_v60, %v3530_v62  ;;  %v3394_v12 = vpop.f32.mrb[71].mxu1  ;;  %v3754_v20 = vmul.f32 %v9372_v58, %v3718_v40  ;;  %v3884_v26 = vmul.f32 %v3852_v55, %v3820_v43 }
 0x462   :  { %v3561_v13 = vsub.f32 %v3394_v12, %v3529_v14  ;;  %v3753_v24 = vmul.f32 %v9372_v58, %v3717_v1  ;;  %v3883_v8 = vmul.f32 %v3851_v11, %v3819_v16 }
 0x463   :  { %v3594_v3 = vmax.f32 %v3562_v52, 0.0  ;;  %v3790_v45 = vadd.f32 %v9383_v15, %v3754_v20  ;;  %v3623_v52 = vsub.f32 %v9116_v18, %v9376_v32 }
 0x464   :  { %v3593_v42 = vmax.f32 %v3561_v13, 0.0  ;;  %v3789_v44 = vadd.f32 %v9383_v15, %v3753_v24  ;;  %6813 = vmatprep.mubr.msk.f32.mxu0 %vm1118_vm1, %v3883_v8 }
 0x465   :  { %v3658_v50 = vadd.f32 1e-05, %v3594_v3  ;;  %v3822_v62 = vmax.f32 %v3790_v45, 0.0  ;;  %6814 = vmatmul.mubr.msk.f32.vlgmr.msra.gmra.mrb[96].mxu0 %vm1118_vm1, %v3884_v26 }
 0x466   :  { %v3657_v48 = vadd.f32 1e-05, %v3593_v42  ;;  %v3821_v59 = vmax.f32 %v3789_v44, 0.0  ;;  %7146 = vmatpush3.bf16.msra.mxu0 %v8416_v35 }
 0x467   :  { %7313 = vrsqrt.f32 %v3658_v50  ;;  %v3854_v14 = vmul.f32 %v3822_v62, %v3822_v62  ;;  %v7310_v60 = vpop.eup %7309  ;;  %7148 = vmatprep.subr.bf16.mxu0 %v8418_v39 }
 0x468   :  { %7315 = vrsqrt.f32 %v3657_v48  ;;  %v9406_v40 = vpop.f32.mrb[72].mxu0  ;;  %v3853_v1 = vmul.f32 %v3821_v59, %v3821_v59  ;;  %v7312_v16 = vpop.eup %7311  ;;  %v3720_v57 = vmul.f32 %v7310_v60, %v3624_v51  ;;  %v3626_v48 = vsub.f32 %v9131_v22, %v9390_v19 }
 0x469   :  { %v3532_v43 = vmul.f32 %v9406_v40, %v9406_v40  ;;  %v9413_v12 = vpop.f32.mrb[73].mxu0  ;;  %v3719_v24 = vmul.f32 %v7312_v16, %v3623_v52  ;;  %v3886_v18 = vmul.f32 %v3854_v14, %v3822_v62  ;;  %v3625_v51 = vsub.f32 %v9134_v46, %v9395_v38 }
 0x46a   :  { %v3531_v61 = vmul.f32 %v9413_v12, %v9413_v12  ;;  %v6765_v13 = vpop.f32.mrb[72].mxu1  ;;  %v3885_v55 = vmul.f32 %v3853_v1, %v3821_v59  ;;  %v3756_v11 = vmul.f32 %v9372_v58, %v3720_v57  ;;  %7150 = vmatpush3.bf16.msra.mxu0 %v8418_v39 }
 0x46b   :  { %v3564_v20 = vsub.f32 %v6765_v13, %v3532_v43  ;;  %v3404_v3 = vpop.f32.mrb[73].mxu1  ;;  %v3755_v35 = vmul.f32 %v9372_v58, %v3719_v24  ;;  %7152 = vmatprep.subr.bf16.mxu0 %v8439_v33 }
 0x46c   :  { %v3563_v32 = vsub.f32 %v3404_v3, %v3531_v61  ;;  %6816 = vmatprep.mubr.msk.f32.mxu0 %vm1118_vm1, %v3885_v55  ;;  %v3792_v45 = vadd.f32 %v9383_v15, %v3756_v11 }
 0x46d   :  { %v3596_v42 = vmax.f32 %v3564_v20, 0.0  ;;  %6817 = vmatmul.mubr.msk.f32.gmra.mrb[98].mxu0 %vm1118_vm1, %v3886_v18  ;;  %v3791_v8 = vadd.f32 %v9383_v15, %v3755_v35 }
 0x46e   :  { %v3595_v44 = vmax.f32 %v3563_v32, 0.0  ;;  %v3824_v59 = vmax.f32 %v3792_v45, 0.0  ;;  %7154 = vmatpush3.bf16.msra.mxu0 %v8439_v33 }
 0x46f   :  { %v3660_v50 = vadd.f32 1e-05, %v3596_v42  ;;  %v3823_v14 = vmax.f32 %v3791_v8, 0.0  ;;  %6935 = vmatprep.subr.msk.mxu0 %vm1215_vm0, %v9108_v9 }
 0x470   :  { %v3659_v26 = vadd.f32 1e-05, %v3595_v44  ;;  %v3856_v61 = vmul.f32 %v3824_v59, %v3824_v59 }
 0x471   :  { %v7314_v62 = vpop.eup %7313  ;;  %7317 = vrsqrt.f32 %v3660_v50  ;;  %v9431_v1 = vpop.f32.mrb[74].mxu0  ;;  %v3855_v46 = vmul.f32 %v3823_v14, %v3823_v14  ;;  %v3628_v50 = vsub.f32 %v9147_v27, %v9406_v40 }
 0x472   :  { %v7316_v60 = vpop.eup %7315  ;;  %v3722_v39 = vmul.f32 %v7314_v62, %v3626_v48  ;;  %7319 = vrsqrt.f32 %v3659_v26  ;;  %v3534_v52 = vmul.f32 %v9431_v1, %v9431_v1  ;;  %v9435_v43 = vpop.f32.mrb[75].mxu0  ;;  %v3888_v33 = vmul.f32 %v3856_v61, %v3824_v59  ;;  %6936 = vmatpush3.msk.msra.mxu0 %vm1215_vm0, %v9108_v9 }
 0x473   :  { %v3721_v22 = vmul.f32 %v7316_v60, %v3625_v51  ;;  %v3533_v19 = vmul.f32 %v9435_v43, %v9435_v43  ;;  %v6768_v16 = vpop.f32.mrb[74].mxu1  ;;  %v3887_v24 = vmul.f32 %v3855_v46, %v3823_v14  ;;  %v3627_v9 = vsub.f32 %v9150_v56, %v9413_v12 }
 0x474   :  { %v3566_v38 = vsub.f32 %v6768_v16, %v3534_v52  ;;  %v3414_v57 = vpop.f32.mrb[75].mxu1  ;;  %v3758_v13 = vmul.f32 %v9372_v58, %v3722_v39 }
 0x475   :  { %v3565_v55 = vsub.f32 %v3414_v57, %v3533_v19  ;;  %v3757_v20 = vmul.f32 %v9372_v58, %v3721_v22  ;;  %6819 = vmatprep.mubr.msk.f32.mxu0 %vm1118_vm1, %v3887_v24  ;;  %v3630_v24 = vsub.f32 %v9163_v54, %v9431_v1 }
 0x476   :  { %v3598_v3 = vmax.f32 %v3566_v38, 0.0  ;;  %v3794_v18 = vadd.f32 %v9383_v15, %v3758_v13  ;;  %6820 = vmatmul.mubr.msk.f32.gmra.mrb[100].mxu0 %vm1118_vm1, %v3888_v33 }
 0x477   :  { %v3597_v32 = vmax.f32 %v3565_v55, 0.0  ;;  %v3793_v11 = vadd.f32 %v9383_v15, %v3757_v20 }
 0x478   :  { %v3662_v42 = vadd.f32 1e-05, %v3598_v3  ;;  %v3826_v35 = vmax.f32 %v3794_v18, 0.0  ;;  %v3629_v18 = vsub.f32 %v9166_v29, %v9435_v43 }
 0x479   :  { %v3661_v44 = vadd.f32 1e-05, %v3597_v32  ;;  %v3825_v45 = vmax.f32 %v3793_v11, 0.0 }
 0x47a   :  { %7321 = vrsqrt.f32 %v3662_v42  ;;  %v3858_v8 = vmul.f32 %v3826_v35, %v3826_v35 }
 0x47b   :  { %v7318_v48 = vpop.eup %7317  ;;  %7323 = vrsqrt.f32 %v3661_v44  ;;  %v3857_v26 = vmul.f32 %v3825_v45, %v3825_v45 }
 0x47c   :  { %v7320_v59 = vpop.eup %7319  ;;  %v3724_v62 = vmul.f32 %v7318_v48, %v3628_v50  ;;  %v9454_v51 = vpop.f32.mrb[76].mxu0  ;;  %v3890_v22 = vmul.f32 %v3858_v8, %v3826_v35 }
 0x47d   :  { %v3723_v14 = vmul.f32 %v7320_v59, %v3627_v9  ;;  %v3536_v60 = vmul.f32 %v9454_v51, %v9454_v51  ;;  %v9458_v39 = vpop.f32.mrb[77].mxu0  ;;  %v3889_v52 = vmul.f32 %v3857_v26, %v3825_v45 }
 0x47e   :  { %v3535_v27 = vmul.f32 %v9458_v39, %v9458_v39  ;;  %v6771_v40 = vpop.f32.mrb[76].mxu1  ;;  %v3760_v56 = vmul.f32 %v9372_v58, %v3724_v62 }
 0x47f   :  { %v3568_v12 = vsub.f32 %v6771_v40, %v3536_v60  ;;  %v3424_v19 = vpop.f32.mrb[77].mxu1  ;;  %6822 = vmatprep.mubr.msk.f32.mxu0 %vm1118_vm1, %v3889_v52  ;;  %v3759_v16 = vmul.f32 %v9372_v58, %v3723_v14 }
 0x480   :  { %v3567_v46 = vsub.f32 %v3424_v19, %v3535_v27  ;;  %6823 = vmatmul.mubr.msk.f32.gmra.mrb[102].mxu0 %vm1118_vm1, %v3890_v22  ;;  %v3796_v38 = vadd.f32 %v9383_v15, %v3760_v56 }
 0x481   :  { %v3600_v57 = vmax.f32 %v3568_v12, 0.0  ;;  %v3795_v61 = vadd.f32 %v9383_v15, %v3759_v16  ;;  %v3632_v16 = vsub.f32 %v9179_v7, %v9454_v51 }
 0x482   :  { %v3599_v13 = vmax.f32 %v3567_v46, 0.0  ;;  %v3828_v55 = vmax.f32 %v3796_v38, 0.0 }
 0x483   :  { %v3664_v20 = vadd.f32 1e-05, %v3600_v57  ;;  %v3827_v3 = vmax.f32 %v3795_v61, 0.0  ;;  %v3631_v61 = vsub.f32 %v9182_v28, %v9458_v39 }
 0x484   :  { %v7322_v33 = vpop.eup %7321  ;;  %v3663_v32 = vadd.f32 1e-05, %v3599_v13  ;;  %v3860_v11 = vmul.f32 %v3828_v55, %v3828_v55  ;;  %v9472_v44 = vpop.f32.mrb[78].mxu0 }
 0x485   :  { %v7324_v42 = vpop.eup %7323  ;;  %v3726_v35 = vmul.f32 %v7322_v33, %v3630_v24  ;;  %7325 = vrsqrt.f32 %v3664_v20  ;;  %v3859_v45 = vmul.f32 %v3827_v3, %v3827_v3  ;;  %v3538_v8 = vmul.f32 %v9472_v44, %v9472_v44  ;;  %v3081_v54 = vpop.f32.mrb[79].mxu0 }
 0x486   :  { %v3725_v50 = vmul.f32 %v7324_v42, %v3629_v18  ;;  %7327 = vrsqrt.f32 %v3663_v32  ;;  %v3537_v1 = vmul.f32 %v3081_v54, %v3081_v54  ;;  %v6774_v48 = vpop.f32.mrb[78].mxu1  ;;  %v3892_v29 = vmul.f32 %v3860_v11, %v3828_v55 }
 0x487   :  { %v3891_v9 = vmul.f32 %v3859_v45, %v3827_v3  ;;  %v3570_v26 = vsub.f32 %v6774_v48, %v3538_v8  ;;  %v3434_v59 = vpop.f32.mrb[79].mxu1  ;;  %v3762_v62 = vmul.f32 %v9372_v58, %v3726_v35 }
 0x488   :  { %v3761_v43 = vmul.f32 %v9372_v58, %v3725_v50  ;;  %v3569_v14 = vsub.f32 %v3434_v59, %v3537_v1 }
 0x489   :  { %6825 = vmatprep.mubr.msk.f32.mxu0 %vm1118_vm1, %v3891_v9  ;;  %v3602_v60 = vmax.f32 %v3570_v26, 0.0  ;;  %v3798_v27 = vadd.f32 %v9383_v15, %v3762_v62  ;;  %v3634_v9 = vsub.f32 %v9195_v5, %v9472_v44 }
 0x48a   :  { %6826 = vmatmul.mubr.msk.f32.gmra.mrb[104].mxu0 %vm1118_vm1, %v3892_v29  ;;  %v3797_v52 = vadd.f32 %v9383_v15, %v3761_v43  ;;  %v3601_v40 = vmax.f32 %v3569_v14, 0.0  ;;  %v3633_v43 = vsub.f32 %v9198_v23, %v3081_v54 }
 0x48b   :  { %v3666_v22 = vadd.f32 1e-05, %v3602_v60  ;;  %v3830_v12 = vmax.f32 %v3798_v27, 0.0 }
 0x48c   :  { %v3829_v56 = vmax.f32 %v3797_v52, 0.0  ;;  %v3665_v19 = vadd.f32 1e-05, %v3601_v40 }
 0x48d   :  { %7329 = vrsqrt.f32 %v3666_v22  ;;  %v3862_v38 = vmul.f32 %v3830_v12, %v3830_v12 }
 0x48e   :  { %v3861_v46 = vmul.f32 %v3829_v56, %v3829_v56  ;;  %7331 = vrsqrt.f32 %v3665_v19 }
 0x48f   :  { %v7326_v57 = vpop.eup %7325  ;;  %v6715_v24 = vpop.f32.mrb[80].mxu0  ;;  %v3894_v32 = vmul.f32 %v3862_v38, %v3830_v12 }
 0x490   :  { %v7328_v13 = vpop.eup %7327  ;;  %v3728_v55 = vmul.f32 %v7326_v57, %v3632_v16  ;;  %v3893_v20 = vmul.f32 %v3861_v46, %v3829_v56  ;;  %v3540_v33 = vmul.f32 %v6715_v24, %v6715_v24  ;;  %v3091_v18 = vpop.f32.mrb[81].mxu0 }
 0x491   :  { %v3727_v3 = vmul.f32 %v7328_v13, %v3631_v61  ;;  %v3539_v11 = vmul.f32 %v3091_v18, %v3091_v18  ;;  %v6777_v42 = vpop.f32.mrb[80].mxu1 }
 0x492   :  { %6828 = vmatprep.mubr.msk.f32.mxu0 %vm1118_vm1, %v3893_v20  ;;  %v3764_v7 = vmul.f32 %v9372_v58, %v3728_v55  ;;  %v3572_v51 = vsub.f32 %v6777_v42, %v3540_v33  ;;  %v3444_v35 = vpop.f32.mrb[81].mxu1 }
 0x493   :  { %6829 = vmatmul.mubr.msk.f32.gmra.mrb[106].mxu0 %vm1118_vm1, %v3894_v32  ;;  %v3763_v28 = vmul.f32 %v9372_v58, %v3727_v3  ;;  %v3571_v39 = vsub.f32 %v3444_v35, %v3539_v11  ;;  %v3636_v11 = vsub.f32 %v9211_v6, %v6715_v24  ;;  %v3635_v35 = vsub.f32 %v9214_v31, %v3091_v18 }
 0x494   :  { %v3800_v45 = vadd.f32 %v9383_v15, %v3764_v7  ;;  %v3604_v50 = vmax.f32 %v3572_v51, 0.0 }
 0x495   :  { %v3799_v8 = vadd.f32 %v9383_v15, %v3763_v28  ;;  %v3603_v1 = vmax.f32 %v3571_v39, 0.0 }
 0x496   :  { %v3832_v48 = vmax.f32 %v3800_v45, 0.0  ;;  %v3668_v26 = vadd.f32 1e-05, %v3604_v50 }
 0x497   :  { %v3831_v59 = vmax.f32 %v3799_v8, 0.0  ;;  %v7330_v29 = vpop.eup %7329  ;;  %v3667_v62 = vadd.f32 1e-05, %v3603_v1 }
 0x498   :  { %v3864_v14 = vmul.f32 %v3832_v48, %v3832_v48  ;;  %v7332_v60 = vpop.eup %7331  ;;  %v3730_v52 = vmul.f32 %v7330_v29, %v3634_v9  ;;  %7333 = vrsqrt.f32 %v3668_v26 }
 0x499   :  { %v3863_v27 = vmul.f32 %v3831_v59, %v3831_v59  ;;  %v3729_v40 = vmul.f32 %v7332_v60, %v3633_v43  ;;  %7335 = vrsqrt.f32 %v3667_v62  ;;  %v9495_v22 = vpop.f32.mrb[82].mxu0 }
 0x49a   :  { %v3766_v12 = vmul.f32 %v9372_v58, %v3730_v52  ;;  %v3542_v5 = vmul.f32 %v9495_v22, %v9495_v22  ;;  %v9500_v44 = vpop.f32.mrb[83].mxu0  ;;  %v3896_v19 = vmul.f32 %v3864_v14, %v3832_v48 }
 0x49b   :  { %v3895_v56 = vmul.f32 %v3863_v27, %v3831_v59  ;;  %v3765_v23 = vmul.f32 %v9372_v58, %v3729_v40  ;;  %v3541_v54 = vmul.f32 %v9500_v44, %v9500_v44  ;;  %v6780_v16 = vpop.f32.mrb[82].mxu1 }
 0x49c   :  { %v3802_v46 = vadd.f32 %v9383_v15, %v3766_v12  ;;  %v3574_v38 = vsub.f32 %v6780_v16, %v3542_v5  ;;  %v3454_v57 = vpop.f32.mrb[83].mxu1 }
 0x49d   :  { %6831 = vmatprep.mubr.msk.f32.mxu0 %vm1118_vm1, %v3895_v56  ;;  %v3801_v61 = vadd.f32 %v9383_v15, %v3765_v23  ;;  %v3573_v13 = vsub.f32 %v3454_v57, %v3541_v54 }
 0x49e   :  { %6832 = vmatmul.mubr.msk.f32.gmra.mrb[108].mxu0 %vm1118_vm1, %v3896_v19  ;;  %v3834_v55 = vmax.f32 %v3802_v46, 0.0  ;;  %v3606_v20 = vmax.f32 %v3574_v38, 0.0  ;;  %v3638_v46 = vsub.f32 %v9227_v21, %v9495_v22 }
 0x49f   :  { %v3833_v3 = vmax.f32 %v3801_v61, 0.0  ;;  %v3605_v33 = vmax.f32 %v3573_v13, 0.0 }
 0x4a0   :  { %v3866_v32 = vmul.f32 %v3834_v55, %v3834_v55  ;;  %v3670_v42 = vadd.f32 1e-05, %v3606_v20  ;;  %v3637_v20 = vsub.f32 %v9230_v2, %v9500_v44 }
 0x4a1   :  { %v3865_v7 = vmul.f32 %v3833_v3, %v3833_v3  ;;  %v3669_v28 = vadd.f32 1e-05, %v3605_v33 }
 0x4a2   :  { %v7334_v51 = vpop.eup %7333  ;;  %7337 = vrsqrt.f32 %v3670_v42  ;;  %v3898_v48 = vmul.f32 %v3866_v32, %v3834_v55 }
 0x4a3   :  { %v7336_v39 = vpop.eup %7335  ;;  %v3732_v45 = vmul.f32 %v7334_v51, %v3636_v11  ;;  %v3897_v50 = vmul.f32 %v3865_v7, %v3833_v3  ;;  %7339 = vrsqrt.f32 %v3669_v28  ;;  %v9511_v1 = vpop.f32.mrb[84].mxu0 }
 0x4a4   :  { %v3731_v8 = vmul.f32 %v7336_v39, %v3635_v35  ;;  %v3544_v9 = vmul.f32 %v9511_v1, %v9511_v1  ;;  %v9515_v26 = vpop.f32.mrb[85].mxu0 }
 0x4a5   :  { %6834 = vmatprep.mubr.msk.f32.mxu0 %vm1118_vm1, %v3897_v50  ;;  %v3768_v6 = vmul.f32 %v9372_v58, %v3732_v45  ;;  %v3543_v31 = vmul.f32 %v9515_v26, %v9515_v26  ;;  %v6783_v24 = vpop.f32.mrb[84].mxu1 }
 0x4a6   :  { %6835 = vmatmul.mubr.msk.f32.gmra.mrb[110].mxu0 %vm1118_vm1, %v3898_v48  ;;  %v3767_v18 = vmul.f32 %v9372_v58, %v3731_v8  ;;  %v3576_v59 = vsub.f32 %v6783_v24, %v3544_v9  ;;  %v3464_v29 = vpop.f32.mrb[85].mxu1 }
 0x4a7   :  { %v3804_v43 = vadd.f32 %v9383_v15, %v3768_v6  ;;  %v3575_v62 = vsub.f32 %v3464_v29, %v3543_v31 }
 0x4a8   :  { %v3803_v14 = vadd.f32 %v9383_v15, %v3767_v18  ;;  %v3608_v60 = vmax.f32 %v3576_v59, 0.0 }
 0x4a9   :  { %v9525_v52 = vpop.f32.mrb[86].mxu0  ;;  %v3836_v27 = vmax.f32 %v3804_v43, 0.0  ;;  %v3607_v40 = vmax.f32 %v3575_v62, 0.0 }
 0x4aa   :  { %v3546_v56 = vmul.f32 %v9525_v52, %v9525_v52  ;;  %v9529_v12 = vpop.f32.mrb[87].mxu0  ;;  %v3835_v5 = vmax.f32 %v3803_v14, 0.0  ;;  %v3672_v19 = vadd.f32 1e-05, %v3608_v60 }
 0x4ab   :  { %v3545_v23 = vmul.f32 %v9529_v12, %v9529_v12  ;;  %v6786_v54 = vpop.f32.mrb[86].mxu1  ;;  %v3868_v16 = vmul.f32 %v3836_v27, %v3836_v27  ;;  %v3671_v38 = vadd.f32 1e-05, %v3607_v40 }
 0x4ac   :  { %v3578_v57 = vsub.f32 %v6786_v54, %v3546_v56  ;;  %v3474_v61 = vpop.f32.mrb[87].mxu1  ;;  %v3867_v13 = vmul.f32 %v3835_v5, %v3835_v5  ;;  %v7338_v55 = vpop.eup %7337  ;;  %7341 = vrsqrt.f32 %v3672_v19  ;;  %v3640_v19 = vsub.f32 %v9243_v4, %v9511_v1 }
 0x4ad   :  { %v3577_v3 = vsub.f32 %v3474_v61, %v3545_v23  ;;  %v7340_v33 = vpop.eup %7339  ;;  %v3734_v32 = vmul.f32 %v7338_v55, %v3638_v46  ;;  %7343 = vrsqrt.f32 %v3671_v38  ;;  %v9537_v42 = vpop.f32.mrb[88].mxu0  ;;  %v3900_v28 = vmul.f32 %v3868_v16, %v3836_v27 }
 0x4ae   :  { %v3610_v11 = vmax.f32 %v3578_v57, 0.0  ;;  %v3899_v7 = vmul.f32 %v3867_v13, %v3835_v5  ;;  %v3733_v51 = vmul.f32 %v7340_v33, %v3637_v20  ;;  %v3548_v21 = vmul.f32 %v9537_v42, %v9537_v42  ;;  %v9541_v22 = vpop.f32.mrb[89].mxu0 }
 0x4af   :  { %v3609_v35 = vmax.f32 %v3577_v3, 0.0  ;;  %v3547_v2 = vmul.f32 %v9541_v22, %v9541_v22  ;;  %v6789_v44 = vpop.f32.mrb[88].mxu1  ;;  %v3770_v45 = vmul.f32 %v9372_v58, %v3734_v32  ;;  %v3639_v38 = vsub.f32 %v9246_v49, %v9515_v26 }
 0x4b0   :  { %v3674_v39 = vadd.f32 1e-05, %v3610_v11  ;;  %6837 = vmatprep.mubr.msk.f32.mxu0 %vm1118_vm1, %v3899_v7  ;;  %v3580_v8 = vsub.f32 %v6789_v44, %v3548_v21  ;;  %v3484_v48 = vpop.f32.mrb[89].mxu1  ;;  %v3769_v9 = vmul.f32 %v9372_v58, %v3733_v51  ;;  %v3642_v49 = vsub.f32 %v9258_v30, %v9525_v52 }
 0x4b1   :  { %v3673_v50 = vadd.f32 1e-05, %v3609_v35  ;;  %6838 = vmatmul.mubr.msk.f32.gmra.mrb[112].mxu0 %vm1118_vm1, %v3900_v28  ;;  %v3579_v6 = vsub.f32 %v3484_v48, %v3547_v2  ;;  %v9549_v31 = vpop.f32.mrb[90].mxu0  ;;  %v3806_v24 = vadd.f32 %v9383_v15, %v3770_v45  ;;  %v3641_v45 = vsub.f32 %v9262_v34, %v9529_v12 }
 0x4b2   :  { %7345 = vrsqrt.f32 %v3674_v39  ;;  %v3612_v18 = vmax.f32 %v3580_v8, 0.0  ;;  %v3550_v59 = vmul.f32 %v9549_v31, %v9549_v31  ;;  %v9554_v29 = vpop.f32.mrb[91].mxu0  ;;  %v3805_v14 = vadd.f32 %v9383_v15, %v3769_v9 }
 0x4b3   :  { %7347 = vrsqrt.f32 %v3673_v50  ;;  %v3611_v43 = vmax.f32 %v3579_v6, 0.0  ;;  %v3549_v62 = vmul.f32 %v9554_v29, %v9554_v29  ;;  %v6792_v60 = vpop.f32.mrb[90].mxu1  ;;  %v3838_v56 = vmax.f32 %v3806_v24, 0.0 }
 0x4b4   :  { %v3676_v27 = vadd.f32 1e-05, %v3612_v18  ;;  %v3582_v40 = vsub.f32 %v6792_v60, %v3550_v59  ;;  %v3494_v5 = vpop.f32.mrb[91].mxu1  ;;  %v3837_v54 = vmax.f32 %v3805_v14, 0.0  ;;  %v3644_v12 = vsub.f32 %v9274_v37, %v9537_v42 }
 0x4b5   :  { %v3675_v23 = vadd.f32 1e-05, %v3611_v43  ;;  %v3581_v16 = vsub.f32 %v3494_v5, %v3549_v62  ;;  %v3870_v61 = vmul.f32 %v3838_v56, %v3838_v56 }
 0x4b6   :  { %v7342_v46 = vpop.eup %7341  ;;  %7349 = vrsqrt.f32 %v3676_v27  ;;  %v3614_v57 = vmax.f32 %v3582_v40, 0.0  ;;  %v3869_v20 = vmul.f32 %v3837_v54, %v3837_v54  ;;  %v3643_v40 = vsub.f32 %v9278_v47, %v9541_v22 }
 0x4b7   :  { %v7344_v13 = vpop.eup %7343  ;;  %v3736_v55 = vmul.f32 %v7342_v46, %v3640_v19  ;;  %7351 = vrsqrt.f32 %v3675_v23  ;;  %v3613_v3 = vmax.f32 %v3581_v16, 0.0  ;;  %v3902_v21 = vmul.f32 %v3870_v61, %v3838_v56 }
 0x4b8   :  { %v3735_v32 = vmul.f32 %v7344_v13, %v3639_v38  ;;  %v3678_v11 = vadd.f32 1e-05, %v3614_v57  ;;  %v3901_v26 = vmul.f32 %v3869_v20, %v3837_v54  ;;  %v3646_v57 = vsub.f32 %v9289_v0, %v9549_v31 }
 0x4b9   :  { %v9563_v33 = vpop.f32.mrb[92].mxu0  ;;  %v3677_v7 = vadd.f32 1e-05, %v3613_v3  ;;  %v3772_v30 = vmul.f32 %v9372_v58, %v3736_v55  ;;  %v3645_v20 = vsub.f32 %v9293_v17, %v9554_v29 }
 0x4ba   :  { %v3552_v4 = vmul.f32 %v9563_v33, %v9563_v33  ;;  %v9567_v1 = vpop.f32.mrb[93].mxu0  ;;  %7353 = vrsqrt.f32 %v3678_v11  ;;  %v3771_v28 = vmul.f32 %v9372_v58, %v3735_v32  ;;  %6840 = vmatprep.mubr.msk.f32.mxu0 %vm1118_vm1, %v3901_v26 }
 0x4bb   :  { %v3551_v51 = vmul.f32 %v9567_v1, %v9567_v1  ;;  %v6795_v35 = vpop.f32.mrb[92].mxu1  ;;  %7355 = vrsqrt.f32 %v3677_v7  ;;  %6841 = vmatmul.mubr.msk.f32.gmra.mrb[114].mxu0 %vm1118_vm1, %v3902_v21  ;;  %v3808_v24 = vadd.f32 %v9383_v15, %v3772_v30 }
 0x4bc   :  { %v3584_v39 = vsub.f32 %v6795_v35, %v3552_v4  ;;  %v3504_v2 = vpop.f32.mrb[93].mxu1  ;;  %v7346_v44 = vpop.eup %7345  ;;  %v3807_v48 = vadd.f32 %v9383_v15, %v3771_v28 }
 0x4bd   :  { %v3583_v52 = vsub.f32 %v3504_v2, %v3551_v51  ;;  %v7348_v50 = vpop.eup %7347  ;;  %v3738_v8 = vmul.f32 %v7346_v44, %v3642_v49  ;;  %v3840_v62 = vmax.f32 %v3808_v24, 0.0  ;;  %v3647_v24 = vsub.f32 %v9310_v63, %v9567_v1 }
 0x4be   :  { %v3616_v9 = vmax.f32 %v3584_v39, 0.0  ;;  %v3737_v6 = vmul.f32 %v7348_v50, %v3641_v45  ;;  %v3839_v59 = vmax.f32 %v3807_v48, 0.0  ;;  %v3648_v50 = vsub.f32 %v9307_v25, %v9563_v33 }
 0x4bf   :  { %v3615_v18 = vmax.f32 %v3583_v52, 0.0  ;;  %v3774_v34 = vmul.f32 %v9372_v58, %v3738_v8  ;;  %v3872_v54 = vmul.f32 %v3840_v62, %v3840_v62 }
 0x4c0   :  { %v3680_v43 = vadd.f32 1e-05, %v3616_v9  ;;  %v3773_v60 = vmul.f32 %v9372_v58, %v3737_v6  ;;  %v7350_v27 = vpop.eup %7349  ;;  %v3871_v56 = vmul.f32 %v3839_v59, %v3839_v59 }
 0x4c1   :  { %v3679_v14 = vadd.f32 1e-05, %v3615_v18  ;;  %v3810_v5 = vadd.f32 %v9383_v15, %v3774_v34  ;;  %v7352_v19 = vpop.eup %7351  ;;  %v3740_v23 = vmul.f32 %v7350_v27, %v3644_v12  ;;  %v3904_v61 = vmul.f32 %v3872_v54, %v3840_v62 }
 0x4c2   :  { %7357 = vrsqrt.f32 %v3680_v43  ;;  %v3809_v16 = vadd.f32 %v9383_v15, %v3773_v60  ;;  %v3739_v46 = vmul.f32 %v7352_v19, %v3643_v40  ;;  %v3903_v37 = vmul.f32 %v3871_v56, %v3839_v59 }
 0x4c3   :  { %7359 = vrsqrt.f32 %v3679_v14  ;;  %v9589_v42 = vpop.f32.mrb[94].mxu0  ;;  %v3842_v38 = vmax.f32 %v3810_v5, 0.0  ;;  %v3776_v51 = vmul.f32 %v9372_v58, %v3740_v23 }
 0x4c4   :  { %v3554_v47 = vmul.f32 %v9589_v42, %v9589_v42  ;;  %v9595_v22 = vpop.f32.mrb[95].mxu0  ;;  %v3841_v13 = vmax.f32 %v3809_v16, 0.0  ;;  %v7354_v55 = vpop.eup %7353  ;;  %6843 = vmatprep.mubr.msk.f32.mxu0 %vm1118_vm1, %v3903_v37  ;;  %v3775_v0 = vmul.f32 %v9372_v58, %v3739_v46 }
 0x4c5   :  { %v3553_v3 = vmul.f32 %v9595_v22, %v9595_v22  ;;  %v6798_v32 = vpop.f32.mrb[94].mxu1  ;;  %v3874_v11 = vmul.f32 %v3842_v38, %v3842_v38  ;;  %v7356_v31 = vpop.eup %7355  ;;  %v3742_v4 = vmul.f32 %v7354_v55, %v3646_v57  ;;  %6844 = vmatmul.mubr.msk.f32.gmra.mrb[116].mxu0 %vm1118_vm1, %v3904_v61  ;;  %v3812_v39 = vadd.f32 %v9383_v15, %v3776_v51 }
 0x4c6   :  { %v3873_v49 = vmul.f32 %v3841_v13, %v3841_v13  ;;  %v3586_v26 = vsub.f32 %v6798_v32, %v3554_v47  ;;  %v3514_v7 = vpop.f32.mrb[95].mxu1  ;;  %v3741_v35 = vmul.f32 %v7356_v31, %v3645_v20  ;;  %v3811_v29 = vadd.f32 %v9383_v15, %v3775_v0 }
 0x4c7   :  { %v3585_v17 = vsub.f32 %v3514_v7, %v3553_v3  ;;  %v3778_v2 = vmul.f32 %v9372_v58, %v3742_v4  ;;  %v3906_v44 = vmul.f32 %v3874_v11, %v3842_v38  ;;  %v3844_v48 = vmax.f32 %v3812_v39, 0.0 }
 0x4c8   :  { %v3905_v21 = vmul.f32 %v3873_v49, %v3841_v13  ;;  %v3618_v28 = vmax.f32 %v3586_v26, 0.0  ;;  %v3843_v30 = vmax.f32 %v3811_v29, 0.0  ;;  %v3777_v52 = vmul.f32 %v9372_v58, %v3741_v35 }
 0x4c9   :  { %v3617_v45 = vmax.f32 %v3585_v17, 0.0  ;;  %v3814_v9 = vadd.f32 %v9383_v15, %v3778_v2  ;;  %v3876_v25 = vmul.f32 %v3844_v48, %v3844_v48  ;;  %v3650_v38 = vsub.f32 %v9329_v36, %v9589_v42 }
 0x4ca   :  { %6846 = vmatprep.mubr.msk.f32.mxu0 %vm1118_vm1, %v3905_v21  ;;  %v3682_v8 = vadd.f32 1e-05, %v3618_v28  ;;  %v3875_v59 = vmul.f32 %v3843_v30, %v3843_v30  ;;  %v3813_v43 = vadd.f32 %v9383_v15, %v3777_v52  ;;  %v3649_v47 = vsub.f32 %v9332_v41, %v9595_v22 }
 0x4cb   :  { %6847 = vmatmul.mubr.msk.f32.gmra.mrb[118].mxu0 %vm1118_vm1, %v3906_v44  ;;  %v3681_v18 = vadd.f32 1e-05, %v3617_v45  ;;  %v3846_v33 = vmax.f32 %v3814_v9, 0.0  ;;  %v3908_v27 = vmul.f32 %v3876_v25, %v3844_v48  ;;  %v10311_v7 = vsub.s32 2, %v7625_v10 }
 0x4cc   :  { %v7358_v6 = vpop.eup %7357  ;;  %7361 = vrsqrt.f32 %v3682_v8  ;;  %v3907_v14 = vmul.f32 %v3875_v59, %v3843_v30  ;;  %v3845_v60 = vmax.f32 %v3813_v43, 0.0 }
 0x4cd   :  { %v7360_v34 = vpop.eup %7359  ;;  %v3744_v12 = vmul.f32 %v7358_v6, %v3648_v50  ;;  %7363 = vrsqrt.f32 %v3681_v18  ;;  %v3878_v40 = vmul.f32 %v3846_v33, %v3846_v33  ;;  %v9640_v51 = vrot.slane %v9368_v53, %v10311_v7 }
 0x4ce   :  { %v3743_v62 = vmul.f32 %v7360_v34, %v3647_v24  ;;  %6849 = vmatprep.mubr.msk.f32.mxu0 %vm1118_vm1, %v3907_v14  ;;  %v3877_v63 = vmul.f32 %v3845_v60, %v3845_v60 }
 0x4cf   :  { %v3780_v56 = vmul.f32 %v9372_v58, %v3744_v12  ;;  %6850 = vmatmul.mubr.msk.f32.gmra.mrb[120].mxu0 %vm1118_vm1, %v3908_v27  ;;  %v3910_v54 = vmul.f32 %v3878_v40, %v3846_v33 }
 0x4d0   :  { %v3779_v1 = vmul.f32 %v9372_v58, %v3743_v62  ;;  %v3909_v19 = vmul.f32 %v3877_v63, %v3845_v60 }
 0x4d1   :  { %v3816_v5 = vadd.f32 %v9383_v15, %v3780_v56 }
 0x4d2   :  { %v3815_v23 = vadd.f32 %v9383_v15, %v3779_v1  ;;  %6852 = vmatprep.mubr.msk.f32.mxu0 %vm1118_vm1, %v3909_v19 }
 0x4d3   :  { %v3848_v16 = vmax.f32 %v3816_v5, 0.0  ;;  %6853 = vmatmul.mubr.msk.f32.gmra.mrb[122].mxu0 %vm1118_vm1, %v3910_v54 }
 0x4d4   :  { %v3847_v46 = vmax.f32 %v3815_v23, 0.0 }
 0x4d5   :  { %v3880_v37 = vmul.f32 %v3848_v16, %v3848_v16 }
 0x4d6   :  { %v3879_v57 = vmul.f32 %v3847_v46, %v3847_v46  ;;  %v7362_v61 = vpop.eup %7361 }
 0x4d7   :  { %v7364_v13 = vpop.eup %7363  ;;  %v3746_v55 = vmul.f32 %v7362_v61, %v3650_v38  ;;  %v3912_v32 = vmul.f32 %v3880_v37, %v3848_v16 }
 0x4d8   :  { %v3911_v20 = vmul.f32 %v3879_v57, %v3847_v46  ;;  %v3745_v3 = vmul.f32 %v7364_v13, %v3649_v47 }
 0x4d9   :  { %v3782_v11 = vmul.f32 %v9372_v58, %v3746_v55 }
 0x4da   :  { %6855 = vmatprep.mubr.msk.f32.mxu0 %vm1118_vm1, %v3911_v20  ;;  %v3781_v0 = vmul.f32 %v9372_v58, %v3745_v3 }
 0x4db   :  { %6856 = vmatmul.mubr.msk.f32.gmra.mrb[124].mxu0 %vm1118_vm1, %v3912_v32  ;;  %v3818_v36 = vadd.f32 %v9383_v15, %v3782_v11 }
 0x4dc   :  { %v3817_v42 = vadd.f32 %v9383_v15, %v3781_v0 }
 0x4dd   :  { %v3850_v31 = vmax.f32 %v3818_v36, 0.0 }
 0x4de   :  { %v3849_v4 = vmax.f32 %v3817_v42, 0.0 }
 0x4df   :  { %v3882_v41 = vmul.f32 %v3850_v31, %v3850_v31 }
 0x4e0   :  { %v3881_v22 = vmul.f32 %v3849_v4, %v3849_v4 }
 0x4e1   :  { %v3914_v26 = vmul.f32 %v3882_v41, %v3850_v31 }
 0x4e2   :  { %v3913_v49 = vmul.f32 %v3881_v22, %v3849_v4 }
 0x4e4   :  { %6858 = vmatprep.mubr.msk.f32.mxu0 %vm1118_vm1, %v3913_v49 }
 0x4e5   :  { %6859 = vmatmul.mubr.msk.f32.gmra.mrb[126].mxu0 %vm1118_vm1, %v3914_v26 }
 0x538   :  { %v6815_v58 = vpop.f32.mrb[96].mxu0 }
 0x539   :  { %v9643_v35 = vadd.f32 %v6815_v58, %v9640_v51  ;;  %v4092_v15 = vpop.f32.mrb[97].mxu0 }
 0x53a   :  { %v9646_v17 = vadd.f32 %v4092_v15, %v9640_v51 }
 0x53b   :  { %v4573_v21 = vmul.f32 %v9643_v35, %v9643_v35 }
 0x53c   :  { %v4572_v29 = vmul.f32 %v9646_v17, %v9646_v17  ;;  %6875 = vmatprep.mubr.msk.f32.mxu1 %vm1118_vm1, %v9646_v17 }
 0x53d   :  { %6876 = vmatmul.mubr.msk.f32.vlgmr.msra.gmra.mrb[96].mxu1 %vm1118_vm1, %v9643_v35 }
 0x53e   :  { %6937 = vmatprep.mubr.msk.f32.mxu0 %vm1118_vm1, %v4572_v29 }
 0x53f   :  { %6938 = vmatmul.mubr.msk.f32.vlgmr.msra.gmra.mrb[128].mxu0 %vm1118_vm1, %v4573_v21 }
 0x540   :  { %v6818_v28 = vpop.f32.mrb[98].mxu0 }
 0x541   :  { %v9657_v53 = vadd.f32 %v6818_v28, %v9640_v51  ;;  %v4102_v39 = vpop.f32.mrb[99].mxu0 }
 0x542   :  { %v9661_v2 = vadd.f32 %v4102_v39, %v9640_v51 }
 0x543   :  { %v4575_v45 = vmul.f32 %v9657_v53, %v9657_v53 }
 0x544   :  { %v4574_v44 = vmul.f32 %v9661_v2, %v9661_v2  ;;  %6878 = vmatprep.mubr.msk.f32.mxu1 %vm1118_vm1, %v9661_v2 }
 0x545   :  { %6879 = vmatmul.mubr.msk.f32.gmra.mrb[98].mxu1 %vm1118_vm1, %v9657_v53 }
 0x546   :  { %6940 = vmatprep.mubr.msk.f32.mxu0 %vm1118_vm1, %v4574_v44 }
 0x547   :  { %6941 = vmatmul.mubr.msk.f32.gmra.mrb[130].mxu0 %vm1118_vm1, %v4575_v45 }
 0x549   :  { %v6821_v30 = vpop.f32.mrb[100].mxu0 }
 0x54a   :  { %v9675_v52 = vadd.f32 %v6821_v30, %v9640_v51  ;;  %v4112_v50 = vpop.f32.mrb[101].mxu0 }
 0x54b   :  { %v9678_v8 = vadd.f32 %v4112_v50, %v9640_v51 }
 0x54c   :  { %v4577_v9 = vmul.f32 %v9675_v52, %v9675_v52 }
 0x54d   :  { %v4576_v48 = vmul.f32 %v9678_v8, %v9678_v8  ;;  %6881 = vmatprep.mubr.msk.f32.mxu1 %vm1118_vm1, %v9678_v8 }
 0x54e   :  { %6882 = vmatmul.mubr.msk.f32.gmra.mrb[100].mxu1 %vm1118_vm1, %v9675_v52 }
 0x54f   :  { %6943 = vmatprep.mubr.msk.f32.mxu0 %vm1118_vm1, %v4576_v48 }
 0x550   :  { %6944 = vmatmul.mubr.msk.f32.gmra.mrb[132].mxu0 %vm1118_vm1, %v4577_v9 }
 0x553   :  { %v6824_v6 = vpop.f32.mrb[102].mxu0 }
 0x554   :  { %v9691_v24 = vadd.f32 %v6824_v6, %v9640_v51  ;;  %v4122_v18 = vpop.f32.mrb[103].mxu0 }
 0x555   :  { %v9694_v59 = vadd.f32 %v4122_v18, %v9640_v51 }
 0x556   :  { %v4579_v34 = vmul.f32 %v9691_v24, %v9691_v24 }
 0x557   :  { %v4578_v43 = vmul.f32 %v9694_v59, %v9694_v59  ;;  %6884 = vmatprep.mubr.msk.f32.mxu1 %vm1118_vm1, %v9694_v59 }
 0x558   :  { %6885 = vmatmul.mubr.msk.f32.gmra.mrb[102].mxu1 %vm1118_vm1, %v9691_v24 }
 0x559   :  { %6946 = vmatprep.mubr.msk.f32.mxu0 %vm1118_vm1, %v4578_v43 }
 0x55a   :  { %6947 = vmatmul.mubr.msk.f32.gmra.mrb[134].mxu0 %vm1118_vm1, %v4579_v34 }
 0x55d   :  { %v6827_v12 = vpop.f32.mrb[104].mxu0 }
 0x55e   :  { %v9707_v25 = vadd.f32 %v6827_v12, %v9640_v51  ;;  %v4132_v33 = vpop.f32.mrb[105].mxu0 }
 0x55f   :  { %v9710_v62 = vadd.f32 %v4132_v33, %v9640_v51 }
 0x560   :  { %v4581_v60 = vmul.f32 %v9707_v25, %v9707_v25 }
 0x561   :  { %v4580_v14 = vmul.f32 %v9710_v62, %v9710_v62  ;;  %6887 = vmatprep.mubr.msk.f32.mxu1 %vm1118_vm1, %v9710_v62 }
 0x562   :  { %6888 = vmatmul.mubr.msk.f32.gmra.mrb[104].mxu1 %vm1118_vm1, %v9707_v25 }
 0x563   :  { %6949 = vmatprep.mubr.msk.f32.mxu0 %vm1118_vm1, %v4580_v14 }
 0x564   :  { %6950 = vmatmul.mubr.msk.f32.gmra.mrb[136].mxu0 %vm1118_vm1, %v4581_v60 }
 0x566   :  { %v6830_v27 = vpop.f32.mrb[106].mxu0 }
 0x567   :  { %v9723_v40 = vadd.f32 %v6830_v27, %v9640_v51  ;;  %v4142_v56 = vpop.f32.mrb[107].mxu0 }
 0x568   :  { %v9726_v63 = vadd.f32 %v4142_v56, %v9640_v51 }
 0x569   :  { %v4583_v5 = vmul.f32 %v9723_v40, %v9723_v40 }
 0x56a   :  { %v4582_v1 = vmul.f32 %v9726_v63, %v9726_v63  ;;  %6890 = vmatprep.mubr.msk.f32.mxu1 %vm1118_vm1, %v9726_v63 }
 0x56b   :  { %6891 = vmatmul.mubr.msk.f32.gmra.mrb[106].mxu1 %vm1118_vm1, %v9723_v40 }
 0x56c   :  { %6952 = vmatprep.mubr.msk.f32.mxu0 %vm1118_vm1, %v4582_v1 }
 0x56d   :  { %6953 = vmatmul.mubr.msk.f32.gmra.mrb[138].mxu0 %vm1118_vm1, %v4583_v5 }
 0x571   :  { %v6833_v19 = vpop.f32.mrb[108].mxu0 }
 0x572   :  { %v9739_v23 = vadd.f32 %v6833_v19, %v9640_v51  ;;  %v4152_v54 = vpop.f32.mrb[109].mxu0 }
 0x573   :  { %v9742_v16 = vadd.f32 %v4152_v54, %v9640_v51 }
 0x574   :  { %v4585_v37 = vmul.f32 %v9739_v23, %v9739_v23 }
 0x575   :  { %v4584_v46 = vmul.f32 %v9742_v16, %v9742_v16  ;;  %6893 = vmatprep.mubr.msk.f32.mxu1 %vm1118_vm1, %v9742_v16 }
 0x576   :  { %6894 = vmatmul.mubr.msk.f32.gmra.mrb[108].mxu1 %vm1118_vm1, %v9739_v23 }
 0x577   :  { %6955 = vmatprep.mubr.msk.f32.mxu0 %vm1118_vm1, %v4584_v46 }
 0x578   :  { %6956 = vmatmul.mubr.msk.f32.gmra.mrb[140].mxu0 %vm1118_vm1, %v4585_v37 }
 0x579   :  { %v6836_v38 = vpop.f32.mrb[110].mxu0 }
 0x57a   :  { %v9755_v57 = vadd.f32 %v6836_v38, %v9640_v51  ;;  %v4162_v61 = vpop.f32.mrb[111].mxu0  ;;  %v5317_v38 = vld [vmem:[#allocation2] sm:$0xff] }
 0x57b   :  { %v9758_v47 = vadd.f32 %v4162_v61, %v9640_v51  ;;  %v5318_v61 = vld [vmem:[#allocation2 + $0x8] sm:$0xff] }
 0x57c   :  { %v4587_v55 = vmul.f32 %v9755_v57, %v9755_v57 }
 0x57d   :  { %v4586_v13 = vmul.f32 %v9758_v47, %v9758_v47  ;;  %6896 = vmatprep.mubr.msk.f32.mxu1 %vm1118_vm1, %v9758_v47 }
 0x57e   :  { %6897 = vmatmul.mubr.msk.f32.gmra.mrb[110].mxu1 %vm1118_vm1, %v9755_v57 }
 0x57f   :  { %6958 = vmatprep.mubr.msk.f32.mxu0 %vm1118_vm1, %v4586_v13 }
 0x580   :  { %6959 = vmatmul.mubr.msk.f32.gmra.mrb[142].mxu0 %vm1118_vm1, %v4587_v55  ;;  %v7155_v55 = vpack.c.bf16 %v5318_v61, %v5317_v38 }
 0x582   :  { %7156 = vmatprep.subr.bf16.mxu1 %v7155_v55 }
 0x583   :  { %7158 = vmatpush3.bf16.msra.mxu1 %v7155_v55 }
 0x584   :  { %v6839_v20 = vpop.f32.mrb[112].mxu0 }
 0x585   :  { %v9771_v3 = vadd.f32 %v6839_v20, %v9640_v51  ;;  %v4172_v32 = vpop.f32.mrb[113].mxu0 }
 0x586   :  { %v9774_v11 = vadd.f32 %v4172_v32, %v9640_v51 }
 0x587   :  { %v4589_v36 = vmul.f32 %v9771_v3, %v9771_v3 }
 0x588   :  { %v4588_v0 = vmul.f32 %v9774_v11, %v9774_v11  ;;  %6899 = vmatprep.mubr.msk.f32.mxu1 %vm1118_vm1, %v9774_v11 }
 0x589   :  { %6900 = vmatmul.mubr.msk.f32.gmra.mrb[112].mxu1 %vm1118_vm1, %v9771_v3 }
 0x58a   :  { %6961 = vmatprep.mubr.msk.f32.mxu0 %vm1118_vm1, %v4588_v0 }
 0x58b   :  { %6962 = vmatmul.mubr.msk.f32.gmra.mrb[144].mxu0 %vm1118_vm1, %v4589_v36 }
 0x58e   :  { %v6842_v42 = vpop.f32.mrb[114].mxu0 }
 0x58f   :  { %v9787_v31 = vadd.f32 %v6842_v42, %v9640_v51  ;;  %v4182_v4 = vpop.f32.mrb[115].mxu0 }
 0x590   :  { %v9790_v41 = vadd.f32 %v4182_v4, %v9640_v51  ;;  %v5319_v4 = vld [vmem:[#allocation2 + $0x10] sm:$0xff] }
 0x591   :  { %v4591_v49 = vmul.f32 %v9787_v31, %v9787_v31 }
 0x592   :  { %v4590_v22 = vmul.f32 %v9790_v41, %v9790_v41  ;;  %6902 = vmatprep.mubr.msk.f32.mxu1 %vm1118_vm1, %v9790_v41 }
 0x593   :  { %6903 = vmatmul.mubr.msk.f32.gmra.mrb[114].mxu1 %vm1118_vm1, %v9787_v31 }
 0x594   :  { %6964 = vmatprep.mubr.msk.f32.mxu0 %vm1118_vm1, %v4590_v22  ;;  %v5320_v22 = vld [vmem:[#allocation2 + $0x18] sm:$0xff] }
 0x595   :  { %6965 = vmatmul.mubr.msk.f32.gmra.mrb[146].mxu0 %vm1118_vm1, %v4591_v49  ;;  %v5321_v49 = vld [vmem:[#allocation2 + $0x20] sm:$0xff] }
 0x598   :  { %v6845_v26 = vpop.f32.mrb[116].mxu0 }
 0x599   :  { %v9803_v7 = vadd.f32 %v6845_v26, %v9640_v51  ;;  %v4192_v58 = vpop.f32.mrb[117].mxu0  ;;  %v5322_v26 = vld [vmem:[#allocation2 + $0x28] sm:$0xff] }
 0x59a   :  { %v9806_v15 = vadd.f32 %v4192_v58, %v9640_v51  ;;  %v7163_v58 = vpack.c.bf16 %v5322_v26, %v5321_v49  ;;  %v7433_v49 = vld [vmem:[%s10298_s1 + $0x8] sm:$0xff]  ;;  %v10312_v26 = vsub.s32 3, %v7625_v10 }
 0x59b   :  { %v4593_v21 = vmul.f32 %v9803_v7, %v9803_v7 }
 0x59c   :  { %v4592_v29 = vmul.f32 %v9806_v15, %v9806_v15  ;;  %6905 = vmatprep.mubr.msk.f32.mxu1 %vm1118_vm1, %v9806_v15 }
 0x59d   :  { %6906 = vmatmul.mubr.msk.f32.gmra.mrb[116].mxu1 %vm1118_vm1, %v9803_v7 }
 0x59e   :  { %v6848_v28 = vpop.f32.mrb[118].mxu0  ;;  %6967 = vmatprep.mubr.msk.f32.mxu0 %vm1118_vm1, %v4592_v29  ;;  %v5323_v29 = vld [vmem:[#allocation2 + $0x30] sm:$0x3] }
 0x59f   :  { %v9818_v39 = vadd.f32 %v6848_v28, %v9640_v51  ;;  %v4202_v44 = vpop.f32.mrb[119].mxu0  ;;  %6968 = vmatmul.mubr.msk.f32.gmra.mrb[148].mxu0 %vm1118_vm1, %v4593_v21 }
 0x5a0   :  { %v9822_v45 = vadd.f32 %v4202_v44, %v9640_v51 }
 0x5a1   :  { %v4595_v50 = vmul.f32 %v9818_v39, %v9818_v39 }
 0x5a2   :  { %v4594_v30 = vmul.f32 %v9822_v45, %v9822_v45  ;;  %6908 = vmatprep.mubr.msk.f32.mxu1 %vm1118_vm1, %v9822_v45  ;;  %v6851_v48 = vpop.f32.mrb[120].mxu0 }
 0x5a3   :  { %6909 = vmatmul.mubr.msk.f32.gmra.mrb[118].mxu1 %vm1118_vm1, %v9818_v39  ;;  %v9834_v9 = vadd.f32 %v6851_v48, %v9640_v51  ;;  %v4212_v6 = vpop.f32.mrb[121].mxu0 }
 0x5a4   :  { %6970 = vmatprep.mubr.msk.f32.mxu0 %vm1118_vm1, %v4594_v30  ;;  %v9838_v18 = vadd.f32 %v4212_v6, %v9640_v51 }
 0x5a5   :  { %6971 = vmatmul.mubr.msk.f32.gmra.mrb[150].mxu0 %vm1118_vm1, %v4595_v50  ;;  %v4597_v12 = vmul.f32 %v9834_v9, %v9834_v9 }
 0x5a6   :  { %v4596_v43 = vmul.f32 %v9838_v18, %v9838_v18  ;;  %6911 = vmatprep.mubr.msk.f32.mxu1 %vm1118_vm1, %v9838_v18  ;;  %v6854_v34 = vpop.f32.mrb[122].mxu0 }
 0x5a7   :  { %6912 = vmatmul.mubr.msk.f32.gmra.mrb[120].mxu1 %vm1118_vm1, %v9834_v9  ;;  %v9849_v33 = vadd.f32 %v6854_v34, %v9640_v51  ;;  %v4222_v14 = vpop.f32.mrb[123].mxu0 }
 0x5a8   :  { %6973 = vmatprep.mubr.msk.f32.mxu0 %vm1118_vm1, %v4596_v43  ;;  %v9853_v60 = vadd.f32 %v4222_v14, %v9640_v51 }
 0x5a9   :  { %6974 = vmatmul.mubr.msk.f32.gmra.mrb[152].mxu0 %vm1118_vm1, %v4597_v12  ;;  %v4599_v56 = vmul.f32 %v9849_v33, %v9849_v33 }
 0x5aa   :  { %v4598_v27 = vmul.f32 %v9853_v60, %v9853_v60  ;;  %6914 = vmatprep.mubr.msk.f32.mxu1 %vm1118_vm1, %v9853_v60 }
 0x5ab   :  { %6915 = vmatmul.mubr.msk.f32.gmra.mrb[122].mxu1 %vm1118_vm1, %v9849_v33 }
 0x5ac   :  { %6976 = vmatprep.mubr.msk.f32.mxu0 %vm1118_vm1, %v4598_v27 }
 0x5ad   :  { %6977 = vmatmul.mubr.msk.f32.gmra.mrb[154].mxu0 %vm1118_vm1, %v4599_v56 }
 0x5ae   :  { %v6857_v1 = vpop.f32.mrb[124].mxu0 }
 0x5af   :  { %v9867_v5 = vadd.f32 %v6857_v1, %v9640_v51  ;;  %v4232_v19 = vpop.f32.mrb[125].mxu0 }
 0x5b0   :  { %v9870_v54 = vadd.f32 %v4232_v19, %v9640_v51 }
 0x5b1   :  { %v4601_v37 = vmul.f32 %v9867_v5, %v9867_v5 }
 0x5b2   :  { %v4600_v46 = vmul.f32 %v9870_v54, %v9870_v54  ;;  %6917 = vmatprep.mubr.msk.f32.mxu1 %vm1118_vm1, %v9870_v54 }
 0x5b3   :  { %6918 = vmatmul.mubr.msk.f32.gmra.mrb[124].mxu1 %vm1118_vm1, %v9867_v5 }
 0x5b4   :  { %6979 = vmatprep.mubr.msk.f32.mxu0 %vm1118_vm1, %v4600_v46 }
 0x5b5   :  { %6980 = vmatmul.mubr.msk.f32.gmra.mrb[156].mxu0 %vm1118_vm1, %v4601_v37 }
 0x5b8   :  { %v6860_v13 = vpop.f32.mrb[126].mxu0 }
 0x5b9   :  { %v9883_v20 = vadd.f32 %v6860_v13, %v9640_v51  ;;  %v4242_v32 = vpop.f32.mrb[127].mxu0 }
 0x5ba   :  { %v9886_v0 = vadd.f32 %v4242_v32, %v9640_v51  ;;  %v7159_v51 = vpack.c.bf16 %v5320_v22, %v5319_v4 }
 0x5bb   :  { %v4603_v42 = vmul.f32 %v9883_v20, %v9883_v20 }
 0x5bc   :  { %v4602_v36 = vmul.f32 %v9886_v0, %v9886_v0  ;;  %6920 = vmatprep.mubr.msk.f32.mxu1 %vm1118_vm1, %v9886_v0  ;;  %7160 = vmatprep.subr.bf16.mxu1 %v7159_v51 }
 0x5bd   :  { %6921 = vmatmul.mubr.msk.f32.gmra.mrb[126].mxu1 %vm1118_vm1, %v9883_v20 }
 0x5be   :  { %6982 = vmatprep.mubr.msk.f32.mxu0 %vm1118_vm1, %v4602_v36  ;;  %7162 = vmatpush3.bf16.msra.mxu1 %v7159_v51 }
 0x5bf   :  { %6983 = vmatmul.mubr.msk.f32.gmra.mrb[158].mxu0 %vm1118_vm1, %v4603_v42  ;;  %7164 = vmatprep.subr.bf16.mxu1 %v7163_v58 }
 0x5c2   :  { %7166 = vmatpush3.bf16.msra.mxu1 %v7163_v58  ;;  %v9911_v58 = vrot.slane %v7433_v49, %v10312_v26 }
 0x5c3   :  { %6997 = vmatprep.subr.msk.mxu1 %vm1215_vm0, %v5323_v29 }
 0x5c6   :  { %6998 = vmatpush3.msk.msra.mxu1 %vm1215_vm0, %v5323_v29 }
 0x610   :  { %v6877_v21 = vpop.f32.mrb[96].mxu1 }
 0x611   :  { %v4926_v28 = vmul.f32 %v6877_v21, %v6877_v21  ;;  %v4413_v44 = vpop.f32.mrb[97].mxu1  ;;  %v5022_v29 = vsub.f32 %v9643_v35, %v6877_v21 }
 0x612   :  { %v4925_v30 = vmul.f32 %v4413_v44, %v4413_v44  ;;  %v6939_v50 = vpop.f32.mrb[128].mxu0 }
 0x613   :  { %v4958_v48 = vsub.f32 %v6939_v50, %v4926_v28  ;;  %v4766_v6 = vpop.f32.mrb[129].mxu0 }
 0x614   :  { %v4957_v43 = vsub.f32 %v4766_v6, %v4925_v30 }
 0x615   :  { %v4990_v34 = vmax.f32 %v4958_v48, 0.0  ;;  %v5021_v48 = vsub.f32 %v9646_v17, %v4413_v44 }
 0x616   :  { %v4989_v14 = vmax.f32 %v4957_v43, 0.0 }
 0x617   :  { %v5054_v1 = vadd.f32 1e-05, %v4990_v34 }
 0x618   :  { %v6880_v12 = vpop.f32.mrb[98].mxu1  ;;  %v5053_v37 = vadd.f32 1e-05, %v4989_v14  ;;  %v10313_v14 = vsub.s32 4, %v7625_v10 }
 0x619   :  { %v4928_v27 = vmul.f32 %v6880_v12, %v6880_v12  ;;  %v4423_v56 = vpop.f32.mrb[99].mxu1  ;;  %7365 = vrsqrt.f32 %v5054_v1 }
 0x61a   :  { %v4927_v19 = vmul.f32 %v4423_v56, %v4423_v56  ;;  %v6942_v46 = vpop.f32.mrb[130].mxu0  ;;  %7367 = vrsqrt.f32 %v5053_v37 }
 0x61b   :  { %v4960_v38 = vsub.f32 %v6942_v46, %v4928_v27  ;;  %v4776_v61 = vpop.f32.mrb[131].mxu0  ;;  %v9919_v27 = vrot.slane %v7433_v49, %v10313_v14 }
 0x61c   :  { %v4959_v13 = vsub.f32 %v4776_v61, %v4927_v19 }
 0x61d   :  { %v4992_v55 = vmax.f32 %v4960_v38, 0.0  ;;  %v5024_v38 = vsub.f32 %v9657_v53, %v6880_v12 }
 0x61e   :  { %v4991_v32 = vmax.f32 %v4959_v13, 0.0 }
 0x61f   :  { %v5056_v36 = vadd.f32 1e-05, %v4992_v55  ;;  %v5023_v55 = vsub.f32 %v9661_v2, %v4423_v56 }
 0x620   :  { %v5055_v42 = vadd.f32 1e-05, %v4991_v32 }
 0x621   :  { %7369 = vrsqrt.f32 %v5056_v36  ;;  %v9900_v4 = vpop.f32.mrb[100].mxu1 }
 0x622   :  { %7371 = vrsqrt.f32 %v5055_v42  ;;  %v4930_v22 = vmul.f32 %v9900_v4, %v9900_v4  ;;  %v9904_v51 = vpop.f32.mrb[101].mxu1 }
 0x623   :  { %v4929_v28 = vmul.f32 %v9904_v51, %v9904_v51  ;;  %v6945_v30 = vpop.f32.mrb[132].mxu0  ;;  %v7366_v50 = vpop.eup %7365 }
 0x624   :  { %v4962_v6 = vsub.f32 %v6945_v30, %v4930_v22  ;;  %v4786_v43 = vpop.f32.mrb[133].mxu0  ;;  %v7368_v34 = vpop.eup %7367  ;;  %v5118_v1 = vmul.f32 %v7366_v50, %v5022_v29 }
 0x625   :  { %v4961_v19 = vsub.f32 %v4786_v43, %v4929_v28  ;;  %v5117_v46 = vmul.f32 %v7368_v34, %v5021_v48 }
 0x626   :  { %v4994_v37 = vmax.f32 %v4962_v6, 0.0  ;;  %v5154_v35 = vmul.f32 %v9911_v58, %v5118_v1 }
 0x627   :  { %v4993_v21 = vmax.f32 %v4961_v19, 0.0  ;;  %v5153_v13 = vmul.f32 %v9911_v58, %v5117_v46 }
 0x628   :  { %v5058_v61 = vadd.f32 1e-05, %v4994_v37  ;;  %v5190_v44 = vadd.f32 %v9919_v27, %v5154_v35 }
 0x629   :  { %v5057_v10 = vadd.f32 1e-05, %v4993_v21  ;;  %v5189_v56 = vadd.f32 %v9919_v27, %v5153_v13 }
 0x62a   :  { %7373 = vrsqrt.f32 %v5058_v61  ;;  %v5222_v53 = vmax.f32 %v5190_v44, 0.0  ;;  %v5026_v61 = vsub.f32 %v9675_v52, %v9900_v4 }
 0x62b   :  { %v7370_v17 = vpop.eup %7369  ;;  %v9926_v32 = vpop.f32.mrb[102].mxu1  ;;  %7375 = vrsqrt.f32 %v5057_v10  ;;  %v5221_v43 = vmax.f32 %v5189_v56, 0.0 }
 0x62c   :  { %v7372_v36 = vpop.eup %7371  ;;  %v5120_v42 = vmul.f32 %v7370_v17, %v5024_v38  ;;  %v4932_v22 = vmul.f32 %v9926_v32, %v9926_v32  ;;  %v9930_v49 = vpop.f32.mrb[103].mxu1  ;;  %v5254_v1 = vmul.f32 %v5222_v53, %v5222_v53 }
 0x62d   :  { %v5119_v12 = vmul.f32 %v7372_v36, %v5023_v55  ;;  %v4931_v26 = vmul.f32 %v9930_v49, %v9930_v49  ;;  %v6948_v29 = vpop.f32.mrb[134].mxu0  ;;  %v5253_v37 = vmul.f32 %v5221_v43, %v5221_v43 }
 0x62e   :  { %v4964_v28 = vsub.f32 %v6948_v29, %v4932_v22  ;;  %v4796_v2 = vpop.f32.mrb[135].mxu0  ;;  %v5156_v30 = vmul.f32 %v9911_v58, %v5120_v42  ;;  %v5286_v44 = vmul.f32 %v5254_v1, %v5222_v53  ;;  %v5025_v42 = vsub.f32 %v9678_v8, %v9904_v51 }
 0x62f   :  { %v4963_v50 = vsub.f32 %v4796_v2, %v4931_v26  ;;  %v5155_v48 = vmul.f32 %v9911_v58, %v5119_v12  ;;  %v5285_v13 = vmul.f32 %v5253_v37, %v5221_v43  ;;  %v5028_v1 = vsub.f32 %v9691_v24, %v9926_v32 }
 0x630   :  { %v4996_v6 = vmax.f32 %v4964_v28, 0.0  ;;  %v5192_v34 = vadd.f32 %v9919_v27, %v5156_v30 }
 0x631   :  { %v4995_v14 = vmax.f32 %v4963_v50, 0.0  ;;  %v5191_v19 = vadd.f32 %v9919_v27, %v5155_v48  ;;  %6999 = vmatprep.mubr.msk.f32.mxu1 %vm1118_vm1, %v5285_v13 }
 0x632   :  { %v5060_v46 = vadd.f32 1e-05, %v4996_v6  ;;  %v5224_v35 = vmax.f32 %v5192_v34, 0.0  ;;  %7000 = vmatmul.mubr.msk.f32.vlgmr.msra.gmra.mrb[128].mxu1 %vm1118_vm1, %v5286_v44 }
 0x633   :  { %v5059_v21 = vadd.f32 1e-05, %v4995_v14  ;;  %v5223_v38 = vmax.f32 %v5191_v19, 0.0 }
 0x634   :  { %7377 = vrsqrt.f32 %v5060_v46  ;;  %v5256_v10 = vmul.f32 %v5224_v35, %v5224_v35  ;;  %v7374_v36 = vpop.eup %7373 }
 0x635   :  { %7379 = vrsqrt.f32 %v5059_v21  ;;  %v9941_v17 = vpop.f32.mrb[104].mxu1  ;;  %v5255_v55 = vmul.f32 %v5223_v38, %v5223_v38  ;;  %v7376_v52 = vpop.eup %7375  ;;  %v5122_v4 = vmul.f32 %v7374_v36, %v5026_v61 }
 0x636   :  { %v4934_v22 = vmul.f32 %v9941_v17, %v9941_v17  ;;  %v9947_v12 = vpop.f32.mrb[105].mxu1  ;;  %v5121_v28 = vmul.f32 %v7376_v52, %v5025_v42  ;;  %v5288_v51 = vmul.f32 %v5256_v10, %v5224_v35  ;;  %v5027_v35 = vsub.f32 %v9694_v59, %v9930_v49 }
 0x637   :  { %v4933_v26 = vmul.f32 %v9947_v12, %v9947_v12  ;;  %v6951_v29 = vpop.f32.mrb[136].mxu0  ;;  %v5287_v53 = vmul.f32 %v5255_v55, %v5223_v38  ;;  %v5158_v30 = vmul.f32 %v9911_v58, %v5122_v4 }
 0x638   :  { %v4966_v2 = vsub.f32 %v6951_v29, %v4934_v22  ;;  %v4806_v56 = vpop.f32.mrb[137].mxu0  ;;  %v5157_v48 = vmul.f32 %v9911_v58, %v5121_v28 }
 0x639   :  { %v4965_v8 = vsub.f32 %v4806_v56, %v4933_v26  ;;  %7002 = vmatprep.mubr.msk.f32.mxu1 %vm1118_vm1, %v5287_v53  ;;  %v5194_v43 = vadd.f32 %v9919_v27, %v5158_v30 }
 0x63a   :  { %v4998_v50 = vmax.f32 %v4966_v2, 0.0  ;;  %7003 = vmatmul.mubr.msk.f32.gmra.mrb[130].mxu1 %vm1118_vm1, %v5288_v51  ;;  %v5193_v14 = vadd.f32 %v9919_v27, %v5157_v48  ;;  %v5030_v48 = vsub.f32 %v9707_v25, %v9941_v17 }
 0x63b   :  { %v4997_v6 = vmax.f32 %v4965_v8, 0.0  ;;  %v5226_v46 = vmax.f32 %v5194_v43, 0.0 }
 0x63c   :  { %v5062_v34 = vadd.f32 1e-05, %v4998_v50  ;;  %v5225_v38 = vmax.f32 %v5193_v14, 0.0 }
 0x63d   :  { %v5061_v19 = vadd.f32 1e-05, %v4997_v6  ;;  %v5258_v49 = vmul.f32 %v5226_v46, %v5226_v46 }
 0x63e   :  { %v7378_v37 = vpop.eup %7377  ;;  %7381 = vrsqrt.f32 %v5062_v34  ;;  %v9963_v21 = vpop.f32.mrb[106].mxu1  ;;  %v5257_v36 = vmul.f32 %v5225_v38, %v5225_v38  ;;  %v5029_v34 = vsub.f32 %v9710_v62, %v9947_v12 }
 0x63f   :  { %v7380_v61 = vpop.eup %7379  ;;  %v5124_v13 = vmul.f32 %v7378_v37, %v5028_v1  ;;  %7383 = vrsqrt.f32 %v5061_v19  ;;  %v4936_v44 = vmul.f32 %v9963_v21, %v9963_v21  ;;  %v9967_v55 = vpop.f32.mrb[107].mxu1  ;;  %v5290_v53 = vmul.f32 %v5258_v49, %v5226_v46 }
 0x640   :  { %v5123_v10 = vmul.f32 %v7380_v61, %v5027_v35  ;;  %v4935_v24 = vmul.f32 %v9967_v55, %v9967_v55  ;;  %v6954_v32 = vpop.f32.mrb[138].mxu0  ;;  %v5289_v4 = vmul.f32 %v5257_v36, %v5225_v38 }
 0x641   :  { %v4968_v42 = vsub.f32 %v6954_v32, %v4936_v44  ;;  %v4816_v59 = vpop.f32.mrb[139].mxu0  ;;  %v5160_v22 = vmul.f32 %v9911_v58, %v5124_v13 }
 0x642   :  { %v4967_v52 = vsub.f32 %v4816_v59, %v4935_v24  ;;  %v5159_v26 = vmul.f32 %v9911_v58, %v5123_v10  ;;  %7005 = vmatprep.mubr.msk.f32.mxu1 %vm1118_vm1, %v5289_v4 }
 0x643   :  { %v5000_v29 = vmax.f32 %v4968_v42, 0.0  ;;  %v5196_v28 = vadd.f32 %v9919_v27, %v5160_v22  ;;  %7006 = vmatmul.mubr.msk.f32.gmra.mrb[132].mxu1 %vm1118_vm1, %v5290_v53  ;;  %v5032_v22 = vsub.f32 %v9723_v40, %v9963_v21 }
 0x644   :  { %v4999_v2 = vmax.f32 %v4967_v52, 0.0  ;;  %v5195_v56 = vadd.f32 %v9919_v27, %v5159_v26 }
 0x645   :  { %v5064_v8 = vadd.f32 1e-05, %v5000_v29  ;;  %v5228_v51 = vmax.f32 %v5196_v28, 0.0  ;;  %v5031_v29 = vsub.f32 %v9726_v63, %v9967_v55 }
 0x646   :  { %v5063_v30 = vadd.f32 1e-05, %v4999_v2  ;;  %v5227_v50 = vmax.f32 %v5195_v56, 0.0 }
 0x647   :  { %7385 = vrsqrt.f32 %v5064_v8  ;;  %v5260_v6 = vmul.f32 %v5228_v51, %v5228_v51 }
 0x648   :  { %v7382_v43 = vpop.eup %7381  ;;  %7387 = vrsqrt.f32 %v5063_v30  ;;  %v5259_v14 = vmul.f32 %v5227_v50, %v5227_v50 }
 0x649   :  { %v7384_v1 = vpop.eup %7383  ;;  %v5126_v19 = vmul.f32 %v7382_v43, %v5030_v48  ;;  %v9981_v46 = vpop.f32.mrb[108].mxu1  ;;  %v5292_v13 = vmul.f32 %v5260_v6, %v5228_v51 }
 0x64a   :  { %v5125_v37 = vmul.f32 %v7384_v1, %v5029_v34  ;;  %v4938_v35 = vmul.f32 %v9981_v46, %v9981_v46  ;;  %v9985_v38 = vpop.f32.mrb[109].mxu1  ;;  %v5291_v61 = vmul.f32 %v5259_v14, %v5227_v50 }
 0x64b   :  { %v4937_v25 = vmul.f32 %v9985_v38, %v9985_v38  ;;  %v6957_v17 = vpop.f32.mrb[140].mxu0  ;;  %v5162_v62 = vmul.f32 %v9911_v58, %v5126_v19 }
 0x64c   :  { %v4970_v12 = vsub.f32 %v6957_v17, %v4938_v35  ;;  %v4826_v44 = vpop.f32.mrb[141].mxu0  ;;  %7008 = vmatprep.mubr.msk.f32.mxu1 %vm1118_vm1, %v5291_v61  ;;  %v5161_v10 = vmul.f32 %v9911_v58, %v5125_v37 }
 0x64d   :  { %v4969_v24 = vsub.f32 %v4826_v44, %v4937_v25  ;;  %7009 = vmatmul.mubr.msk.f32.gmra.mrb[134].mxu1 %vm1118_vm1, %v5292_v13  ;;  %v5198_v32 = vadd.f32 %v9919_v27, %v5162_v62 }
 0x64e   :  { %v5002_v36 = vmax.f32 %v4970_v12, 0.0  ;;  %v5197_v42 = vadd.f32 %v9919_v27, %v5161_v10  ;;  %v5034_v12 = vsub.f32 %v9739_v23, %v9981_v46 }
 0x64f   :  { %v5001_v59 = vmax.f32 %v4969_v24, 0.0  ;;  %v5230_v49 = vmax.f32 %v5198_v32, 0.0  ;;  %v5033_v32 = vsub.f32 %v9742_v16, %v9985_v38 }
 0x650   :  { %v5066_v52 = vadd.f32 1e-05, %v5002_v36  ;;  %v5229_v4 = vmax.f32 %v5197_v42, 0.0 }
 0x651   :  { %v7386_v26 = vpop.eup %7385  ;;  %v5065_v53 = vadd.f32 1e-05, %v5001_v59  ;;  %v5262_v28 = vmul.f32 %v5230_v49, %v5230_v49  ;;  %v9999_v8 = vpop.f32.mrb[110].mxu1 }
 0x652   :  { %v7388_v2 = vpop.eup %7387  ;;  %v5128_v56 = vmul.f32 %v7386_v26, %v5032_v22  ;;  %7389 = vrsqrt.f32 %v5066_v52  ;;  %v5261_v51 = vmul.f32 %v5229_v4, %v5229_v4  ;;  %v4940_v50 = vmul.f32 %v9999_v8, %v9999_v8  ;;  %v4483_v40 = vpop.f32.mrb[111].mxu1 }
 0x653   :  { %v5127_v30 = vmul.f32 %v7388_v2, %v5031_v29  ;;  %7391 = vrsqrt.f32 %v5065_v53  ;;  %v4939_v21 = vmul.f32 %v4483_v40, %v4483_v40  ;;  %v6960_v48 = vpop.f32.mrb[142].mxu0  ;;  %v5294_v63 = vmul.f32 %v5262_v28, %v5230_v49 }
 0x654   :  { %v5293_v6 = vmul.f32 %v5261_v51, %v5229_v4  ;;  %v4972_v43 = vsub.f32 %v6960_v48, %v4940_v50  ;;  %v4836_v34 = vpop.f32.mrb[143].mxu0  ;;  %v5164_v14 = vmul.f32 %v9911_v58, %v5128_v56 }
 0x655   :  { %v5163_v55 = vmul.f32 %v9911_v58, %v5127_v30  ;;  %v4971_v1 = vsub.f32 %v4836_v34, %v4939_v21  ;;  %v5036_v21 = vsub.f32 %v9755_v57, %v9999_v8  ;;  %v5035_v34 = vsub.f32 %v9758_v47, %v4483_v40 }
 0x656   :  { %7011 = vmatprep.mubr.msk.f32.mxu1 %vm1118_vm1, %v5293_v6  ;;  %v5004_v19 = vmax.f32 %v4972_v43, 0.0  ;;  %v5200_v35 = vadd.f32 %v9919_v27, %v5164_v14 }
 0x657   :  { %7012 = vmatmul.mubr.msk.f32.gmra.mrb[136].mxu1 %vm1118_vm1, %v5294_v63  ;;  %v5199_v37 = vadd.f32 %v9919_v27, %v5163_v55  ;;  %v5003_v61 = vmax.f32 %v4971_v1, 0.0 }
 0x658   :  { %v5068_v25 = vadd.f32 1e-05, %v5004_v19  ;;  %v5232_v13 = vmax.f32 %v5200_v35, 0.0 }
 0x659   :  { %v5231_v17 = vmax.f32 %v5199_v37, 0.0  ;;  %v5067_v62 = vadd.f32 1e-05, %v5003_v61 }
 0x65a   :  { %7393 = vrsqrt.f32 %v5068_v25  ;;  %v5264_v10 = vmul.f32 %v5232_v13, %v5232_v13 }
 0x65b   :  { %v5263_v44 = vmul.f32 %v5231_v17, %v5231_v17  ;;  %7395 = vrsqrt.f32 %v5067_v62 }
 0x65c   :  { %v7390_v24 = vpop.eup %7389  ;;  %v6901_v59 = vpop.f32.mrb[112].mxu1  ;;  %v5296_v26 = vmul.f32 %v5264_v10, %v5232_v13 }
 0x65d   :  { %v7392_v36 = vpop.eup %7391  ;;  %v5130_v42 = vmul.f32 %v7390_v24, %v5034_v12  ;;  %v5295_v49 = vmul.f32 %v5263_v44, %v5231_v17  ;;  %v4942_v52 = vmul.f32 %v6901_v59, %v6901_v59  ;;  %v4493_v4 = vpop.f32.mrb[113].mxu1 }
 0x65e   :  { %v5129_v22 = vmul.f32 %v7392_v36, %v5033_v32  ;;  %v4941_v29 = vmul.f32 %v4493_v4, %v4493_v4  ;;  %v6963_v53 = vpop.f32.mrb[144].mxu0 }
 0x65f   :  { %7014 = vmatprep.mubr.msk.f32.mxu1 %vm1118_vm1, %v5295_v49  ;;  %v5166_v23 = vmul.f32 %v9911_v58, %v5130_v42  ;;  %v4974_v46 = vsub.f32 %v6963_v53, %v4942_v52  ;;  %v4846_v28 = vpop.f32.mrb[145].mxu0  ;;  %v5037_v53 = vsub.f32 %v9774_v11, %v4493_v4 }
 0x660   :  { %7015 = vmatmul.mubr.msk.f32.gmra.mrb[138].mxu1 %vm1118_vm1, %v5296_v26  ;;  %v5165_v16 = vmul.f32 %v9911_v58, %v5129_v22  ;;  %v4973_v38 = vsub.f32 %v4846_v28, %v4941_v29  ;;  %v5038_v22 = vsub.f32 %v9771_v3, %v6901_v59 }
 0x661   :  { %v5202_v2 = vadd.f32 %v9919_v27, %v5166_v23  ;;  %v5006_v56 = vmax.f32 %v4974_v46, 0.0 }
 0x662   :  { %v5201_v51 = vadd.f32 %v9919_v27, %v5165_v16  ;;  %v5005_v30 = vmax.f32 %v4973_v38, 0.0 }
 0x663   :  { %v5234_v50 = vmax.f32 %v5202_v2, 0.0  ;;  %v5070_v48 = vadd.f32 1e-05, %v5006_v56 }
 0x664   :  { %v5233_v6 = vmax.f32 %v5201_v51, 0.0  ;;  %v7394_v43 = vpop.eup %7393  ;;  %v5069_v63 = vadd.f32 1e-05, %v5005_v30 }
 0x665   :  { %v5266_v55 = vmul.f32 %v5234_v50, %v5234_v50  ;;  %v7396_v14 = vpop.eup %7395  ;;  %v5132_v1 = vmul.f32 %v7394_v43, %v5036_v21  ;;  %7397 = vrsqrt.f32 %v5070_v48 }
 0x666   :  { %v5265_v19 = vmul.f32 %v5233_v6, %v5233_v6  ;;  %v5131_v37 = vmul.f32 %v7396_v14, %v5035_v34  ;;  %7399 = vrsqrt.f32 %v5069_v63  ;;  %v10023_v25 = vpop.f32.mrb[114].mxu1 }
 0x667   :  { %v5168_v61 = vmul.f32 %v9911_v58, %v5132_v1  ;;  %v5298_v17 = vmul.f32 %v5266_v55, %v5234_v50  ;;  %v4944_v8 = vmul.f32 %v10023_v25, %v10023_v25  ;;  %v10028_v47 = vpop.f32.mrb[115].mxu1 }
 0x668   :  { %v5297_v35 = vmul.f32 %v5265_v19, %v5233_v6  ;;  %v5167_v57 = vmul.f32 %v9911_v58, %v5131_v37  ;;  %v4943_v13 = vmul.f32 %v10028_v47, %v10028_v47  ;;  %v6966_v62 = vpop.f32.mrb[146].mxu0 }
 0x669   :  { %v5204_v40 = vadd.f32 %v9919_v27, %v5168_v61  ;;  %v4976_v44 = vsub.f32 %v6966_v62, %v4944_v8  ;;  %v4856_v10 = vpop.f32.mrb[147].mxu0 }
 0x66a   :  { %7017 = vmatprep.mubr.msk.f32.mxu1 %vm1118_vm1, %v5297_v35  ;;  %v5203_v12 = vadd.f32 %v9919_v27, %v5167_v57  ;;  %v4975_v32 = vsub.f32 %v4856_v10, %v4943_v13 }
 0x66b   :  { %7018 = vmatmul.mubr.msk.f32.gmra.mrb[140].mxu1 %vm1118_vm1, %v5298_v17  ;;  %v5236_v24 = vmax.f32 %v5204_v40, 0.0  ;;  %v5008_v42 = vmax.f32 %v4976_v44, 0.0  ;;  %v5040_v44 = vsub.f32 %v9787_v31, %v10023_v25 }
 0x66c   :  { %v5235_v36 = vmax.f32 %v5203_v12, 0.0  ;;  %v5007_v52 = vmax.f32 %v4975_v32, 0.0  ;;  %v5039_v32 = vsub.f32 %v9790_v41, %v10028_v47 }
 0x66d   :  { %v5268_v49 = vmul.f32 %v5236_v24, %v5236_v24  ;;  %v5072_v23 = vadd.f32 1e-05, %v5008_v42 }
 0x66e   :  { %v5267_v26 = vmul.f32 %v5235_v36, %v5235_v36  ;;  %v5071_v16 = vadd.f32 1e-05, %v5007_v52 }
 0x66f   :  { %v7398_v29 = vpop.eup %7397  ;;  %7401 = vrsqrt.f32 %v5072_v23  ;;  %v5300_v51 = vmul.f32 %v5268_v49, %v5236_v24 }
 0x670   :  { %v7400_v46 = vpop.eup %7399  ;;  %v5134_v28 = vmul.f32 %v7398_v29, %v5038_v22  ;;  %v5299_v38 = vmul.f32 %v5267_v26, %v5235_v36  ;;  %v10038_v56 = vpop.f32.mrb[116].mxu1  ;;  %7403 = vrsqrt.f32 %v5071_v16 }
 0x671   :  { %v5133_v2 = vmul.f32 %v7400_v46, %v5037_v53  ;;  %v4946_v30 = vmul.f32 %v10038_v56, %v10038_v56  ;;  %v10042_v3 = vpop.f32.mrb[117].mxu1 }
 0x672   :  { %7020 = vmatprep.mubr.msk.f32.mxu1 %vm1118_vm1, %v5299_v38  ;;  %v5170_v11 = vmul.f32 %v9911_v58, %v5134_v28  ;;  %v4945_v59 = vmul.f32 %v10042_v3, %v10042_v3  ;;  %v6969_v4 = vpop.f32.mrb[148].mxu0 }
 0x673   :  { %7021 = vmatmul.mubr.msk.f32.gmra.mrb[142].mxu1 %vm1118_vm1, %v5300_v51  ;;  %v5169_v50 = vmul.f32 %v9911_v58, %v5133_v2  ;;  %v4978_v21 = vsub.f32 %v6969_v4, %v4946_v30  ;;  %v4866_v48 = vpop.f32.mrb[149].mxu0 }
 0x674   :  { %v5206_v6 = vadd.f32 %v9919_v27, %v5170_v11  ;;  %v4977_v43 = vsub.f32 %v4866_v48, %v4945_v59 }
 0x675   :  { %v5205_v34 = vadd.f32 %v9919_v27, %v5169_v50  ;;  %v5010_v63 = vmax.f32 %v4978_v21, 0.0 }
 0x676   :  { %v10052_v55 = vpop.f32.mrb[118].mxu1  ;;  %v5238_v14 = vmax.f32 %v5206_v6, 0.0  ;;  %v5009_v1 = vmax.f32 %v4977_v43, 0.0 }
 0x677   :  { %v4948_v19 = vmul.f32 %v10052_v55, %v10052_v55  ;;  %v10056_v37 = vpop.f32.mrb[119].mxu1  ;;  %v5237_v35 = vmax.f32 %v5205_v34, 0.0  ;;  %v5074_v61 = vadd.f32 1e-05, %v5010_v63 }
 0x678   :  { %v4947_v17 = vmul.f32 %v10056_v37, %v10056_v37  ;;  %v6972_v57 = vpop.f32.mrb[150].mxu0  ;;  %v5270_v8 = vmul.f32 %v5238_v14, %v5238_v14  ;;  %v5073_v40 = vadd.f32 1e-05, %v5009_v1  ;;  %v5042_v1 = vsub.f32 %v9803_v7, %v10038_v56 }
 0x679   :  { %v4980_v13 = vsub.f32 %v6972_v57, %v4948_v19  ;;  %v4876_v62 = vpop.f32.mrb[151].mxu0  ;;  %v5269_v12 = vmul.f32 %v5237_v35, %v5237_v35  ;;  %7405 = vrsqrt.f32 %v5074_v61  ;;  %v7402_v24 = vpop.eup %7401  ;;  %v5041_v57 = vsub.f32 %v9806_v15, %v10042_v3 }
 0x67a   :  { %v4979_v10 = vsub.f32 %v4876_v62, %v4947_v17  ;;  %7407 = vrsqrt.f32 %v5073_v40  ;;  %v10064_v42 = vpop.f32.mrb[120].mxu1  ;;  %v7404_v22 = vpop.eup %7403  ;;  %v5136_v52 = vmul.f32 %v7402_v24, %v5040_v44  ;;  %v5302_v31 = vmul.f32 %v5270_v8, %v5238_v14 }
 0x67b   :  { %v5012_v36 = vmax.f32 %v4980_v13, 0.0  ;;  %v5301_v49 = vmul.f32 %v5269_v12, %v5237_v35  ;;  %v4950_v29 = vmul.f32 %v10064_v42, %v10064_v42  ;;  %v10068_v53 = vpop.f32.mrb[121].mxu1  ;;  %v5135_v25 = vmul.f32 %v7404_v22, %v5039_v32 }
 0x67c   :  { %v5011_v26 = vmax.f32 %v4979_v10, 0.0  ;;  %v4949_v46 = vmul.f32 %v10068_v53, %v10068_v53  ;;  %v6975_v41 = vpop.f32.mrb[152].mxu0  ;;  %v5172_v38 = vmul.f32 %v9911_v58, %v5136_v52  ;;  %v5044_v15 = vsub.f32 %v9818_v39, %v10052_v55 }
 0x67d   :  { %v5076_v23 = vadd.f32 1e-05, %v5012_v36  ;;  %7023 = vmatprep.mubr.msk.f32.mxu1 %vm1118_vm1, %v5301_v49  ;;  %v4982_v28 = vsub.f32 %v6975_v41, %v4950_v29  ;;  %v4886_v16 = vpop.f32.mrb[153].mxu0  ;;  %v5171_v30 = vmul.f32 %v9911_v58, %v5135_v25 }
 0x67e   :  { %v5075_v47 = vadd.f32 1e-05, %v5011_v26  ;;  %7024 = vmatmul.mubr.msk.f32.gmra.mrb[144].mxu1 %vm1118_vm1, %v5302_v31  ;;  %v4981_v2 = vsub.f32 %v4886_v16, %v4949_v46  ;;  %v10075_v51 = vpop.f32.mrb[122].mxu1  ;;  %v5208_v63 = vadd.f32 %v9919_v27, %v5172_v38  ;;  %v5043_v26 = vsub.f32 %v9822_v45, %v10056_v37 }
 0x67f   :  { %7409 = vrsqrt.f32 %v5076_v23  ;;  %v5014_v11 = vmax.f32 %v4982_v28, 0.0  ;;  %v4952_v59 = vmul.f32 %v10075_v51, %v10075_v51  ;;  %v10080_v4 = vpop.f32.mrb[123].mxu1  ;;  %v5207_v48 = vadd.f32 %v9919_v27, %v5171_v30 }
 0x680   :  { %7411 = vrsqrt.f32 %v5075_v47  ;;  %v5013_v50 = vmax.f32 %v4981_v2, 0.0  ;;  %v4951_v21 = vmul.f32 %v10080_v4, %v10080_v4  ;;  %v6978_v6 = vpop.f32.mrb[154].mxu0  ;;  %v5240_v40 = vmax.f32 %v5208_v63, 0.0 }
 0x681   :  { %v5078_v43 = vadd.f32 1e-05, %v5014_v11  ;;  %v4984_v34 = vsub.f32 %v6978_v6, %v4952_v59  ;;  %v4896_v14 = vpop.f32.mrb[155].mxu0  ;;  %v5239_v35 = vmax.f32 %v5207_v48, 0.0  ;;  %v5046_v2 = vsub.f32 %v9834_v9, %v10064_v42 }
 0x682   :  { %v5077_v19 = vadd.f32 1e-05, %v5013_v50  ;;  %v4983_v61 = vsub.f32 %v4896_v14, %v4951_v21  ;;  %v5272_v7 = vmul.f32 %v5240_v40, %v5240_v40 }
 0x683   :  { %v7406_v17 = vpop.eup %7405  ;;  %7413 = vrsqrt.f32 %v5078_v43  ;;  %v5016_v8 = vmax.f32 %v4984_v34, 0.0  ;;  %v5271_v12 = vmul.f32 %v5239_v35, %v5239_v35  ;;  %v5045_v43 = vsub.f32 %v9838_v18, %v10068_v53 }
 0x684   :  { %v7408_v13 = vpop.eup %7407  ;;  %v5138_v62 = vmul.f32 %v7406_v17, %v5042_v1  ;;  %7415 = vrsqrt.f32 %v5077_v19  ;;  %v5015_v44 = vmax.f32 %v4983_v61, 0.0  ;;  %v5304_v29 = vmul.f32 %v5272_v7, %v5240_v40 }
 0x685   :  { %v5137_v24 = vmul.f32 %v7408_v13, %v5041_v57  ;;  %v5080_v32 = vadd.f32 1e-05, %v5016_v8  ;;  %v5303_v3 = vmul.f32 %v5271_v12, %v5239_v35  ;;  %v5048_v57 = vsub.f32 %v9849_v33, %v10075_v51 }
 0x686   :  { %v10090_v10 = vpop.f32.mrb[124].mxu1  ;;  %v5079_v49 = vadd.f32 1e-05, %v5015_v44  ;;  %v5174_v39 = vmul.f32 %v9911_v58, %v5138_v62  ;;  %v5047_v62 = vsub.f32 %v9853_v60, %v10080_v4 }
 0x687   :  { %v4954_v56 = vmul.f32 %v10090_v10, %v10090_v10  ;;  %v10094_v36 = vpop.f32.mrb[125].mxu1  ;;  %7417 = vrsqrt.f32 %v5080_v32  ;;  %v5173_v31 = vmul.f32 %v9911_v58, %v5137_v24  ;;  %7026 = vmatprep.mubr.msk.f32.mxu1 %vm1118_vm1, %v5303_v3 }
 0x688   :  { %v4953_v22 = vmul.f32 %v10094_v36, %v10094_v36  ;;  %v6981_v52 = vpop.f32.mrb[156].mxu0  ;;  %7419 = vrsqrt.f32 %v5079_v49  ;;  %7027 = vmatmul.mubr.msk.f32.gmra.mrb[146].mxu1 %vm1118_vm1, %v5304_v29  ;;  %v5210_v16 = vadd.f32 %v9919_v27, %v5174_v39 }
 0x689   :  { %v4906_v25 = vpop.f32.mrb[157].mxu0  ;;  %v7410_v23 = vpop.eup %7409  ;;  %v4986_v46 = vsub.f32 %v6981_v52, %v4954_v56  ;;  %v5209_v28 = vadd.f32 %v9919_v27, %v5173_v31 }
 0x68a   :  { %v4985_v55 = vsub.f32 %v4906_v25, %v4953_v22  ;;  %v7412_v41 = vpop.eup %7411  ;;  %v5140_v47 = vmul.f32 %v7410_v23, %v5044_v15  ;;  %v5242_v50 = vmax.f32 %v5210_v16, 0.0 }
 0x68b   :  { %v5139_v45 = vmul.f32 %v7412_v41, %v5043_v26  ;;  %v5018_v37 = vmax.f32 %v4986_v46, 0.0  ;;  %v5241_v30 = vmax.f32 %v5209_v28, 0.0 }
 0x68c   :  { %v5017_v38 = vmax.f32 %v4985_v55, 0.0  ;;  %v5176_v11 = vmul.f32 %v9911_v58, %v5140_v47  ;;  %v5274_v19 = vmul.f32 %v5242_v50, %v5242_v50  ;;  %v5050_v47 = vsub.f32 %v9867_v5, %v10090_v10 }
 0x68d   :  { %v5082_v59 = vadd.f32 1e-05, %v5018_v37  ;;  %v5175_v48 = vmul.f32 %v9911_v58, %v5139_v45  ;;  %v7414_v6 = vpop.eup %7413  ;;  %v5273_v34 = vmul.f32 %v5241_v30, %v5241_v30 }
 0x68e   :  { %v5081_v21 = vadd.f32 1e-05, %v5017_v38  ;;  %v5212_v63 = vadd.f32 %v9919_v27, %v5176_v11  ;;  %v7416_v14 = vpop.eup %7415  ;;  %v5142_v1 = vmul.f32 %v7414_v6, %v5046_v2  ;;  %v5306_v8 = vmul.f32 %v5274_v19, %v5242_v50 }
 0x68f   :  { %7421 = vrsqrt.f32 %v5082_v59  ;;  %v5211_v9 = vadd.f32 %v9919_v27, %v5175_v48  ;;  %v5141_v42 = vmul.f32 %v7416_v14, %v5045_v43  ;;  %v5305_v35 = vmul.f32 %v5273_v34, %v5241_v30 }
 0x690   :  { %7423 = vrsqrt.f32 %v5081_v21  ;;  %v10116_v61 = vpop.f32.mrb[126].mxu1  ;;  %v5244_v17 = vmax.f32 %v5212_v63, 0.0  ;;  %v5178_v3 = vmul.f32 %v9911_v58, %v5142_v1  ;;  %v5049_v38 = vsub.f32 %v9870_v54, %v10094_v36 }
 0x691   :  { %v4956_v18 = vmul.f32 %v10116_v61, %v10116_v61  ;;  %v10122_v53 = vpop.f32.mrb[127].mxu1  ;;  %v5243_v40 = vmax.f32 %v5211_v9, 0.0  ;;  %v7418_v13 = vpop.eup %7417  ;;  %7029 = vmatprep.mubr.msk.f32.mxu1 %vm1118_vm1, %v5305_v35  ;;  %v5177_v33 = vmul.f32 %v9911_v58, %v5141_v42  ;;  %v5052_v9 = vsub.f32 %v9883_v20, %v10116_v61 }
 0x692   :  { %v4955_v12 = vmul.f32 %v10122_v53, %v10122_v53  ;;  %v6984_v44 = vpop.f32.mrb[158].mxu0  ;;  %v5276_v24 = vmul.f32 %v5244_v17, %v5244_v17  ;;  %v7420_v51 = vpop.eup %7419  ;;  %v5144_v32 = vmul.f32 %v7418_v13, %v5048_v57  ;;  %7030 = vmatmul.mubr.msk.f32.gmra.mrb[148].mxu1 %vm1118_vm1, %v5306_v8  ;;  %v5214_v26 = vadd.f32 %v9919_v27, %v5178_v3 }
 0x693   :  { %v5275_v7 = vmul.f32 %v5243_v40, %v5243_v40  ;;  %v4988_v56 = vsub.f32 %v6984_v44, %v4956_v18  ;;  %v4916_v15 = vpop.f32.mrb[159].mxu0  ;;  %v5143_v49 = vmul.f32 %v7420_v51, %v5047_v62  ;;  %v5213_v4 = vadd.f32 %v9919_v27, %v5177_v33 }
 0x694   :  { %v4987_v60 = vsub.f32 %v4916_v15, %v4955_v12  ;;  %v5180_v29 = vmul.f32 %v9911_v58, %v5144_v32  ;;  %v5308_v31 = vmul.f32 %v5276_v24, %v5244_v17  ;;  %v5246_v55 = vmax.f32 %v5214_v26, 0.0 }
 0x695   :  { %v5307_v22 = vmul.f32 %v5275_v7, %v5243_v40  ;;  %v5020_v52 = vmax.f32 %v4988_v56, 0.0  ;;  %v5245_v23 = vmax.f32 %v5213_v4, 0.0  ;;  %v5179_v46 = vmul.f32 %v9911_v58, %v5143_v49 }
 0x696   :  { %v5019_v25 = vmax.f32 %v4987_v60, 0.0  ;;  %v5216_v41 = vadd.f32 %v9919_v27, %v5180_v29  ;;  %v5278_v2 = vmul.f32 %v5246_v55, %v5246_v55  ;;  %v5051_v17 = vsub.f32 %v9886_v0, %v10122_v53 }
 0x697   :  { %7032 = vmatprep.mubr.msk.f32.mxu1 %vm1118_vm1, %v5307_v22  ;;  %v5084_v39 = vadd.f32 1e-05, %v5020_v52  ;;  %v5277_v45 = vmul.f32 %v5245_v23, %v5245_v23  ;;  %v5215_v37 = vadd.f32 %v9919_v27, %v5179_v46 }
 0x698   :  { %7033 = vmatmul.mubr.msk.f32.gmra.mrb[150].mxu1 %vm1118_vm1, %v5308_v31  ;;  %v5083_v28 = vadd.f32 1e-05, %v5019_v25  ;;  %v5248_v30 = vmax.f32 %v5216_v41, 0.0  ;;  %v5310_v5 = vmul.f32 %v5278_v2, %v5246_v55 }
 0x699   :  { %v7422_v16 = vpop.eup %7421  ;;  %7425 = vrsqrt.f32 %v5084_v39  ;;  %v5309_v50 = vmul.f32 %v5277_v45, %v5245_v23  ;;  %v5247_v21 = vmax.f32 %v5215_v37, 0.0 }
 0x69a   :  { %v7424_v11 = vpop.eup %7423  ;;  %v5146_v59 = vmul.f32 %v7422_v16, %v5050_v47  ;;  %7427 = vrsqrt.f32 %v5083_v28  ;;  %v5280_v10 = vmul.f32 %v5248_v30, %v5248_v30 }
 0x69b   :  { %v5145_v48 = vmul.f32 %v7424_v11, %v5049_v38  ;;  %7035 = vmatprep.mubr.msk.f32.mxu1 %vm1118_vm1, %v5309_v50  ;;  %v5279_v6 = vmul.f32 %v5247_v21, %v5247_v21 }
 0x69c   :  { %v5182_v43 = vmul.f32 %v9911_v58, %v5146_v59  ;;  %7036 = vmatmul.mubr.msk.f32.gmra.mrb[152].mxu1 %vm1118_vm1, %v5310_v5  ;;  %v5312_v63 = vmul.f32 %v5280_v10, %v5248_v30 }
 0x69d   :  { %v5181_v54 = vmul.f32 %v9911_v58, %v5145_v48  ;;  %v5311_v36 = vmul.f32 %v5279_v6, %v5247_v21 }
 0x69e   :  { %v5218_v34 = vadd.f32 %v9919_v27, %v5182_v43 }
 0x69f   :  { %v5217_v14 = vadd.f32 %v9919_v27, %v5181_v54  ;;  %7038 = vmatprep.mubr.msk.f32.mxu1 %vm1118_vm1, %v5311_v36 }
 0x6a0   :  { %v5250_v1 = vmax.f32 %v5218_v34, 0.0  ;;  %7039 = vmatmul.mubr.msk.f32.gmra.mrb[154].mxu1 %vm1118_vm1, %v5312_v63 }
 0x6a1   :  { %v5249_v19 = vmax.f32 %v5217_v14, 0.0 }
 0x6a2   :  { %v5282_v42 = vmul.f32 %v5250_v1, %v5250_v1 }
 0x6a3   :  { %v7426_v35 = vpop.eup %7425  ;;  %v5281_v57 = vmul.f32 %v5249_v19, %v5249_v19 }
 0x6a4   :  { %v7428_v8 = vpop.eup %7427  ;;  %v5148_v18 = vmul.f32 %v7426_v35, %v5052_v9  ;;  %v5314_v62 = vmul.f32 %v5282_v42, %v5250_v1 }
 0x6a5   :  { %v5147_v40 = vmul.f32 %v7428_v8, %v5051_v17  ;;  %v5313_v13 = vmul.f32 %v5281_v57, %v5249_v19 }
 0x6a6   :  { %v5184_v12 = vmul.f32 %v9911_v58, %v5148_v18 }
 0x6a7   :  { %7041 = vmatprep.mubr.msk.f32.mxu1 %vm1118_vm1, %v5313_v13  ;;  %v5183_v44 = vmul.f32 %v9911_v58, %v5147_v40  ;;  %v10167_v58 = vld [vmem:[%s10302_s5] ss:$0 sm:$0xff] }
 0x6a8   :  { %7042 = vmatmul.mubr.msk.f32.gmra.mrb[156].mxu1 %vm1118_vm1, %v5314_v62  ;;  %v5220_v20 = vadd.f32 %v9919_v27, %v5184_v12 }
 0x6a9   :  { %v5219_v61 = vadd.f32 %v9919_v27, %v5183_v44 }
 0x6aa   :  { %v5252_v24 = vmax.f32 %v5220_v20, 0.0 }
 0x6ab   :  { %v5251_v0 = vmax.f32 %v5219_v61, 0.0 }
 0x6ac   :  { %v5284_v53 = vmul.f32 %v5252_v24, %v5252_v24 }
 0x6ad   :  { %v5283_v33 = vmul.f32 %v5251_v0, %v5251_v0 }
 0x6ae   :  { %v5316_v32 = vmul.f32 %v5284_v53, %v5252_v24 }
 0x6af   :  { %v5315_v51 = vmul.f32 %v5283_v33, %v5251_v0 }
 0x6b1   :  { %7044 = vmatprep.mubr.msk.f32.mxu1 %vm1118_vm1, %v5315_v51 }
 0x6b2   :  { %7045 = vmatmul.mubr.msk.f32.gmra.mrb[158].mxu1 %vm1118_vm1, %v5316_v32 }
 0x705   :  { %v7001_v7 = vpop.f32.mrb[128].mxu1 }
 0x706   :  { %v5502_v56 = vadd.f32 %v7001_v7, %v10167_v58  ;;  %v5496_v15 = vpop.f32.mrb[129].mxu1 }
 0x707   :  { %v5497_v27 = vadd.f32 %v10167_v58, %v5496_v15 }
 0x708   :  { %5656 = vst [vmem:[%s10303_s6 + $0x8] sm:$0xff] %v5502_v56 }
 0x709   :  { %5655 = vst [vmem:[%s10303_s6] sm:$0xff] %v5497_v27 }
 0x70d   :  { %v7004_v3 = vpop.f32.mrb[130].mxu1 }
 0x70e   :  { %v5512_v49 = vadd.f32 %v7004_v3, %v10167_v58  ;;  %v5506_v60 = vpop.f32.mrb[131].mxu1 }
 0x70f   :  { %v5507_v4 = vadd.f32 %v10167_v58, %v5506_v60 }
 0x710   :  { %5658 = vst [vmem:[%s10303_s6 + $0x18] sm:$0xff] %v5512_v49 }
 0x711   :  { %5657 = vst [vmem:[%s10303_s6 + $0x10] sm:$0xff] %v5507_v4 }
 0x716   :  { %v7007_v22 = vpop.f32.mrb[132].mxu1 }
 0x717   :  { %v5522_v52 = vadd.f32 %v7007_v22, %v10167_v58  ;;  %v5516_v26 = vpop.f32.mrb[133].mxu1 }
 0x718   :  { %v5517_v29 = vadd.f32 %v10167_v58, %v5516_v26 }
 0x719   :  { %5660 = vst [vmem:[%s10303_s6 + $0x28] sm:$0xff] %v5522_v52 }
 0x71a   :  { %5659 = vst [vmem:[%s10303_s6 + $0x20] sm:$0xff] %v5517_v29 }
 0x720   :  { %v7010_v31 = vpop.f32.mrb[134].mxu1 }
 0x721   :  { %v5532_v25 = vadd.f32 %v7010_v31, %v10167_v58  ;;  %v5526_v23 = vpop.f32.mrb[135].mxu1 }
 0x722   :  { %v5527_v46 = vadd.f32 %v10167_v58, %v5526_v23 }
 0x723   :  { %5662 = vst [vmem:[%s10303_s6 + $0x38] sm:$0xff] %v5532_v25 }
 0x724   :  { %5661 = vst [vmem:[%s10303_s6 + $0x30] sm:$0xff] %v5527_v46 }
 0x72a   :  { %v7013_v39 = vpop.f32.mrb[136].mxu1 }
 0x72b   :  { %v5542_v55 = vadd.f32 %v7013_v39, %v10167_v58  ;;  %v5536_v41 = vpop.f32.mrb[137].mxu1 }
 0x72c   :  { %v5537_v47 = vadd.f32 %v10167_v58, %v5536_v41 }
 0x72d   :  { %5664 = vst [vmem:[%s10303_s6 + $0x48] sm:$0xff] %v5542_v55 }
 0x72e   :  { %5663 = vst [vmem:[%s10303_s6 + $0x40] sm:$0xff] %v5537_v47 }
 0x733   :  { %v7016_v28 = vpop.f32.mrb[138].mxu1 }
 0x734   :  { %v5552_v45 = vadd.f32 %v7016_v28, %v10167_v58  ;;  %v5546_v37 = vpop.f32.mrb[139].mxu1 }
 0x735   :  { %v5547_v16 = vadd.f32 %v10167_v58, %v5546_v37 }
 0x736   :  { %5666 = vst [vmem:[%s10303_s6 + $0x58] sm:$0xff] %v5552_v45 }
 0x737   :  { %5665 = vst [vmem:[%s10303_s6 + $0x50] sm:$0xff] %v5547_v16 }
 0x73e   :  { %v7019_v38 = vpop.f32.mrb[140].mxu1 }
 0x73f   :  { %v5562_v2 = vadd.f32 %v7019_v38, %v10167_v58  ;;  %v5556_v30 = vpop.f32.mrb[141].mxu1 }
 0x740   :  { %v5557_v11 = vadd.f32 %v10167_v58, %v5556_v30 }
 0x741   :  { %5668 = vst [vmem:[%s10303_s6 + $0x68] sm:$0xff] %v5562_v2 }
 0x742   :  { %5667 = vst [vmem:[%s10303_s6 + $0x60] sm:$0xff] %v5557_v11 }
 0x746   :  { %v7022_v59 = vpop.f32.mrb[142].mxu1 }
 0x747   :  { %v5572_v50 = vadd.f32 %v7022_v59, %v10167_v58  ;;  %v5566_v21 = vpop.f32.mrb[143].mxu1 }
 0x748   :  { %v5567_v48 = vadd.f32 %v10167_v58, %v5566_v21 }
 0x749   :  { %5670 = vst [vmem:[%s10303_s6 + $0x78] sm:$0xff] %v5572_v50 }
 0x74a   :  { %5669 = vst [vmem:[%s10303_s6 + $0x70] sm:$0xff] %v5567_v48 }
 0x751   :  { %v7025_v5 = vpop.f32.mrb[144].mxu1 }
 0x752   :  { %v5582_v10 = vadd.f32 %v7025_v5, %v10167_v58  ;;  %v5576_v6 = vpop.f32.mrb[145].mxu1 }
 0x753   :  { %v5577_v43 = vadd.f32 %v10167_v58, %v5576_v6 }
 0x754   :  { %5672 = vst [vmem:[%s10303_s6 + $0x88] sm:$0xff] %v5582_v10 }
 0x755   :  { %5671 = vst [vmem:[%s10303_s6 + $0x80] sm:$0xff] %v5577_v43 }
 0x75b   :  { %v7028_v54 = vpop.f32.mrb[146].mxu1 }
 0x75c   :  { %v5592_v36 = vadd.f32 %v7028_v54, %v10167_v58  ;;  %v5586_v34 = vpop.f32.mrb[147].mxu1 }
 0x75d   :  { %v5587_v63 = vadd.f32 %v10167_v58, %v5586_v34 }
 0x75e   :  { %5674 = vst [vmem:[%s10303_s6 + $0x98] sm:$0xff] %v5592_v36 }
 0x75f   :  { %5673 = vst [vmem:[%s10303_s6 + $0x90] sm:$0xff] %v5587_v63 }
 0x765   :  { %v7031_v14 = vpop.f32.mrb[148].mxu1 }
 0x766   :  { %v5602_v1 = vadd.f32 %v7031_v14, %v10167_v58  ;;  %v5596_v19 = vpop.f32.mrb[149].mxu1 }
 0x767   :  { %v5597_v9 = vadd.f32 %v10167_v58, %v5596_v19 }
 0x768   :  { %5676 = vst [vmem:[%s10303_s6 + $0xa8] sm:$0xff] %v5602_v1 }
 0x769   :  { %5675 = vst [vmem:[%s10303_s6 + $0xa0] sm:$0xff] %v5597_v9 }
 0x76b   :  { %v7034_v42 = vpop.f32.mrb[150].mxu1 }
 0x76c   :  { %v5612_v35 = vadd.f32 %v7034_v42, %v10167_v58  ;;  %v5606_v17 = vpop.f32.mrb[151].mxu1 }
 0x76d   :  { %v5607_v57 = vadd.f32 %v10167_v58, %v5606_v17 }
 0x76e   :  { %5678 = vst [vmem:[%s10303_s6 + $0xb8] sm:$0xff] %v5612_v35 }
 0x76f   :  { %5677 = vst [vmem:[%s10303_s6 + $0xb0] sm:$0xff] %v5607_v57  ;;  %v7037_v8 = vpop.f32.mrb[152].mxu1 }
 0x770   :  { %v5622_v18 = vadd.f32 %v7037_v8, %v10167_v58  ;;  %v5616_v40 = vpop.f32.mrb[153].mxu1 }
 0x771   :  { %v5617_v13 = vadd.f32 %v10167_v58, %v5616_v40 }
 0x772   :  { %5680 = vst [vmem:[%s10303_s6 + $0xc8] sm:$0xff] %v5622_v18 }
 0x773   :  { %5679 = vst [vmem:[%s10303_s6 + $0xc0] sm:$0xff] %v5617_v13  ;;  %v7040_v62 = vpop.f32.mrb[154].mxu1 }
 0x774   :  { %v5632_v12 = vadd.f32 %v7040_v62, %v10167_v58  ;;  %v5626_v44 = vpop.f32.mrb[155].mxu1 }
 0x775   :  { %v5627_v20 = vadd.f32 %v10167_v58, %v5626_v44 }
 0x776   :  { %5682 = vst [vmem:[%s10303_s6 + $0xd8] sm:$0xff] %v5632_v12 }
 0x777   :  { %5681 = vst [vmem:[%s10303_s6 + $0xd0] sm:$0xff] %v5627_v20 }
 0x77b   :  { %v7043_v61 = vpop.f32.mrb[156].mxu1 }
 0x77c   :  { %v5642_v24 = vadd.f32 %v7043_v61, %v10167_v58  ;;  %v5636_v0 = vpop.f32.mrb[157].mxu1 }
 0x77d   :  { %v5637_v53 = vadd.f32 %v10167_v58, %v5636_v0 }
 0x77e   :  { %5684 = vst [vmem:[%s10303_s6 + $0xe8] sm:$0xff] %v5642_v24 }
 0x77f   :  { %5683 = vst [vmem:[%s10303_s6 + $0xe0] sm:$0xff] %v5637_v53 }
 0x785   :  { %v7046_v33 = vpop.f32.mrb[158].mxu1 }
 0x786   :  { %v5652_v51 = vadd.f32 %v7046_v33, %v10167_v58  ;;  %v5646_v32 = vpop.f32.mrb[159].mxu1 }
 0x787   :  { %v5647_v7 = vadd.f32 %v10167_v58, %v5646_v32 }
 0x788   :  { %5686 = vst [vmem:[%s10303_s6 + $0xf8] sm:$0xff] %v5652_v51 }
 0x789   :  { %5685 = vst [vmem:[%s10303_s6 + $0xf0] sm:$0xff] %v5647_v7 }
 0x78a   :  { %5691 = vsyncpa [#allocation3], 1 }

</bundles_post_ra>
